<compile_context>
chip_gen: v5e
topology: v5e:2x2
jax: 0.10.0
libtpu: 0.0.40
codegen_flags: <defaults>
</compile_context>

<pallas_src>
import math

import jax
import jax.numpy as jnp
from jax.experimental import pallas as pl
from jax.experimental.pallas import tpu as pltpu


def _round_up(n, m):
    return ((n + m - 1) // m) * m


def _num_tensorcores():
    """Best-effort count of TensorCores sharing the grid via 'parallel' axes."""
    try:
        kind = jax.devices()[0].device_kind.lower()
    except Exception:
        return 1
    # v7x: 2 TCs per chip; v4/v5p megacore also benefits from >=2 grid steps.
    return 2 if ("v7" in kind or "v4" in kind or "v5p" in kind) else 1


def _generater_kernel(x_ref, w1_ref, b1_ref, w2_ref, b2_ref, o_ref):
    """One batch tile of the fused forward pass (weights resident in VMEM)."""
    # Linear 1: bf16 x bf16 MXU matmul, fp32 accumulation, fp32 bias add.
    h = jnp.dot(x_ref[...], w1_ref[...], preferred_element_type=jnp.float32)
    h = h + b1_ref[...]                                        # (1, 256) broadcast
    # LeakyReLU(0.01) in fp32 on the VPU.
    h = jnp.where(h >= 0.0, h, 0.01 * h)
    # Linear 2: bf16 MXU matmul, fp32 accumulation, fp32 bias add.
    y = jnp.dot(h.astype(jnp.bfloat16), w2_ref[...],
                preferred_element_type=jnp.float32)
    y = y + b2_ref[...]                                        # (1, img_pad) broadcast
    # Tanh on the EUP; store lane-dense bf16 (output is in [-1, 1]).
    o_ref[...] = jnp.tanh(y).astype(o_ref.dtype)


def generater_forward(x, w1, b1, w2, b2, img_dim, *, max_block_rows=1024):
    """x: (B, z_dim) -> (B, img_dim) bfloat16.

    w1: (z_dim, 256) bf16, b1: (1, 256) f32,
    w2: (256, img_pad) bf16 (pre-padded to a multiple of 128 lanes),
    b2: (1, img_pad) f32 (pre-padded).
    """
    B, z_dim = x.shape
    hidden, img_pad = w2.shape

    if x.dtype != jnp.bfloat16:            # no-op when the caller supplies bf16 noise
        x = x.astype(jnp.bfloat16)

    # --- batch tile: one big tile per TensorCore, rows aligned to 8 --------
    num_tc = _num_tensorcores()
    blk = min(_round_up(pl.cdiv(B, num_tc), 8), max_block_rows)
    b_pad = _round_up(B, blk)
    if b_pad != B:
        x = jnp.pad(x, ((0, b_pad - B), (0, 0)))
    grid = (b_pad // blk,)

    # --- compiler params: only raise scoped VMEM if the tile needs it ------
    est_vmem = (2 * blk * (z_dim + img_pad) * 2              # x/out tiles, bf16, 2 bufs
                + 2 * (z_dim * hidden + hidden * img_pad) * 2  # bf16 weights, 2 bufs
                + blk * (hidden + img_pad) * 4)               # f32 intermediates
    cp_kwargs = dict(dimension_semantics=("parallel",))       # shard tiles across TCs
    if est_vmem > 24 * 1024 * 1024:
        cp_kwargs["vmem_limit_bytes"] = min(2 * est_vmem, 48 * 1024 * 1024)

    out = pl.pallas_call(
        _generater_kernel,
        out_shape=jax.ShapeDtypeStruct((b_pad, img_pad), jnp.bfloat16),
        grid_spec=pltpu.PrefetchScalarGridSpec(
            num_scalar_prefetch=0,
            grid=grid,
            in_specs=[
                pl.BlockSpec((blk, z_dim), lambda i: (i, 0)),        # x tile
                pl.BlockSpec((z_dim, hidden), lambda i: (0, 0)),     # w1 pinned
                pl.BlockSpec((1, hidden), lambda i: (0, 0)),         # b1 pinned
                pl.BlockSpec((hidden, img_pad), lambda i: (0, 0)),   # w2 pinned
                pl.BlockSpec((1, img_pad), lambda i: (0, 0)),        # b2 pinned
            ],
            out_specs=pl.BlockSpec((blk, img_pad), lambda i: (i, 0)),
        ),
        compiler_params=pltpu.CompilerParams(**cp_kwargs),
    )(x, w1, b1, w2, b2)

    # Strip batch and lane padding back to the logical shape.
    return out[:B, :img_dim]


def init_generater_params(key, z_dim, img_dim, hidden=256):
    """Init mimicking nn.Linear's U(-1/sqrt(fan_in), +1/sqrt(fan_in)).

    Weights in bf16 (MXU-native, halves HBM traffic); biases in f32.
    w2/b2 are lane-padded to a multiple of 128 here, once, so the forward
    pass never pays for jnp.pad.
    """
    k1, k2, k3, k4 = jax.random.split(key, 4)
    bound1 = 1.0 / math.sqrt(z_dim)
    bound2 = 1.0 / math.sqrt(hidden)
    img_pad = _round_up(img_dim, 128)

    w1 = jax.random.uniform(k1, (z_dim, hidden), jnp.float32,
                            -bound1, bound1).astype(jnp.bfloat16)
    b1 = jax.random.uniform(k2, (1, hidden), jnp.float32, -bound1, bound1)
    w2 = jax.random.uniform(k3, (hidden, img_dim), jnp.float32,
                            -bound2, bound2)
    b2 = jax.random.uniform(k4, (1, img_dim), jnp.float32, -bound2, bound2)
    if img_pad != img_dim:                      # pad once, off the hot path
        w2 = jnp.pad(w2, ((0, 0), (0, img_pad - img_dim)))
        b2 = jnp.pad(b2, ((0, 0), (0, img_pad - img_dim)))
    return w1, b1, w2.astype(jnp.bfloat16), b2


if __name__ == "__main__":
    z_dim = 64
    img_dim = 784   # 28*28, as in the MNIST GAN the module is built for
    batch = 256     # 1 tile on v5e/v6e, 2 tiles (one per TC) on v7x

    key = jax.random.PRNGKey(0)
    k_params, k_x = jax.random.split(key)
    w1, b1, w2, b2 = init_generater_params(k_params, z_dim, img_dim)
    # GAN latent noise needs no fp32 precision: generate it in bf16.
    x = jax.random.normal(k_x, (batch, z_dim), jnp.float32).astype(jnp.bfloat16)

    out = jax.block_until_ready(generater_forward(x, w1, b1, w2, b2, img_dim))

    # Pure-JAX reference with identical bf16 casts / fp32 accumulation.
    w2_l, b2_l = w2[:, :img_dim], b2[:, :img_dim]
    h_ref = jnp.dot(x, w1, preferred_element_type=jnp.float32) + b1
    h_ref = jnp.where(h_ref >= 0.0, h_ref, 0.01 * h_ref)
    y_ref = jnp.dot(h_ref.astype(jnp.bfloat16), w2_l,
                    preferred_element_type=jnp.float32) + b2_l
    ref = jnp.tanh(y_ref)

    assert out.shape == (batch, img_dim)
    assert out.dtype == jnp.bfloat16
    max_err = float(jnp.max(jnp.abs(out.astype(jnp.float32) - ref)))
    assert jnp.allclose(out.astype(jnp.float32), ref, atol=2e-2, rtol=2e-2), max_err

    print("KERNEL_OK")
</pallas_src>

<mosaic_0001>
module attributes {stable_mosaic.version = 11 : i64} {
  func.func @_generater_kernel(%arg0: i32, %arg1: memref<256x64xbf16, #tpu.memory_space<vmem>>, %arg2: memref<64x256xbf16, #tpu.memory_space<vmem>>, %arg3: memref<1x256xf32, #tpu.memory_space<vmem>>, %arg4: memref<256x896xbf16, #tpu.memory_space<vmem>>, %arg5: memref<1x896xf32, #tpu.memory_space<vmem>>, %arg6: memref<256x896xbf16, #tpu.memory_space<vmem>>) attributes {dimension_semantics = [#tpu.dimension_semantics<parallel>], iteration_bounds = array<i64: 1>, scalar_prefetch = 0 : i64, scratch_operands = 0 : i64, tpu.core_type = #tpu.core_type<tc>, window_params = [{transform_indices = @transform_0, window_bounds = array<i64: 256, 64>}, {pipeline_mode = #tpu.pipeline_mode<synchronous>, transform_indices = @transform_1, window_bounds = array<i64: 64, 256>}, {pipeline_mode = #tpu.pipeline_mode<synchronous>, transform_indices = @transform_2, window_bounds = array<i64: 1, 256>}, {pipeline_mode = #tpu.pipeline_mode<synchronous>, transform_indices = @transform_3, window_bounds = array<i64: 256, 896>}, {pipeline_mode = #tpu.pipeline_mode<synchronous>, transform_indices = @transform_4, window_bounds = array<i64: 1, 896>}, {transform_indices = @transform_5, window_bounds = array<i64: 256, 896>}]} {
    %c0 = arith.constant 0 : index
    %c0_0 = arith.constant 0 : index
    %0 = vector.load %arg1[%c0, %c0_0] : memref<256x64xbf16, #tpu.memory_space<vmem>>, vector<256x64xbf16>
    %c0_1 = arith.constant 0 : index
    %c0_2 = arith.constant 0 : index
    %1 = vector.load %arg2[%c0_1, %c0_2] : memref<64x256xbf16, #tpu.memory_space<vmem>>, vector<64x256xbf16>
    %cst = arith.constant dense<0.000000e+00> : vector<256x256xf32>
    %2 = tpu.matmul %0, %1, %cst {dimension_numbers = #tpu.dot_dimension_numbers<[1], [0], [0], [1], [0, 0, 1, 1], [], []>} : vector<256x64xbf16>, vector<64x256xbf16>, vector<256x256xf32> -> vector<256x256xf32>
    %c0_3 = arith.constant 0 : index
    %c0_4 = arith.constant 0 : index
    %3 = vector.load %arg3[%c0_3, %c0_4] : memref<1x256xf32, #tpu.memory_space<vmem>>, vector<1x256xf32>
    %4 = vector.broadcast %3 : vector<1x256xf32> to vector<256x256xf32>
    %5 = arith.addf %2, %4 : vector<256x256xf32>
    %cst_5 = arith.constant 0.000000e+00 : f32
    %6 = vector.broadcast %cst_5 : f32 to vector<256x256xf32>
    %7 = arith.cmpf oge, %5, %6 : vector<256x256xf32>
    %cst_6 = arith.constant 0.00999999977 : f32
    %8 = vector.broadcast %cst_6 : f32 to vector<256x256xf32>
    %9 = arith.mulf %8, %5 : vector<256x256xf32>
    %10 = arith.select %7, %5, %9 : vector<256x256xi1>, vector<256x256xf32>
    %11 = arith.truncf %10 : vector<256x256xf32> to vector<256x256xbf16>
    %c0_7 = arith.constant 0 : index
    %c0_8 = arith.constant 0 : index
    %12 = vector.load %arg4[%c0_7, %c0_8] : memref<256x896xbf16, #tpu.memory_space<vmem>>, vector<256x896xbf16>
    %cst_9 = arith.constant dense<0.000000e+00> : vector<256x896xf32>
    %13 = tpu.matmul %11, %12, %cst_9 {dimension_numbers = #tpu.dot_dimension_numbers<[1], [0], [0], [1], [0, 0, 1, 1], [], []>} : vector<256x256xbf16>, vector<256x896xbf16>, vector<256x896xf32> -> vector<256x896xf32>
    %c0_10 = arith.constant 0 : index
    %c0_11 = arith.constant 0 : index
    %14 = vector.load %arg5[%c0_10, %c0_11] : memref<1x896xf32, #tpu.memory_space<vmem>>, vector<1x896xf32>
    %15 = vector.broadcast %14 : vector<1x896xf32> to vector<256x896xf32>
    %16 = arith.addf %13, %15 : vector<256x896xf32>
    %17 = math.tanh %16 : vector<256x896xf32>
    %18 = arith.truncf %17 : vector<256x896xf32> to vector<256x896xbf16>
    %c0_12 = arith.constant 0 : index
    %c0_13 = arith.constant 0 : index
    %19 = vector.load %arg6[%c0_12, %c0_13] : memref<256x896xbf16, #tpu.memory_space<vmem>>, vector<256x896xbf16>
    tpu.vector_store %arg6[%c0_12, %c0_13], %18 {strides = array<i32>} : memref<256x896xbf16, #tpu.memory_space<vmem>>, vector<256x896xbf16>,
    return
  }
  func.func @transform_0(%arg0: i32) -> (i32, i32) {
    %c0_i32 = arith.constant 0 : i32
    %c0_i32_0 = arith.constant 0 : i32
    return %arg0, %c0_i32 : i32, i32
  }
  func.func @transform_1(%arg0: i32) -> (i32, i32) {
    %c0_i32 = arith.constant 0 : i32
    %c0_i32_0 = arith.constant 0 : i32
    %c0_i32_1 = arith.constant 0 : i32
    return %c0_i32, %c0_i32_0 : i32, i32
  }
  func.func @transform_2(%arg0: i32) -> (i32, i32) {
    %c0_i32 = arith.constant 0 : i32
    %c0_i32_0 = arith.constant 0 : i32
    %c0_i32_1 = arith.constant 0 : i32
    return %c0_i32, %c0_i32_0 : i32, i32
  }
  func.func @transform_3(%arg0: i32) -> (i32, i32) {
    %c0_i32 = arith.constant 0 : i32
    %c0_i32_0 = arith.constant 0 : i32
    %c0_i32_1 = arith.constant 0 : i32
    return %c0_i32, %c0_i32_0 : i32, i32
  }
  func.func @transform_4(%arg0: i32) -> (i32, i32) {
    %c0_i32 = arith.constant 0 : i32
    %c0_i32_0 = arith.constant 0 : i32
    %c0_i32_1 = arith.constant 0 : i32
    return %c0_i32, %c0_i32_0 : i32, i32
  }
  func.func @transform_5(%arg0: i32) -> (i32, i32) {
    %c0_i32 = arith.constant 0 : i32
    %c0_i32_0 = arith.constant 0 : i32
    return %arg0, %c0_i32 : i32, i32
  }
}

</mosaic_0001>

<bundles_post_ra>
// kernel: tpu_custom_call.1
= control target key start
LH: loop header
LB: loop body
LE: loop exit
PB: predicated region body
PF: predicated region fallthrough
CT: control target
= control target key end

     0   :  { %10 = vsyncpa [#allocation3], 0  ;;  %s5423_s0 = inlined_call_operand.vmem [shape: bf16[256,64], index: 0, kind: input, shape index: {}]   ;;  %s5424_s1 = inlined_call_operand.vmem [shape: bf16[64,256], index: 1, kind: input, shape index: {}]   ;;  %s5425_s2 = inlined_call_operand.vmem [shape: f32[1,256], index: 2, kind: input, shape index: {}]   ;;  %s5426_s3 = inlined_call_operand.hbm [shape: bf16[256,896], index: 3, kind: input, shape index: {}]   ;;  %s5427_s4 = inlined_call_operand.vmem [shape: f32[1,896], index: 4, kind: input, shape index: {}]   ;;  %s5428_s5 = inlined_call_operand.hbm [shape: bf16[256,896], index: 5, kind: output, shape index: {}]  }
   0x1   :  { %11 = vsyncpa [#allocation4], 0  ;;  %s22_s20 = sshll.u32 %s5426_s3, 4  ;;  %s4339_s21 = smov [#allocation2]   ;;  %s23_s20 = int_to_ptr.hbm [resolvable:$true] %s22_s20 }
   0x2   :  { %s24_s22 = sshll.u32 %s4339_s21, 4  ;;  %s4340_s23 = smov 448   ;;  %s25_s22 = int_to_ptr.vmem [resolvable:$true] %s24_s22 }
   0x3   :  { %s4341_s24 = smov 28  }
   0x4   :  { %30 = dma.hbm_to_vmem [thread:$0]  %s23_s20, 14336, %s25_s22, [#allocation3], %s4340_s23, %s4340_s23, %s4341_s24  }
   0x5   :  { %4335 = dma.done.wait [#allocation3], 14336  }
   0x6   :  { %4336 = vsyncadd [#allocation3], 4294952960  ;;  %v3210_v0 = vld [vmem:[%s5424_s1 + $0x30] sm:$0xf]  ;;  %v3719_v1 = vld [vmem:[%s5424_s1 + $0x34] sm:$0xf0] }
   0x7   :  { %v3718_v2 = vld [vmem:[%s5424_s1 + $0x34] sm:$0xf]  ;;  %v3211_v3 = vor.u32 %v3719_v1, %v3210_v0  ;;  %v3212_v4 = vld [vmem:[%s5424_s1 + $0x38] sm:$0xf0]  ;;  %v3202_v5 = vld [vmem:[%s5424_s1 + $0x20] sm:$0xf] }
   0x8   :  { %v3717_v6 = vld [vmem:[%s5424_s1 + $0x24] sm:$0xf0]  ;;  %v3215_v7 = vor.u32 %v3718_v2, %v3212_v4  ;;  %v3716_v8 = vld [vmem:[%s5424_s1 + $0x24] sm:$0xf]  ;;  %v3204_v9 = vld [vmem:[%s5424_s1 + $0x28] sm:$0xf0] }
   0x9   :  { %257 = vmatpush.bf16.msra.mxu0 %v3211_v3  ;;  %v3203_v10 = vor.u32 %v3717_v6, %v3202_v5  ;;  %v3207_v11 = vor.u32 %v3716_v8, %v3204_v9  ;;  %v3194_v12 = vld [vmem:[%s5424_s1 + $0x10] sm:$0xf]  ;;  %v3715_v13 = vld [vmem:[%s5424_s1 + $0x14] sm:$0xf0]  ;;  %v3714_v14 = vld [vmem:[%s5424_s1 + $0x14] sm:$0xf] }
   0xa   :  { %346 = vmatpush.bf16.msra.mxu1 %v3215_v7  ;;  %v3196_v15 = vld [vmem:[%s5424_s1 + $0x18] sm:$0xf0]  ;;  %v3195_v16 = vor.u32 %v3715_v13, %v3194_v12  ;;  %v3186_v18 = vld [vmem:[%s5424_s1] sm:$0xf]  ;;  %v3713_v19 = vld [vmem:[%s5424_s1 + $0x4] sm:$0xf0] }
   0xb   :  { %v3199_v17 = vor.u32 %v3714_v14, %v3196_v15  ;;  %v3712_v20 = vld [vmem:[%s5424_s1 + $0x4] sm:$0xf]  ;;  %v3188_v21 = vld [vmem:[%s5424_s1 + $0x8] sm:$0xf0]  ;;  %v3187_v22 = vor.u32 %v3713_v19, %v3186_v18  ;;  %vm204_vm0 = vcmask 523264   ;;  %v3698_v26 = vld [vmem:[%s5423_s0 + $0x10] sm:$0xff] }
   0xc   :  { %v3191_v23 = vor.u32 %v3712_v20, %v3188_v21  ;;  %v3696_v24 = vld [vmem:[%s5423_s0] sm:$0xff]  ;;  %v3697_v25 = vld [vmem:[%s5423_s0 + $0x8] sm:$0xff]  ;;  %v3699_v27 = vld [vmem:[%s5423_s0 + $0x18] sm:$0xff]  ;;  %s3107_s26 = sshll.u32 %s5428_s5, 4  ;;  %s3108_s26 = int_to_ptr.hbm [resolvable:$true] %s3107_s26 }
   0xd   :  { %258 = vmatpush.bf16.msra.mxu0 %v3203_v10  ;;  %v3700_v28 = vld [vmem:[%s5423_s0 + $0x20] sm:$0xff]  ;;  %v3446_v29 = vld [vmem:[#allocation2 + $0x188] sm:$0xf]  ;;  %v3418_v36 = vld [vmem:[#allocation2 + $0x150] sm:$0xf] }
   0xe   :  { %347 = vmatpush.bf16.msra.mxu1 %v3207_v11  ;;  %v3772_v30 = vld [vmem:[#allocation2 + $0x1a0] sm:$0xf0]  ;;  %v3670_v31 = vld [vmem:[#allocation2 + $0x348] sm:$0xf]  ;;  %v3765_v37 = vld [vmem:[#allocation2 + $0x168] sm:$0xf0] }
   0xf   :  { %v3447_v32 = vor.u32 %v3772_v30, %v3446_v29  ;;  %v3828_v33 = vld [vmem:[#allocation2 + $0x360] sm:$0xf0]  ;;  %v3701_v35 = vld [vmem:[%s5423_s0 + $0x28] sm:$0xff]  ;;  %v3642_v38 = vld [vmem:[#allocation2 + $0x310] sm:$0xf]  ;;  %v3419_v39 = vor.u32 %v3765_v37, %v3418_v36 }
  0x10   :  { %v3671_v34 = vor.u32 %v3828_v33, %v3670_v31  ;;  %v3821_v40 = vld [vmem:[#allocation2 + $0x328] sm:$0xf0]  ;;  %v3390_v41 = vld [vmem:[#allocation2 + $0x118] sm:$0xf]  ;;  %v3758_v42 = vld [vmem:[#allocation2 + $0x130] sm:$0xf0] }
  0x11   :  { %259 = vmatpush.bf16.msra.mxu0 %v3195_v16  ;;  %1375 = vmatpush.bf16.msra.mxu2 %v3447_v32  ;;  %v3643_v43 = vor.u32 %v3821_v40, %v3642_v38  ;;  %v3614_v44 = vld [vmem:[#allocation2 + $0x2d8] sm:$0xf]  ;;  %v3814_v45 = vld [vmem:[#allocation2 + $0x2f0] sm:$0xf0]  ;;  %v3391_v46 = vor.u32 %v3758_v42, %v3390_v41  ;;  %v3362_v48 = vld [vmem:[#allocation2 + $0xe0] sm:$0xf] }
  0x12   :  { %348 = vmatpush.bf16.msra.mxu1 %v3199_v17  ;;  %1464 = vmatpush.bf16.msra.mxu3 %v3671_v34  ;;  %v3615_v47 = vor.u32 %v3814_v45, %v3614_v44  ;;  %v3751_v49 = vld [vmem:[#allocation2 + $0xf8] sm:$0xf0]  ;;  %v3586_v50 = vld [vmem:[#allocation2 + $0x2a0] sm:$0xf]  ;;  %v3702_v54 = vld [vmem:[%s5423_s0 + $0x30] sm:$0xff] }
  0x13   :  { %v3807_v51 = vld [vmem:[#allocation2 + $0x2b8] sm:$0xf0]  ;;  %v3363_v52 = vor.u32 %v3751_v49, %v3362_v48  ;;  %v3334_v55 = vld [vmem:[#allocation2 + $0xa8] sm:$0xf]  ;;  %v3744_v56 = vld [vmem:[#allocation2 + $0xc0] sm:$0xf0] }
  0x14   :  { %v3587_v53 = vor.u32 %v3807_v51, %v3586_v50  ;;  %v3558_v57 = vld [vmem:[#allocation2 + $0x268] sm:$0xf]  ;;  %v3335_v58 = vor.u32 %v3744_v56, %v3334_v55  ;;  %v3800_v59 = vld [vmem:[#allocation2 + $0x280] sm:$0xf0]  ;;  %v3306_v61 = vld [vmem:[#allocation2 + $0x70] sm:$0xf] }
  0x15   :  { %260 = vmatpush.bf16.msra.mxu0 %v3187_v22  ;;  %1376 = vmatpush.bf16.msra.mxu2 %v3419_v39  ;;  %v3559_v60 = vor.u32 %v3800_v59, %v3558_v57  ;;  %v3737_v62 = vld [vmem:[#allocation2 + $0x88] sm:$0xf0]  ;;  %v3530_v63 = vld [vmem:[#allocation2 + $0x230] sm:$0xf]  ;;  %v3278_v3 = vld [vmem:[#allocation2 + $0x38] sm:$0xf] }
  0x16   :  { %349 = vmatpush.bf16.msra.mxu1 %v3191_v23  ;;  %1465 = vmatpush.bf16.msra.mxu3 %v3643_v43  ;;  %v3307_v0 = vor.u32 %v3737_v62, %v3306_v61  ;;  %v3793_v1 = vld [vmem:[#allocation2 + $0x248] sm:$0xf0]  ;;  %v3730_v4 = vld [vmem:[#allocation2 + $0x50] sm:$0xf0]  ;;  %v3502_v5 = vld [vmem:[#allocation2 + $0x1f8] sm:$0xf] }
  0x17   :  { %v3531_v2 = vor.u32 %v3793_v1, %v3530_v63  ;;  %v3279_v6 = vor.u32 %v3730_v4, %v3278_v3  ;;  %v3786_v7 = vld [vmem:[#allocation2 + $0x210] sm:$0xf0]  ;;  %v3250_v9 = vld [vmem:[#allocation2] sm:$0xf]  ;;  %v3723_v10 = vld [vmem:[#allocation2 + $0x18] sm:$0xf0] }
  0x18   :  { %3216 = vmatmul.msk.bf16.vlgmr.msra.gmra.mxu0 %vm204_vm0, %v3696_v24  ;;  %v3503_v8 = vor.u32 %v3786_v7, %v3502_v5  ;;  %v3474_v11 = vld [vmem:[#allocation2 + $0x1c0] sm:$0xf]  ;;  %v3251_v12 = vor.u32 %v3723_v10, %v3250_v9  ;;  %v3779_v13 = vld [vmem:[#allocation2 + $0x1d8] sm:$0xf0]  ;;  %v3454_v16 = vld [vmem:[#allocation2 + $0x190] sm:$0xf] }
  0x19   :  { %3232 = vmatmul.msk.bf16.vlgmr.msra.gmra.mxu1 %vm204_vm0, %v3696_v24  ;;  %1377 = vmatpush.bf16.msra.mxu2 %v3391_v46  ;;  %v3475_v14 = vor.u32 %v3779_v13, %v3474_v11  ;;  %v3703_v15 = vld [vmem:[%s5423_s0 + $0x38] sm:$0xff]  ;;  %v3773_v17 = vld [vmem:[#allocation2 + $0x1a8] sm:$0xf0]  ;;  %v3678_v18 = vld [vmem:[#allocation2 + $0x350] sm:$0xf] }
  0x1a   :  { %1466 = vmatpush.bf16.msra.mxu3 %v3615_v47  ;;  %v3455_v19 = vor.u32 %v3773_v17, %v3454_v16  ;;  %v3829_v20 = vld [vmem:[#allocation2 + $0x368] sm:$0xf0]  ;;  %v3448_v22 = vld [vmem:[#allocation2 + $0x1a4] sm:$0xf0]  ;;  %v3426_v55 = vld [vmem:[#allocation2 + $0x158] sm:$0xf] }
  0x1b   :  { %v3769_v21 = vld [vmem:[#allocation2 + $0x18c] sm:$0xf]  ;;  %v3679_v23 = vor.u32 %v3829_v20, %v3678_v18  ;;  %v3766_v56 = vld [vmem:[#allocation2 + $0x170] sm:$0xf0]  ;;  %v3650_v57 = vld [vmem:[#allocation2 + $0x318] sm:$0xf] }
  0x1c   :  { %v3451_v24 = vor.u32 %v3769_v21, %v3448_v22  ;;  %v3705_v50 = vld [vmem:[%s5423_s0 + $0x48] sm:$0xff]  ;;  %v3822_v59 = vld [vmem:[#allocation2 + $0x330] sm:$0xf0]  ;;  %v3420_v61 = vld [vmem:[#allocation2 + $0x16c] sm:$0xf0] }
  0x1d   :  { %1378 = vmatpush.bf16.msra.mxu2 %v3363_v52  ;;  %v3651_v63 = vor.u32 %v3822_v59, %v3650_v57  ;;  %v3644_v16 = vld [vmem:[#allocation2 + $0x32c] sm:$0xf0] }
  0x1e   :  { %1467 = vmatpush.bf16.msra.mxu3 %v3587_v53  ;;  %1553 = vmatpush.bf16.msrb.mxu0 %v3451_v24 }
  0x21   :  { %1379 = vmatpush.bf16.msra.mxu2 %v3335_v58  ;;  %v3427_v58 = vor.u32 %v3766_v56, %v3426_v55 }
  0x22   :  { %1468 = vmatpush.bf16.msra.mxu3 %v3559_v60  ;;  %v3762_v60 = vld [vmem:[#allocation2 + $0x154] sm:$0xf] }
  0x25   :  { %1380 = vmatpush.bf16.msra.mxu2 %v3307_v0  ;;  %v3423_v0 = vor.u32 %v3762_v60, %v3420_v61 }
  0x26   :  { %1469 = vmatpush.bf16.msra.mxu3 %v3531_v2 }
  0x27   :  { %1554 = vmatpush.bf16.msrb.mxu0 %v3423_v0 }
  0x28   :  { %3217 = vmatmul.msk.bf16.gmra.mxu0 %vm204_vm0, %v3697_v25 }
  0x29   :  { %3233 = vmatmul.msk.bf16.gmra.mxu1 %vm204_vm0, %v3697_v25  ;;  %1381 = vmatpush.bf16.msra.mxu2 %v3279_v6  ;;  %v78_v25 = vld [vmem:[%s5425_s2] sm:$0x3] }
  0x2a   :  { %1470 = vmatpush.bf16.msra.mxu3 %v3503_v8  ;;  %v4473_v31 = vperm.slane %v78_v25, 0  ;;  %v4475_v33 = vperm.slane %v78_v25, 1 }
  0x2d   :  { %1382 = vmatpush.bf16.msra.mxu2 %v3251_v12 }
  0x2e   :  { %1471 = vmatpush.bf16.msra.mxu3 %v3475_v14  ;;  %v3706_v14 = vld [vmem:[%s5423_s0 + $0x50] sm:$0xff] }
  0x31   :  { %1731 = vmatpush.bf16.msrb.mxu2 %v3455_v19 }
  0x32   :  { %1820 = vmatpush.bf16.msrb.mxu3 %v3679_v23 }
  0x35   :  { %1732 = vmatpush.bf16.msrb.mxu2 %v3427_v58 }
  0x36   :  { %1821 = vmatpush.bf16.msrb.mxu3 %v3651_v63 }
  0x38   :  { %3218 = vmatmul.msk.bf16.gmra.mxu0 %vm204_vm0, %v3698_v26 }
  0x39   :  { %3234 = vmatmul.msk.bf16.gmra.mxu1 %vm204_vm0, %v3698_v26  ;;  %v3704_v26 = vld [vmem:[%s5423_s0 + $0x40] sm:$0xff] }
  0x48   :  { %3219 = vmatmul.msk.bf16.gmra.mxu0 %vm204_vm0, %v3699_v27 }
  0x49   :  { %3235 = vmatmul.msk.bf16.gmra.mxu1 %vm204_vm0, %v3699_v27  ;;  %v3825_v27 = vld [vmem:[#allocation2 + $0x34c] sm:$0xf] }
  0x58   :  { %3220 = vmatmul.msk.bf16.gmra.mxu0 %vm204_vm0, %v3700_v28 }
  0x59   :  { %3236 = vmatmul.msk.bf16.gmra.mxu1 %vm204_vm0, %v3700_v28  ;;  %v3672_v28 = vld [vmem:[#allocation2 + $0x364] sm:$0xf0] }
  0x5a   :  { %v3675_v30 = vor.u32 %v3825_v27, %v3672_v28 }
  0x5c   :  { %1642 = vmatpush.bf16.msrb.mxu1 %v3675_v30 }
  0x68   :  { %3221 = vmatmul.msk.bf16.gmra.mxu0 %vm204_vm0, %v3701_v35 }
  0x69   :  { %3237 = vmatmul.msk.bf16.gmra.mxu1 %vm204_vm0, %v3701_v35 }
  0x78   :  { %3222 = vmatmul.msk.bf16.gmra.mxu0 %vm204_vm0, %v3702_v54 }
  0x79   :  { %3238 = vmatmul.msk.bf16.gmra.mxu1 %vm204_vm0, %v3702_v54 }
  0x88   :  { %3223 = vmatmul.msk.bf16.gmra.mxu0 %vm204_vm0, %v3703_v15 }
  0x89   :  { %3239 = vmatmul.msk.bf16.gmra.mxu1 %vm204_vm0, %v3703_v15  ;;  %v3818_v15 = vld [vmem:[#allocation2 + $0x314] sm:$0xf] }
  0x8a   :  { %v3647_v18 = vor.u32 %v3818_v15, %v3644_v16 }
  0x8c   :  { %1643 = vmatpush.bf16.msrb.mxu1 %v3647_v18 }
  0x95   :  { %v262_v29 = vpop.f32.mrf.mxu0 }
  0x96   :  { %v351_v32 = vpop.f32.mrf.mxu1  ;;  %v263_v34 = vadd.f32 %v262_v29, %v4473_v31 }
  0x97   :  { %v352_v35 = vadd.f32 %v351_v32, %v4475_v33 }
  0x98   :  { %3224 = vmatmul.msk.bf16.gmra.mxu0 %vm204_vm0, %v3704_v26  ;;  %v495_v37 = vmul.f32 0.01, %v263_v34  ;;  %vm431_vm1 = vcmp.ge.f32.partialorder %v263_v34, 0.0 }
  0x99   :  { %3240 = vmatmul.msk.bf16.gmra.mxu1 %vm204_vm0, %v3704_v26  ;;  %v496_v40 = vmul.f32 0.01, %v352_v35  ;;  %vm432_vm2 = vcmp.ge.f32.partialorder %v352_v35, 0.0 }
  0x9a   :  { %v559_v44 = vsel %vm431_vm1, %v263_v34, %v495_v37 }
  0x9b   :  { %v560_v46 = vsel %vm432_vm2, %v352_v35, %v496_v40 }
  0x9d   :  { %v264_v36 = vpop.f32.mrf.mxu0 }
  0x9e   :  { %v265_v38 = vadd.f32 %v264_v36, %v4473_v31  ;;  %v353_v39 = vpop.f32.mrf.mxu1 }
  0x9f   :  { %v354_v41 = vadd.f32 %v353_v39, %v4475_v33 }
  0xa0   :  { %vm433_vm3 = vcmp.ge.f32.partialorder %v265_v38, 0.0  ;;  %v497_v42 = vmul.f32 0.01, %v265_v38 }
  0xa1   :  { %vm434_vm4 = vcmp.ge.f32.partialorder %v354_v41, 0.0  ;;  %v498_v43 = vmul.f32 0.01, %v354_v41 }
  0xa2   :  { %v561_v45 = vsel %vm433_vm3, %v265_v38, %v497_v42  ;;  %v3707_v38 = vld [vmem:[%s5423_s0 + $0x58] sm:$0xff] }
  0xa3   :  { %v4483_v47 = vpack.c.bf16 %v561_v45, %v559_v44  ;;  %v562_v48 = vsel %vm434_vm4, %v354_v41, %v498_v43  ;;  %v3398_v43 = vld [vmem:[#allocation2 + $0x120] sm:$0xf]  ;;  %v3759_v44 = vld [vmem:[#allocation2 + $0x138] sm:$0xf0] }
  0xa4   :  { %v4485_v49 = vpack.c.bf16 %v562_v48, %v560_v46  ;;  %v3622_v45 = vld [vmem:[#allocation2 + $0x2e0] sm:$0xf]  ;;  %v3399_v46 = vor.u32 %v3759_v44, %v3398_v43  ;;  %v3815_v48 = vld [vmem:[#allocation2 + $0x2f8] sm:$0xf0]  ;;  %v3797_v44 = vld [vmem:[#allocation2 + $0x26c] sm:$0xf] }
  0xa5   :  { %v267_v51 = vpop.f32.mrf.mxu0  ;;  %1383 = vmatmul.bf16.vlgmr.msra.gmra.mxu2 %v4483_v47 }
  0xa6   :  { %v356_v52 = vpop.f32.mrf.mxu1  ;;  %1472 = vmatmul.bf16.vlgmr.msra.gmra.mxu3 %v4485_v49  ;;  %v268_v53 = vadd.f32 %v267_v51, %v4473_v31  ;;  %v3392_v51 = vld [vmem:[#allocation2 + $0x134] sm:$0xf0]  ;;  %1733 = vmatpush.bf16.msrb.mxu2 %v3399_v46  ;;  %v3560_v46 = vld [vmem:[#allocation2 + $0x284] sm:$0xf0] }
  0xa7   :  { %v357_v54 = vadd.f32 %v356_v52, %v4475_v33 }
  0xa8   :  { %3225 = vmatmul.msk.bf16.gmra.mxu0 %vm204_vm0, %v3705_v50  ;;  %v499_v1 = vmul.f32 0.01, %v268_v53  ;;  %vm435_vm5 = vcmp.ge.f32.partialorder %v268_v53, 0.0 }
  0xa9   :  { %3241 = vmatmul.msk.bf16.gmra.mxu1 %vm204_vm0, %v3705_v50  ;;  %v500_v4 = vmul.f32 0.01, %v357_v54  ;;  %vm436_vm6 = vcmp.ge.f32.partialorder %v357_v54, 0.0  ;;  %v3755_v50 = vld [vmem:[#allocation2 + $0x11c] sm:$0xf] }
  0xaa   :  { %v563_v8 = vsel %vm435_vm5, %v268_v53, %v499_v1  ;;  %v3623_v53 = vor.u32 %v3815_v48, %v3622_v45 }
  0xab   :  { %v564_v10 = vsel %vm436_vm6, %v357_v54, %v500_v4  ;;  %v3395_v54 = vor.u32 %v3755_v50, %v3392_v51  ;;  %v3708_v4 = vld [vmem:[%s5423_s0 + $0x60] sm:$0xff]  ;;  %v3563_v50 = vor.u32 %v3797_v44, %v3560_v46  ;;  %v3370_v51 = vld [vmem:[#allocation2 + $0xe8] sm:$0xf] }
  0xac   :  { %1822 = vmatpush.bf16.msrb.mxu3 %v3623_v53  ;;  %v3594_v53 = vld [vmem:[#allocation2 + $0x2a8] sm:$0xf] }
  0xad   :  { %v269_v62 = vpop.f32.mrf.mxu0  ;;  %1555 = vmatpush.bf16.msrb.mxu0 %v3395_v54 }
  0xae   :  { %v270_v2 = vadd.f32 %v269_v62, %v4473_v31  ;;  %v358_v3 = vpop.f32.mrf.mxu1 }
  0xaf   :  { %v359_v5 = vadd.f32 %v358_v3, %v4475_v33 }
  0xb0   :  { %vm437_vm7 = vcmp.ge.f32.partialorder %v270_v2, 0.0  ;;  %v501_v6 = vmul.f32 0.01, %v270_v2 }
  0xb1   :  { %vm438_vm8 = vcmp.ge.f32.partialorder %v359_v5, 0.0  ;;  %v502_v7 = vmul.f32 0.01, %v359_v5 }
  0xb2   :  { %v565_v9 = vsel %vm437_vm7, %v270_v2, %v501_v6  ;;  %v3616_v6 = vld [vmem:[#allocation2 + $0x2f4] sm:$0xf0] }
  0xb3   :  { %v4498_v11 = vpack.c.bf16 %v565_v9, %v563_v8  ;;  %v566_v12 = vsel %vm438_vm8, %v359_v5, %v502_v7  ;;  %v3811_v5 = vld [vmem:[#allocation2 + $0x2dc] sm:$0xf] }
  0xb4   :  { %v4500_v13 = vpack.c.bf16 %v566_v12, %v564_v10  ;;  %v3619_v8 = vor.u32 %v3811_v5, %v3616_v6 }
  0xb5   :  { %v272_v17 = vpop.f32.mrf.mxu0  ;;  %1388 = vmatmul.bf16.gmra.mxu2 %v4498_v11 }
  0xb6   :  { %5447 = vst [vmem:[#allocation8_spill] sm:$0xff] %v4500_v13  ;;  %v361_v19 = vpop.f32.mrf.mxu1  ;;  %1477 = vmatmul.bf16.gmra.mxu3 %v4500_v13  ;;  %v273_v20 = vadd.f32 %v272_v17, %v4473_v31  ;;  %1644 = vmatpush.bf16.msrb.mxu1 %v3619_v8  ;;  %v3280_v8 = vld [vmem:[#allocation2 + $0x54] sm:$0xf0] }
  0xb7   :  { %v362_v21 = vadd.f32 %v361_v19, %v4475_v33 }
  0xb8   :  { %3226 = vmatmul.msk.bf16.gmra.mxu0 %vm204_vm0, %v3706_v14  ;;  %v503_v23 = vmul.f32 0.01, %v273_v20  ;;  %vm439_vm9 = vcmp.ge.f32.partialorder %v273_v20, 0.0 }
  0xb9   :  { %3242 = vmatmul.msk.bf16.gmra.mxu1 %vm204_vm0, %v3706_v14  ;;  %v504_v26 = vmul.f32 0.01, %v362_v21  ;;  %vm440_vm10 = vcmp.ge.f32.partialorder %v362_v21, 0.0 }
  0xba   :  { %v567_v30 = vsel %vm439_vm9, %v273_v20, %v503_v23 }
  0xbb   :  { %v568_v34 = vsel %vm440_vm10, %v362_v21, %v504_v26 }
  0xbd   :  { %v274_v22 = vpop.f32.mrf.mxu0 }
  0xbe   :  { %v275_v24 = vadd.f32 %v274_v22, %v4473_v31  ;;  %v363_v25 = vpop.f32.mrf.mxu1 }
  0xbf   :  { %v364_v27 = vadd.f32 %v363_v25, %v4475_v33 }
  0xc0   :  { %vm441_vm11 = vcmp.ge.f32.partialorder %v275_v24, 0.0  ;;  %v505_v28 = vmul.f32 0.01, %v275_v24 }
  0xc1   :  { %vm442_vm12 = vcmp.ge.f32.partialorder %v364_v27, 0.0  ;;  %v506_v29 = vmul.f32 0.01, %v364_v27 }
  0xc2   :  { %v569_v32 = vsel %vm441_vm11, %v275_v24, %v505_v28  ;;  %v3364_v28 = vld [vmem:[#allocation2 + $0xfc] sm:$0xf0] }
  0xc3   :  { %v4513_v35 = vpack.c.bf16 %v569_v32, %v567_v30  ;;  %v570_v36 = vsel %vm442_vm12, %v364_v27, %v506_v29  ;;  %v3748_v27 = vld [vmem:[#allocation2 + $0xe4] sm:$0xf]  ;;  %v3709_v32 = vld [vmem:[%s5423_s0 + $0x68] sm:$0xff] }
  0xc4   :  { %v4515_v37 = vpack.c.bf16 %v570_v36, %v568_v34  ;;  %v3804_v29 = vld [vmem:[#allocation2 + $0x2a4] sm:$0xf]  ;;  %v3367_v34 = vor.u32 %v3748_v27, %v3364_v28  ;;  %v3588_v36 = vld [vmem:[#allocation2 + $0x2bc] sm:$0xf0]  ;;  %v3710_v27 = vld [vmem:[%s5423_s0 + $0x70] sm:$0xff] }
  0xc5   :  { %v277_v39 = vpop.f32.mrf.mxu0  ;;  %1393 = vmatmul.bf16.gmra.mxu2 %v4513_v35 }
  0xc6   :  { %v366_v40 = vpop.f32.mrf.mxu1  ;;  %1482 = vmatmul.bf16.gmra.mxu3 %v4515_v37  ;;  %v278_v41 = vadd.f32 %v277_v39, %v4473_v31  ;;  %v3591_v39 = vor.u32 %v3804_v29, %v3588_v36  ;;  %1556 = vmatpush.bf16.msrb.mxu0 %v3367_v34  ;;  %v3476_v29 = vld [vmem:[#allocation2 + $0x1dc] sm:$0xf0] }
  0xc7   :  { %v367_v42 = vadd.f32 %v366_v40, %v4475_v33 }
  0xc8   :  { %3227 = vmatmul.msk.bf16.gmra.mxu0 %vm204_vm0, %v3707_v38  ;;  %v507_v55 = vmul.f32 0.01, %v278_v41  ;;  %vm443_vm13 = vcmp.ge.f32.partialorder %v278_v41, 0.0  ;;  %1645 = vmatpush.bf16.msrb.mxu1 %v3591_v39 }
  0xc9   :  { %3243 = vmatmul.msk.bf16.gmra.mxu1 %vm204_vm0, %v3707_v38  ;;  %v508_v58 = vmul.f32 0.01, %v367_v42  ;;  %vm444_vm14 = vcmp.ge.f32.partialorder %v367_v42, 0.0 }
  0xca   :  { %v571_v62 = vsel %vm443_vm13, %v278_v41, %v507_v55  ;;  %v3741_v41 = vld [vmem:[#allocation2 + $0xac] sm:$0xf]  ;;  %v3808_v55 = vld [vmem:[#allocation2 + $0x2c0] sm:$0xf0] }
  0xcb   :  { %v572_v0 = vsel %vm444_vm14, %v367_v42, %v508_v58  ;;  %v3336_v42 = vld [vmem:[#allocation2 + $0xc4] sm:$0xf0] }
  0xcc   :  { %v3339_v43 = vor.u32 %v3741_v41, %v3336_v42  ;;  %1646 = vmatpush.bf16.msrb.mxu1 %v3563_v50 }
  0xcd   :  { %v279_v52 = vpop.f32.mrf.mxu0 }
  0xce   :  { %v280_v56 = vadd.f32 %v279_v52, %v4473_v31  ;;  %v368_v57 = vpop.f32.mrf.mxu1  ;;  %1557 = vmatpush.bf16.msrb.mxu0 %v3339_v43  ;;  %v3752_v52 = vld [vmem:[#allocation2 + $0x100] sm:$0xf0] }
  0xcf   :  { %v369_v59 = vadd.f32 %v368_v57, %v4475_v33  ;;  %v3371_v54 = vor.u32 %v3752_v52, %v3370_v51  ;;  %v3308_v57 = vld [vmem:[#allocation2 + $0x8c] sm:$0xf0] }
  0xd0   :  { %vm445_vm15 = vcmp.ge.f32.partialorder %v280_v56, 0.0  ;;  %v509_v60 = vmul.f32 0.01, %v280_v56 }
  0xd1   :  { %vm446_vm1 = vcmp.ge.f32.partialorder %v369_v59, 0.0  ;;  %v510_v61 = vmul.f32 0.01, %v369_v59  ;;  %1734 = vmatpush.bf16.msrb.mxu2 %v3371_v54 }
  0xd2   :  { %v573_v63 = vsel %vm445_vm15, %v280_v56, %v509_v60  ;;  %v3734_v56 = vld [vmem:[#allocation2 + $0x74] sm:$0xf] }
  0xd3   :  { %v4528_v1 = vpack.c.bf16 %v573_v63, %v571_v62  ;;  %v574_v2 = vsel %vm446_vm1, %v369_v59, %v510_v61  ;;  %v3595_v59 = vor.u32 %v3808_v55, %v3594_v53  ;;  %v3311_v60 = vor.u32 %v3734_v56, %v3308_v57  ;;  %v3790_v61 = vld [vmem:[#allocation2 + $0x234] sm:$0xf]  ;;  %v3532_v62 = vld [vmem:[#allocation2 + $0x24c] sm:$0xf0]  ;;  %v3711_v56 = vld [vmem:[%s5423_s0 + $0x78] sm:$0xff] }
  0xd4   :  { %v4530_v3 = vpack.c.bf16 %v574_v2, %v572_v0  ;;  %v3535_v5 = vor.u32 %v3790_v61, %v3532_v62  ;;  %v3342_v61 = vld [vmem:[#allocation2 + $0xb0] sm:$0xf]  ;;  %v3745_v62 = vld [vmem:[#allocation2 + $0xc8] sm:$0xf0] }
  0xd5   :  { %v282_v7 = vpop.f32.mrf.mxu0  ;;  %1398 = vmatmul.bf16.gmra.mxu2 %v4528_v1  ;;  %1823 = vmatpush.bf16.msrb.mxu3 %v3595_v59 }
  0xd6   :  { %v371_v9 = vpop.f32.mrf.mxu1  ;;  %1487 = vmatmul.bf16.gmra.mxu3 %v4530_v3  ;;  %v283_v10 = vadd.f32 %v282_v7, %v4473_v31  ;;  %1558 = vmatpush.bf16.msrb.mxu0 %v3311_v60  ;;  %v3727_v7 = vld [vmem:[#allocation2 + $0x3c] sm:$0xf] }
  0xd7   :  { %v372_v12 = vadd.f32 %v371_v9, %v4475_v33  ;;  %v3783_v9 = vld [vmem:[#allocation2 + $0x1fc] sm:$0xf]  ;;  %1647 = vmatpush.bf16.msrb.mxu1 %v3535_v5 }
  0xd8   :  { %3228 = vmatmul.msk.bf16.gmra.mxu0 %vm204_vm0, %v3708_v4  ;;  %v511_v15 = vmul.f32 0.01, %v283_v10  ;;  %vm447_vm2 = vcmp.ge.f32.partialorder %v283_v10, 0.0 }
  0xd9   :  { %3244 = vmatmul.msk.bf16.gmra.mxu1 %vm204_vm0, %v3708_v4  ;;  %v512_v18 = vmul.f32 0.01, %v372_v12  ;;  %vm448_vm3 = vcmp.ge.f32.partialorder %v372_v12, 0.0 }
  0xda   :  { %v575_v22 = vsel %vm447_vm2, %v283_v10, %v511_v15 }
  0xdb   :  { %v576_v24 = vsel %vm448_vm3, %v372_v12, %v512_v18  ;;  %v3283_v12 = vor.u32 %v3727_v7, %v3280_v8 }
  0xdd   :  { %v284_v14 = vpop.f32.mrf.mxu0  ;;  %1559 = vmatpush.bf16.msrb.mxu0 %v3283_v12 }
  0xde   :  { %v285_v16 = vadd.f32 %v284_v14, %v4473_v31  ;;  %v373_v17 = vpop.f32.mrf.mxu1  ;;  %v3504_v14 = vld [vmem:[#allocation2 + $0x214] sm:$0xf0] }
  0xdf   :  { %v374_v19 = vadd.f32 %v373_v17, %v4475_v33 }
  0xe0   :  { %vm449_vm4 = vcmp.ge.f32.partialorder %v285_v16, 0.0  ;;  %v513_v20 = vmul.f32 0.01, %v285_v16 }
  0xe1   :  { %vm450_vm5 = vcmp.ge.f32.partialorder %v374_v19, 0.0  ;;  %v514_v21 = vmul.f32 0.01, %v374_v19 }
  0xe2   :  { %v577_v23 = vsel %vm449_vm4, %v285_v16, %v513_v20  ;;  %v3507_v16 = vor.u32 %v3783_v9, %v3504_v14 }
  0xe3   :  { %v4543_v25 = vpack.c.bf16 %v577_v23, %v575_v22  ;;  %v578_v26 = vsel %vm450_vm5, %v374_v19, %v514_v21  ;;  %v3720_v22 = vld [vmem:[#allocation2 + $0x4] sm:$0xf]  ;;  %v3252_v23 = vld [vmem:[#allocation2 + $0x1c] sm:$0xf0] }
  0xe4   :  { %v4545_v30 = vpack.c.bf16 %v578_v26, %v576_v24  ;;  %v3776_v24 = vld [vmem:[#allocation2 + $0x1c4] sm:$0xf]  ;;  %1648 = vmatpush.bf16.msrb.mxu1 %v3507_v16  ;;  %v3255_v28 = vor.u32 %v3720_v22, %v3252_v23 }
  0xe5   :  { %v287_v38 = vpop.f32.mrf.mxu0  ;;  %1403 = vmatmul.bf16.gmra.mxu2 %v4543_v25  ;;  %v3479_v34 = vor.u32 %v3776_v24, %v3476_v29 }
  0xe6   :  { %v376_v40 = vpop.f32.mrf.mxu1  ;;  %1492 = vmatmul.bf16.gmra.mxu3 %v4545_v30  ;;  %v288_v45 = vadd.f32 %v287_v38, %v4473_v31  ;;  %1560 = vmatpush.bf16.msrb.mxu0 %v3255_v28 }
  0xe7   :  { %v377_v48 = vadd.f32 %v376_v40, %v4475_v33 }
  0xe8   :  { %3229 = vmatmul.msk.bf16.gmra.mxu0 %vm204_vm0, %v3709_v32  ;;  %vm451_vm6 = vcmp.ge.f32.partialorder %v288_v45, 0.0  ;;  %v515_v63 = vmul.f32 0.01, %v288_v45  ;;  %1649 = vmatpush.bf16.msrb.mxu1 %v3479_v34 }
  0xe9   :  { %3245 = vmatmul.msk.bf16.gmra.mxu1 %vm204_vm0, %v3709_v32  ;;  %v516_v0 = vmul.f32 0.01, %v377_v48  ;;  %vm452_vm7 = vcmp.ge.f32.partialorder %v377_v48, 0.0 }
  0xea   :  { %v579_v17 = vsel %vm451_vm6, %v288_v45, %v515_v63  ;;  %v3566_v63 = vld [vmem:[#allocation2 + $0x270] sm:$0xf] }
  0xeb   :  { %v580_v19 = vsel %vm452_vm7, %v377_v48, %v516_v0  ;;  %v3343_v0 = vor.u32 %v3745_v62, %v3342_v61  ;;  %v3314_v61 = vld [vmem:[#allocation2 + $0x78] sm:$0xf]  ;;  %v3738_v62 = vld [vmem:[#allocation2 + $0x90] sm:$0xf0] }
  0xed   :  { %v289_v58 = vpop.f32.mrf.mxu0  ;;  %1735 = vmatpush.bf16.msrb.mxu2 %v3343_v0  ;;  %v3315_v0 = vor.u32 %v3738_v62, %v3314_v61 }
  0xee   :  { %v290_v2 = vadd.f32 %v289_v58, %v4473_v31  ;;  %v378_v4 = vpop.f32.mrf.mxu1 }
  0xef   :  { %v379_v6 = vadd.f32 %v378_v4, %v4475_v33 }
  0xf0   :  { %vm453_vm8 = vcmp.ge.f32.partialorder %v290_v2, 0.0  ;;  %v517_v10 = vmul.f32 0.01, %v290_v2 }
  0xf1   :  { %vm454_vm9 = vcmp.ge.f32.partialorder %v379_v6, 0.0  ;;  %v518_v15 = vmul.f32 0.01, %v379_v6  ;;  %1736 = vmatpush.bf16.msrb.mxu2 %v3315_v0 }
  0xf2   :  { %v581_v18 = vsel %vm453_vm8, %v290_v2, %v517_v10  ;;  %v3801_v2 = vld [vmem:[#allocation2 + $0x288] sm:$0xf0] }
  0xf3   :  { %v4559_v20 = vpack.c.bf16 %v581_v18, %v579_v17  ;;  %v582_v21 = vsel %vm454_vm9, %v379_v6, %v518_v15  ;;  %v3567_v5 = vor.u32 %v3801_v2, %v3566_v63  ;;  %v3538_v63 = vld [vmem:[#allocation2 + $0x238] sm:$0xf]  ;;  %v3794_v2 = vld [vmem:[#allocation2 + $0x250] sm:$0xf0] }
  0xf4   :  { %v4561_v26 = vpack.c.bf16 %v582_v21, %v580_v19 }
  0xf5   :  { %v292_v32 = vpop.f32.mrf.mxu0  ;;  %1408 = vmatmul.bf16.gmra.mxu2 %v4559_v20  ;;  %1824 = vmatpush.bf16.msrb.mxu3 %v3567_v5  ;;  %v3539_v5 = vor.u32 %v3794_v2, %v3538_v63 }
  0xf6   :  { %v381_v36 = vpop.f32.mrf.mxu1  ;;  %1497 = vmatmul.bf16.gmra.mxu3 %v4561_v26  ;;  %v293_v38 = vadd.f32 %v292_v32, %v4473_v31 }
  0xf7   :  { %v382_v39 = vadd.f32 %v381_v36, %v4475_v33 }
  0xf8   :  { %3230 = vmatmul.msk.bf16.gmra.mxu0 %vm204_vm0, %v3710_v27  ;;  %v519_v41 = vmul.f32 0.01, %v293_v38  ;;  %vm455_vm10 = vcmp.ge.f32.partialorder %v293_v38, 0.0 }
  0xf9   :  { %3246 = vmatmul.msk.bf16.gmra.mxu1 %vm204_vm0, %v3710_v27  ;;  %v520_v44 = vmul.f32 0.01, %v382_v39  ;;  %vm456_vm11 = vcmp.ge.f32.partialorder %v382_v39, 0.0  ;;  %1825 = vmatpush.bf16.msrb.mxu3 %v3539_v5 }
  0xfa   :  { %v583_v50 = vsel %vm455_vm10, %v293_v38, %v519_v41 }
  0xfb   :  { %v584_v52 = vsel %vm456_vm11, %v382_v39, %v520_v44 }
  0xfd   :  { %v294_v40 = vpop.f32.mrf.mxu0 }
  0xfe   :  { %v295_v42 = vadd.f32 %v294_v40, %v4473_v31  ;;  %v383_v43 = vpop.f32.mrf.mxu1 }
  0xff   :  { %v384_v45 = vadd.f32 %v383_v43, %v4475_v33  ;;  %v4604_v43 = vld [vmem:[%s5427_s4] sm:$0xff] }
 0x100   :  { %vm457_vm12 = vcmp.ge.f32.partialorder %v295_v42, 0.0  ;;  %v521_v46 = vmul.f32 0.01, %v295_v42 }
 0x101   :  { %vm458_vm13 = vcmp.ge.f32.partialorder %v384_v45, 0.0  ;;  %v522_v48 = vmul.f32 0.01, %v384_v45 }
 0x102   :  { %v585_v51 = vsel %vm457_vm12, %v295_v42, %v521_v46 }
 0x103   :  { %v4574_v53 = vpack.c.bf16 %v585_v51, %v583_v50  ;;  %v586_v54 = vsel %vm458_vm13, %v384_v45, %v522_v48  ;;  %v4612_v51 = vperm.slane %v4604_v43, 0 }
 0x104   :  { %v4576_v55 = vpack.c.bf16 %v586_v54, %v584_v52 }
 0x105   :  { %5448 = vst [vmem:[#allocation9_spill] sm:$0xff] %v4574_v53  ;;  %v297_v57 = vpop.f32.mrf.mxu0  ;;  %1413 = vmatmul.bf16.gmra.mxu2 %v4574_v53 }
 0x106   :  { %5449 = vst [vmem:[#allocation10_spill] sm:$0xff] %v4576_v55  ;;  %v386_v58 = vpop.f32.mrf.mxu1  ;;  %1502 = vmatmul.bf16.gmra.mxu3 %v4576_v55  ;;  %v298_v59 = vadd.f32 %v297_v57, %v4473_v31 }
 0x107   :  { %v387_v60 = vadd.f32 %v386_v58, %v4475_v33 }
 0x108   :  { %3231 = vmatmul.msk.bf16.gmra.mxu0 %vm204_vm0, %v3711_v56  ;;  %v523_v6 = vmul.f32 0.01, %v298_v59  ;;  %vm459_vm14 = vcmp.ge.f32.partialorder %v298_v59, 0.0 }
 0x109   :  { %3247 = vmatmul.msk.bf16.gmra.mxu1 %vm204_vm0, %v3711_v56  ;;  %v524_v9 = vmul.f32 0.01, %v387_v60  ;;  %vm460_vm0 = vcmp.ge.f32.partialorder %v387_v60, 0.0 }
 0x10a   :  { %v587_v15 = vsel %vm459_vm14, %v298_v59, %v523_v6 }
 0x10b   :  { %v588_v17 = vsel %vm460_vm0, %v387_v60, %v524_v9 }
 0x10d   :  { %v299_v4 = vpop.f32.mrf.mxu0 }
 0x10e   :  { %v300_v7 = vadd.f32 %v299_v4, %v4473_v31  ;;  %v388_v8 = vpop.f32.mrf.mxu1 }
 0x10f   :  { %v389_v10 = vadd.f32 %v388_v8, %v4475_v33 }
 0x110   :  { %vm461_vm15 = vcmp.ge.f32.partialorder %v300_v7, 0.0  ;;  %v525_v12 = vmul.f32 0.01, %v300_v7 }
 0x111   :  { %vm462_vm1 = vcmp.ge.f32.partialorder %v389_v10, 0.0  ;;  %v526_v14 = vmul.f32 0.01, %v389_v10 }
 0x112   :  { %v589_v16 = vsel %vm461_vm15, %v300_v7, %v525_v12 }
 0x113   :  { %v4589_v18 = vpack.c.bf16 %v589_v16, %v587_v15  ;;  %v590_v19 = vsel %vm462_vm1, %v389_v10, %v526_v14 }
 0x114   :  { %v4591_v21 = vpack.c.bf16 %v590_v19, %v588_v17 }
 0x115   :  { %5450 = vst [vmem:[#allocation11_spill] sm:$0xff] %v4589_v18  ;;  %v302_v22 = vpop.f32.mrf.mxu0  ;;  %1418 = vmatmul.bf16.gmra.mxu2 %v4589_v18 }
 0x116   :  { %5451 = vst [vmem:[#allocation12_spill] sm:$0xff] %v4591_v21  ;;  %v391_v23 = vpop.f32.mrf.mxu1  ;;  %1507 = vmatmul.bf16.gmra.mxu3 %v4591_v21  ;;  %v303_v24 = vadd.f32 %v302_v22, %v4473_v31 }
 0x117   :  { %v392_v27 = vadd.f32 %v391_v23, %v4475_v33 }
 0x118   :  { %1561 = vmatmul.bf16.vlgmr.msrb.gmra.mxu0 %v4483_v47  ;;  %v527_v29 = vmul.f32 0.01, %v303_v24  ;;  %vm463_vm2 = vcmp.ge.f32.partialorder %v303_v24, 0.0 }
 0x119   :  { %1650 = vmatmul.bf16.vlgmr.msrb.gmra.mxu1 %v4485_v49  ;;  %v528_v36 = vmul.f32 0.01, %v392_v27  ;;  %vm464_vm3 = vcmp.ge.f32.partialorder %v392_v27, 0.0 }
 0x11a   :  { %v591_v41 = vsel %vm463_vm2, %v303_v24, %v527_v29 }
 0x11b   :  { %v592_v44 = vsel %vm464_vm3, %v392_v27, %v528_v36 }
 0x11d   :  { %v304_v28 = vpop.f32.mrf.mxu0 }
 0x11e   :  { %v305_v32 = vadd.f32 %v304_v28, %v4473_v31  ;;  %v393_v34 = vpop.f32.mrf.mxu1 }
 0x11f   :  { %v394_v38 = vadd.f32 %v393_v34, %v4475_v33 }
 0x120   :  { %vm465_vm4 = vcmp.ge.f32.partialorder %v305_v32, 0.0  ;;  %v529_v39 = vmul.f32 0.01, %v305_v32 }
 0x121   :  { %vm466_vm5 = vcmp.ge.f32.partialorder %v394_v38, 0.0  ;;  %v530_v40 = vmul.f32 0.01, %v394_v38 }
 0x122   :  { %v593_v42 = vsel %vm465_vm4, %v305_v32, %v529_v39 }
 0x123   :  { %v4606_v45 = vpack.c.bf16 %v593_v42, %v591_v41  ;;  %v594_v46 = vsel %vm466_vm5, %v394_v38, %v530_v40 }
 0x124   :  { %v4608_v48 = vpack.c.bf16 %v594_v46, %v592_v44 }
 0x125   :  { %v307_v50 = vpop.f32.mrf.mxu0  ;;  %1423 = vmatmul.bf16.gmra.mxu2 %v4606_v45 }
 0x126   :  { %v396_v52 = vpop.f32.mrf.mxu1  ;;  %1512 = vmatmul.bf16.gmra.mxu3 %v4608_v48  ;;  %v308_v58 = vadd.f32 %v307_v50, %v4473_v31 }
 0x127   :  { %v397_v59 = vadd.f32 %v396_v52, %v4475_v33 }
 0x128   :  { %v1384_v54 = vpop.f32.mrf.mxu2  ;;  %1566 = vmatmul.bf16.gmra.mxu0 %v4498_v11  ;;  %v531_v6 = vmul.f32 0.01, %v308_v58  ;;  %vm467_vm6 = vcmp.ge.f32.partialorder %v308_v58, 0.0 }
 0x129   :  { %v1385_v56 = vadd.f32 %v1384_v54, %v4612_v51  ;;  %v1473_v57 = vpop.f32.mrf.mxu3  ;;  %1655 = vmatmul.bf16.gmra.mxu1 %v4500_v13  ;;  %v532_v9 = vmul.f32 0.01, %v397_v59  ;;  %vm468_vm7 = vcmp.ge.f32.partialorder %v397_v59, 0.0 }
 0x12a   :  { %v595_v19 = vsel %vm467_vm6, %v308_v58, %v531_v6 }
 0x12b   :  { %v4620_v60 = vadd.f32 %v1473_v57, %v1385_v56  ;;  %v596_v23 = vsel %vm468_vm7, %v397_v59, %v532_v9 }
 0x12d   :  { %v309_v4 = vpop.f32.mrf.mxu0  ;;  %3836 = vtanh.f32 %v4620_v60 }
 0x12e   :  { %v310_v7 = vadd.f32 %v309_v4, %v4473_v31  ;;  %v398_v8 = vpop.f32.mrf.mxu1 }
 0x12f   :  { %v399_v10 = vadd.f32 %v398_v8, %v4475_v33 }
 0x130   :  { %vm469_vm8 = vcmp.ge.f32.partialorder %v310_v7, 0.0  ;;  %v533_v12 = vmul.f32 0.01, %v310_v7  ;;  %v1386_v14 = vpop.f32.mrf.mxu2 }
 0x131   :  { %vm470_vm9 = vcmp.ge.f32.partialorder %v399_v10, 0.0  ;;  %v534_v15 = vmul.f32 0.01, %v399_v10  ;;  %v1387_v16 = vadd.f32 %v1386_v14, %v4612_v51  ;;  %v1475_v17 = vpop.f32.mrf.mxu3 }
 0x132   :  { %v597_v22 = vsel %vm469_vm8, %v310_v7, %v533_v12 }
 0x133   :  { %v4625_v24 = vpack.c.bf16 %v597_v22, %v595_v19  ;;  %v598_v27 = vsel %vm470_vm9, %v399_v10, %v534_v15  ;;  %v4627_v28 = vadd.f32 %v1475_v17, %v1387_v16  ;;  %v3286_v19 = vld [vmem:[#allocation2 + $0x40] sm:$0xf]  ;;  %v3731_v22 = vld [vmem:[#allocation2 + $0x58] sm:$0xf0] }
 0x134   :  { %v4629_v29 = vpack.c.bf16 %v598_v27, %v596_v23  ;;  %v3510_v23 = vld [vmem:[#allocation2 + $0x200] sm:$0xf]  ;;  %v3287_v27 = vor.u32 %v3731_v22, %v3286_v19 }
 0x135   :  { %v312_v32 = vpop.f32.mrf.mxu0  ;;  %1428 = vmatmul.bf16.gmra.mxu2 %v4625_v24 }
 0x136   :  { %v401_v34 = vpop.f32.mrf.mxu1  ;;  %1517 = vmatmul.bf16.gmra.mxu3 %v4629_v29  ;;  %v313_v40 = vadd.f32 %v312_v32, %v4473_v31  ;;  %v3787_v32 = vld [vmem:[#allocation2 + $0x218] sm:$0xf0]  ;;  %1737 = vmatpush.bf16.msrb.mxu2 %v3287_v27 }
 0x137   :  { %v402_v41 = vadd.f32 %v401_v34, %v4475_v33 }
 0x138   :  { %v1389_v36 = vpop.f32.mrf.mxu2  ;;  %1571 = vmatmul.bf16.gmra.mxu0 %v4513_v35  ;;  %v535_v46 = vmul.f32 0.01, %v313_v40  ;;  %vm471_vm10 = vcmp.ge.f32.partialorder %v313_v40, 0.0 }
 0x139   :  { %v1390_v38 = vadd.f32 %v1389_v36, %v4612_v51  ;;  %v1478_v39 = vpop.f32.mrf.mxu3  ;;  %1660 = vmatmul.bf16.gmra.mxu1 %v4515_v37  ;;  %v536_v54 = vmul.f32 0.01, %v402_v41  ;;  %vm472_vm11 = vcmp.ge.f32.partialorder %v402_v41, 0.0  ;;  %v3511_v36 = vor.u32 %v3787_v32, %v3510_v23 }
 0x13a   :  { %v599_v63 = vsel %vm471_vm10, %v313_v40, %v535_v46 }
 0x13b   :  { %v4638_v42 = vadd.f32 %v1478_v39, %v1390_v38  ;;  %v600_v2 = vsel %vm472_vm11, %v402_v41, %v536_v54  ;;  %1826 = vmatpush.bf16.msrb.mxu3 %v3511_v36 }
 0x13d   :  { %v314_v44 = vpop.f32.mrf.mxu0 }
 0x13e   :  { %v315_v50 = vadd.f32 %v314_v44, %v4473_v31  ;;  %v403_v52 = vpop.f32.mrf.mxu1 }
 0x13f   :  { %v404_v56 = vadd.f32 %v403_v52, %v4475_v33 }
 0x140   :  { %vm473_vm12 = vcmp.ge.f32.partialorder %v315_v50, 0.0  ;;  %v537_v57 = vmul.f32 0.01, %v315_v50  ;;  %v1391_v58 = vpop.f32.mrf.mxu2 }
 0x141   :  { %vm474_vm13 = vcmp.ge.f32.partialorder %v404_v56, 0.0  ;;  %v538_v59 = vmul.f32 0.01, %v404_v56  ;;  %v1392_v61 = vadd.f32 %v1391_v58, %v4612_v51  ;;  %v1480_v62 = vpop.f32.mrf.mxu3 }
 0x142   :  { %v601_v0 = vsel %vm473_vm12, %v315_v50, %v537_v57 }
 0x143   :  { %v4643_v4 = vpack.c.bf16 %v601_v0, %v599_v63  ;;  %v602_v5 = vsel %vm474_vm13, %v404_v56, %v538_v59  ;;  %v4645_v6 = vadd.f32 %v1480_v62, %v1392_v61 }
 0x144   :  { %v4647_v7 = vpack.c.bf16 %v602_v5, %v600_v2 }
 0x145   :  { %v317_v8 = vpop.f32.mrf.mxu0  ;;  %1433 = vmatmul.bf16.gmra.mxu2 %v4643_v4 }
 0x146   :  { %v406_v9 = vpop.f32.mrf.mxu1  ;;  %1522 = vmatmul.bf16.gmra.mxu3 %v4647_v7  ;;  %v318_v15 = vadd.f32 %v317_v8, %v4473_v31 }
 0x147   :  { %v407_v16 = vadd.f32 %v406_v9, %v4475_v33 }
 0x148   :  { %v1394_v10 = vpop.f32.mrf.mxu2  ;;  %1576 = vmatmul.bf16.gmra.mxu0 %v4528_v1  ;;  %v539_v38 = vmul.f32 0.01, %v318_v15  ;;  %vm475_vm14 = vcmp.ge.f32.partialorder %v318_v15, 0.0 }
 0x149   :  { %v1395_v12 = vadd.f32 %v1394_v10, %v4612_v51  ;;  %v1483_v14 = vpop.f32.mrf.mxu3  ;;  %1665 = vmatmul.bf16.gmra.mxu1 %v4530_v3  ;;  %v540_v41 = vmul.f32 0.01, %v407_v16  ;;  %vm476_vm0 = vcmp.ge.f32.partialorder %v407_v16, 0.0 }
 0x14a   :  { %v603_v57 = vsel %vm475_vm14, %v318_v15, %v539_v38 }
 0x14b   :  { %v4656_v17 = vadd.f32 %v1483_v14, %v1395_v12  ;;  %v604_v59 = vsel %vm476_vm0, %v407_v16, %v540_v41 }
 0x14d   :  { %v319_v34 = vpop.f32.mrf.mxu0 }
 0x14e   :  { %v320_v39 = vadd.f32 %v319_v34, %v4473_v31  ;;  %v408_v40 = vpop.f32.mrf.mxu1 }
 0x14f   :  { %v409_v44 = vadd.f32 %v408_v40, %v4475_v33 }
 0x150   :  { %vm477_vm15 = vcmp.ge.f32.partialorder %v320_v39, 0.0  ;;  %v541_v46 = vmul.f32 0.01, %v320_v39  ;;  %v1396_v50 = vpop.f32.mrf.mxu2 }
 0x151   :  { %vm478_vm1 = vcmp.ge.f32.partialorder %v409_v44, 0.0  ;;  %v542_v52 = vmul.f32 0.01, %v409_v44  ;;  %v1397_v54 = vadd.f32 %v1396_v50, %v4612_v51  ;;  %v1485_v56 = vpop.f32.mrf.mxu3 }
 0x152   :  { %v605_v58 = vsel %vm477_vm15, %v320_v39, %v541_v46 }
 0x153   :  { %v4661_v61 = vpack.c.bf16 %v605_v58, %v603_v57  ;;  %v606_v62 = vsel %vm478_vm1, %v409_v44, %v542_v52  ;;  %v4663_v63 = vadd.f32 %v1485_v56, %v1397_v54 }
 0x154   :  { %v4665_v0 = vpack.c.bf16 %v606_v62, %v604_v59 }
 0x155   :  { %v322_v2 = vpop.f32.mrf.mxu0  ;;  %1438 = vmatmul.bf16.gmra.mxu2 %v4661_v61 }
 0x156   :  { %5452 = vst [vmem:[#allocation13_spill] sm:$0xff] %v4665_v0  ;;  %v411_v5 = vpop.f32.mrf.mxu1  ;;  %1527 = vmatmul.bf16.gmra.mxu3 %v4665_v0  ;;  %v323_v12 = vadd.f32 %v322_v2, %v4473_v31 }
 0x157   :  { %v412_v14 = vadd.f32 %v411_v5, %v4475_v33 }
 0x158   :  { %v1399_v8 = vpop.f32.mrf.mxu2  ;;  %1581 = vmatmul.bf16.gmra.mxu0 %v4543_v25  ;;  %v543_v19 = vmul.f32 0.01, %v323_v12  ;;  %vm479_vm2 = vcmp.ge.f32.partialorder %v323_v12, 0.0 }
 0x159   :  { %v1400_v9 = vadd.f32 %v1399_v8, %v4612_v51  ;;  %v1488_v10 = vpop.f32.mrf.mxu3  ;;  %1670 = vmatmul.bf16.gmra.mxu1 %v4545_v30  ;;  %v544_v27 = vmul.f32 0.01, %v412_v14  ;;  %vm480_vm3 = vcmp.ge.f32.partialorder %v412_v14, 0.0 }
 0x15a   :  { %v607_v41 = vsel %vm479_vm2, %v323_v12, %v543_v19  ;;  %v3724_v12 = vld [vmem:[#allocation2 + $0x20] sm:$0xf0] }
 0x15b   :  { %v4674_v15 = vadd.f32 %v1488_v10, %v1400_v9  ;;  %v608_v46 = vsel %vm480_vm3, %v412_v14, %v544_v27  ;;  %v3258_v10 = vld [vmem:[#allocation2 + $0x8] sm:$0xf]  ;;  %v3780_v19 = vld [vmem:[#allocation2 + $0x1e0] sm:$0xf0] }
 0x15c   :  { %v3482_v14 = vld [vmem:[#allocation2 + $0x1c8] sm:$0xf] }
 0x15d   :  { %v324_v16 = vpop.f32.mrf.mxu0 }
 0x15e   :  { %v325_v22 = vadd.f32 %v324_v16, %v4473_v31  ;;  %v413_v23 = vpop.f32.mrf.mxu1  ;;  %v3259_v16 = vor.u32 %v3724_v12, %v3258_v10 }
 0x15f   :  { %v414_v32 = vadd.f32 %v413_v23, %v4475_v33  ;;  %v3483_v23 = vor.u32 %v3780_v19, %v3482_v14 }
 0x160   :  { %vm481_vm4 = vcmp.ge.f32.partialorder %v325_v22, 0.0  ;;  %v545_v34 = vmul.f32 0.01, %v325_v22  ;;  %v1401_v36 = vpop.f32.mrf.mxu2  ;;  %1738 = vmatpush.bf16.msrb.mxu2 %v3259_v16 }
 0x161   :  { %vm482_vm5 = vcmp.ge.f32.partialorder %v414_v32, 0.0  ;;  %v546_v38 = vmul.f32 0.01, %v414_v32  ;;  %v1402_v39 = vadd.f32 %v1401_v36, %v4612_v51  ;;  %v1490_v40 = vpop.f32.mrf.mxu3  ;;  %1827 = vmatpush.bf16.msrb.mxu3 %v3483_v23 }
 0x162   :  { %v609_v44 = vsel %vm481_vm4, %v325_v22, %v545_v34 }
 0x163   :  { %v4679_v50 = vpack.c.bf16 %v609_v44, %v607_v41  ;;  %v610_v52 = vsel %vm482_vm5, %v414_v32, %v546_v38  ;;  %v4681_v54 = vadd.f32 %v1490_v40, %v1402_v39 }
 0x164   :  { %v4683_v56 = vpack.c.bf16 %v610_v52, %v608_v46 }
 0x165   :  { %v327_v57 = vpop.f32.mrf.mxu0  ;;  %1443 = vmatmul.bf16.gmra.mxu2 %v4679_v50 }
 0x166   :  { %v416_v58 = vpop.f32.mrf.mxu1  ;;  %1532 = vmatmul.bf16.gmra.mxu3 %v4683_v56  ;;  %v328_v5 = vadd.f32 %v327_v57, %v4473_v31 }
 0x167   :  { %v417_v8 = vadd.f32 %v416_v58, %v4475_v33 }
 0x168   :  { %v1404_v59 = vpop.f32.mrf.mxu2  ;;  %1586 = vmatmul.bf16.gmra.mxu0 %v4559_v20  ;;  %v547_v27 = vmul.f32 0.01, %v328_v5  ;;  %vm483_vm6 = vcmp.ge.f32.partialorder %v328_v5, 0.0 }
 0x169   :  { %v1405_v62 = vadd.f32 %v1404_v59, %v4612_v51  ;;  %v1493_v2 = vpop.f32.mrf.mxu3  ;;  %1675 = vmatmul.bf16.gmra.mxu1 %v4561_v26  ;;  %v548_v36 = vmul.f32 0.01, %v417_v8  ;;  %vm484_vm7 = vcmp.ge.f32.partialorder %v417_v8, 0.0 }
 0x16a   :  { %v611_v52 = vsel %vm483_vm6, %v328_v5, %v547_v27 }
 0x16b   :  { %v4692_v9 = vadd.f32 %v1493_v2, %v1405_v62  ;;  %v612_v58 = vsel %vm484_vm7, %v417_v8, %v548_v36 }
 0x16d   :  { %v329_v22 = vpop.f32.mrf.mxu0 }
 0x16e   :  { %v330_v32 = vadd.f32 %v329_v22, %v4473_v31  ;;  %v418_v34 = vpop.f32.mrf.mxu1 }
 0x16f   :  { %v419_v38 = vadd.f32 %v418_v34, %v4475_v33 }
 0x170   :  { %vm485_vm8 = vcmp.ge.f32.partialorder %v330_v32, 0.0  ;;  %v549_v39 = vmul.f32 0.01, %v330_v32  ;;  %v1406_v40 = vpop.f32.mrf.mxu2 }
 0x171   :  { %vm486_vm9 = vcmp.ge.f32.partialorder %v419_v38, 0.0  ;;  %v550_v41 = vmul.f32 0.01, %v419_v38  ;;  %v1407_v44 = vadd.f32 %v1406_v40, %v4612_v51  ;;  %v1495_v46 = vpop.f32.mrf.mxu3 }
 0x172   :  { %v613_v57 = vsel %vm485_vm8, %v330_v32, %v549_v39 }
 0x173   :  { %v4697_v59 = vpack.c.bf16 %v613_v57, %v611_v52  ;;  %v614_v62 = vsel %vm486_vm9, %v419_v38, %v550_v41  ;;  %v4699_v2 = vadd.f32 %v1495_v46, %v1407_v44 }
 0x174   :  { %v4701_v10 = vpack.c.bf16 %v614_v62, %v612_v58 }
 0x175   :  { %5453 = vst [vmem:[#allocation14_spill] sm:$0xff] %v4697_v59  ;;  %v332_v12 = vpop.f32.mrf.mxu0  ;;  %1448 = vmatmul.bf16.gmra.mxu2 %v4697_v59 }
 0x176   :  { %5454 = vst [vmem:[#allocation15_spill] sm:$0xff] %v4701_v10  ;;  %v421_v14 = vpop.f32.mrf.mxu1  ;;  %1537 = vmatmul.bf16.gmra.mxu3 %v4701_v10  ;;  %v333_v8 = vadd.f32 %v332_v12, %v4473_v31 }
 0x177   :  { %v422_v22 = vadd.f32 %v421_v14, %v4475_v33 }
 0x178   :  { %v1409_v16 = vpop.f32.mrf.mxu2  ;;  %1591 = vmatmul.bf16.gmra.mxu0 %v4574_v53  ;;  %v551_v32 = vmul.f32 0.01, %v333_v8  ;;  %vm487_vm10 = vcmp.ge.f32.partialorder %v333_v8, 0.0 }
 0x179   :  { %v1410_v5 = vadd.f32 %v1409_v16, %v4612_v51  ;;  %v1498_v19 = vpop.f32.mrf.mxu3  ;;  %1680 = vmatmul.bf16.gmra.mxu1 %v4576_v55  ;;  %v552_v38 = vmul.f32 0.01, %v422_v22  ;;  %vm488_vm11 = vcmp.ge.f32.partialorder %v422_v22, 0.0 }
 0x17a   :  { %v615_v57 = vsel %vm487_vm10, %v333_v8, %v551_v32 }
 0x17b   :  { %v4710_v23 = vadd.f32 %v1498_v19, %v1410_v5  ;;  %v616_v62 = vsel %vm488_vm11, %v422_v22, %v552_v38 }
 0x17d   :  { %v334_v27 = vpop.f32.mrf.mxu0 }
 0x17e   :  { %v335_v34 = vadd.f32 %v334_v27, %v4473_v31  ;;  %v423_v36 = vpop.f32.mrf.mxu1 }
 0x17f   :  { %v424_v39 = vadd.f32 %v423_v36, %v4475_v33 }
 0x180   :  { %vm489_vm12 = vcmp.ge.f32.partialorder %v335_v34, 0.0  ;;  %v553_v40 = vmul.f32 0.01, %v335_v34  ;;  %v1411_v41 = vpop.f32.mrf.mxu2 }
 0x181   :  { %vm490_vm13 = vcmp.ge.f32.partialorder %v424_v39, 0.0  ;;  %v554_v44 = vmul.f32 0.01, %v424_v39  ;;  %v1412_v46 = vadd.f32 %v1411_v41, %v4612_v51  ;;  %v1500_v52 = vpop.f32.mrf.mxu3 }
 0x182   :  { %v617_v58 = vsel %vm489_vm12, %v335_v34, %v553_v40 }
 0x183   :  { %v4715_v12 = vpack.c.bf16 %v617_v58, %v615_v57  ;;  %v618_v14 = vsel %vm490_vm13, %v424_v39, %v554_v44  ;;  %v4717_v16 = vadd.f32 %v1500_v52, %v1412_v46 }
 0x184   :  { %v4719_v5 = vpack.c.bf16 %v618_v14, %v616_v62 }
 0x185   :  { %v337_v19 = vpop.f32.mrf.mxu0  ;;  %1453 = vmatmul.bf16.gmra.mxu2 %v4715_v12 }
 0x186   :  { %5455 = vst [vmem:[#allocation16_spill] sm:$0xff] %v4719_v5  ;;  %v426_v27 = vpop.f32.mrf.mxu1  ;;  %1542 = vmatmul.bf16.gmra.mxu3 %v4719_v5  ;;  %v338_v22 = vadd.f32 %v337_v19, %v4473_v31  ;;  %v3830_v5 = vld [vmem:[#allocation2 + $0x370] sm:$0xf0] }
 0x187   :  { %v427_v34 = vadd.f32 %v426_v27, %v4475_v33 }
 0x188   :  { %v1414_v36 = vpop.f32.mrf.mxu2  ;;  %1596 = vmatmul.bf16.gmra.mxu0 %v4589_v18  ;;  %v555_v40 = vmul.f32 0.01, %v338_v22  ;;  %vm491_vm14 = vcmp.ge.f32.partialorder %v338_v22, 0.0  ;;  %v3686_v18 = vld [vmem:[#allocation2 + $0x358] sm:$0xf] }
 0x189   :  { %v1415_v8 = vadd.f32 %v1414_v36, %v4612_v51  ;;  %v1503_v32 = vpop.f32.mrf.mxu3  ;;  %1685 = vmatmul.bf16.gmra.mxu1 %v4591_v21  ;;  %v556_v46 = vmul.f32 0.01, %v427_v34  ;;  %vm492_vm0 = vcmp.ge.f32.partialorder %v427_v34, 0.0 }
 0x18a   :  { %v619_v27 = vsel %vm491_vm14, %v338_v22, %v555_v40 }
 0x18b   :  { %v4728_v38 = vadd.f32 %v1503_v32, %v1415_v8  ;;  %v4734_v8 = vperm.slane %v4604_v43, 1  ;;  %v3687_v43 = vor.u32 %v3830_v5, %v3686_v18  ;;  %v3826_v5 = vld [vmem:[#allocation2 + $0x354] sm:$0xf] }
 0x18d   :  { %5456 = vst [vmem:[#allocation17_spill] sm:$0xff] %v4728_v38  ;;  %v339_v39 = vpop.f32.mrf.mxu0  ;;  %v3456_v38 = vld [vmem:[#allocation2 + $0x1ac] sm:$0xf0]  ;;  %2176 = vmatpush.bf16.msra.mxu3 %v3687_v43 }
 0x18e   :  { %v340_v41 = vadd.f32 %v339_v39, %v4473_v31  ;;  %v428_v44 = vpop.f32.mrf.mxu1  ;;  %v620_v31 = vsel %vm492_vm0, %v427_v34, %v556_v46 }
 0x18f   :  { %v429_v52 = vadd.f32 %v428_v44, %v4475_v33  ;;  %v3462_v33 = vld [vmem:[#allocation2 + $0x198] sm:$0xf]  ;;  %v3774_v44 = vld [vmem:[#allocation2 + $0x1b0] sm:$0xf0] }
 0x190   :  { %vm493_vm15 = vcmp.ge.f32.partialorder %v340_v41, 0.0  ;;  %v557_v57 = vmul.f32 0.01, %v340_v41  ;;  %v1416_v58 = vpop.f32.mrf.mxu2  ;;  %v3463_v53 = vor.u32 %v3774_v44, %v3462_v33 }
 0x191   :  { %vm494_vm1 = vcmp.ge.f32.partialorder %v429_v52, 0.0  ;;  %v558_v62 = vmul.f32 0.01, %v429_v52  ;;  %v1417_v14 = vadd.f32 %v1416_v58, %v4612_v51  ;;  %v1505_v19 = vpop.f32.mrf.mxu3  ;;  %v3770_v58 = vld [vmem:[#allocation2 + $0x194] sm:$0xf] }
 0x192   :  { %v621_v36 = vsel %vm493_vm15, %v340_v41, %v557_v57  ;;  %v3459_v40 = vor.u32 %v3770_v58, %v3456_v38  ;;  %2087 = vmatpush.bf16.msra.mxu2 %v3463_v53  ;;  %v3680_v38 = vld [vmem:[#allocation2 + $0x36c] sm:$0xf0] }
 0x193   :  { %v4736_v32 = vpack.c.bf16 %v621_v36, %v619_v27  ;;  %v622_v39 = vsel %vm494_vm1, %v429_v52, %v558_v62  ;;  %v4738_v21 = vadd.f32 %v1505_v19, %v1417_v14  ;;  %v3683_v14 = vor.u32 %v3826_v5, %v3680_v38  ;;  %v3837_v36 = vpop.eup %3836 }
 0x194   :  { %v4740_v55 = vpack.c.bf16 %v622_v39, %v620_v31  ;;  %1909 = vmatpush.bf16.msra.mxu0 %v3459_v40 }
 0x195   :  { %1458 = vmatmul.bf16.gmra.mxu2 %v4736_v32  ;;  %v1562_v22 = vpop.f32.mrf.mxu0  ;;  %1998 = vmatpush.bf16.msra.mxu1 %v3683_v14 }
 0x196   :  { %1547 = vmatmul.bf16.gmra.mxu3 %v4740_v55  ;;  %v1563_v34 = vadd.f32 %v1562_v22, %v4734_v8  ;;  %v1651_v41 = vpop.f32.mrf.mxu1 }
 0x198   :  { %v1652_v46 = vadd.f32 %v1651_v41, %v1563_v34  ;;  %v1419_v52 = vpop.f32.mrf.mxu2  ;;  %1601 = vmatmul.bf16.gmra.mxu0 %v4606_v45 }
 0x199   :  { %v1420_v57 = vadd.f32 %v1419_v52, %v4612_v51  ;;  %v1508_v62 = vpop.f32.mrf.mxu3  ;;  %1690 = vmatmul.bf16.gmra.mxu1 %v4608_v48 }
 0x19a   :  { %3838 = vtanh.f32 %v1652_v46 }
 0x19b   :  { %v4749_v18 = vadd.f32 %v1508_v62, %v1420_v57  ;;  %3840 = vtanh.f32 %v4627_v28 }
 0x19d   :  { %v1564_v53 = vpop.f32.mrf.mxu0 }
 0x19e   :  { %v1565_v19 = vadd.f32 %v1564_v53, %v4734_v8  ;;  %v1653_v27 = vpop.f32.mrf.mxu1 }
 0x1a0   :  { %v3839_v31 = vpop.eup %3838  ;;  %v1654_v39 = vadd.f32 %v1653_v27, %v1565_v19  ;;  %v1421_v60 = vpop.f32.mrf.mxu2 }
 0x1a1   :  { %v2845_v33 = vpack.c.bf16 %v3839_v31, %v3837_v36  ;;  %v1422_v44 = vadd.f32 %v1421_v60, %v4612_v51  ;;  %v1510_v58 = vpop.f32.mrf.mxu3  ;;  %v3841_v41 = vpop.eup %3840 }
 0x1a2   :  { %3842 = vtanh.f32 %v1654_v39 }
 0x1a3   :  { %2973 = vst [vmem:[#allocation5] sm:$0xff] %v2845_v33  ;;  %v4754_v22 = vadd.f32 %v1510_v58, %v1422_v44  ;;  %3844 = vtanh.f32 %v4638_v42  ;;  %v3434_v58 = vld [vmem:[#allocation2 + $0x160] sm:$0xf] }
 0x1a5   :  { %v1567_v43 = vpop.f32.mrf.mxu0  ;;  %1739 = vmatmul.bf16.vlgmr.msrb.gmra.mxu2 %v4483_v47 }
 0x1a6   :  { %v1568_v40 = vadd.f32 %v1567_v43, %v4734_v8  ;;  %v1656_v34 = vpop.f32.mrf.mxu1  ;;  %1828 = vmatmul.bf16.vlgmr.msrb.gmra.mxu3 %v4485_v49  ;;  %v3767_v43 = vld [vmem:[#allocation2 + $0x178] sm:$0xf0] }
 0x1a8   :  { %v3843_v46 = vpop.eup %3842  ;;  %v1657_v52 = vadd.f32 %v1656_v34, %v1568_v40  ;;  %v1424_v28 = vpop.f32.mrf.mxu2  ;;  %1606 = vmatmul.bf16.gmra.mxu0 %v4625_v24  ;;  %v3435_v40 = vor.u32 %v3767_v43, %v3434_v58  ;;  %v3658_v34 = vld [vmem:[#allocation2 + $0x320] sm:$0xf] }
 0x1a9   :  { %v2849_v57 = vpack.c.bf16 %v3843_v46, %v3841_v41  ;;  %v1425_v62 = vadd.f32 %v1424_v28, %v4612_v51  ;;  %v1513_v5 = vpop.f32.mrf.mxu3  ;;  %1695 = vmatmul.bf16.gmra.mxu1 %v4629_v29  ;;  %v3845_v27 = vpop.eup %3844  ;;  %v3823_v41 = vld [vmem:[#allocation2 + $0x338] sm:$0xf0] }
 0x1aa   :  { %3846 = vtanh.f32 %v1657_v52  ;;  %v3763_v46 = vld [vmem:[#allocation2 + $0x15c] sm:$0xf]  ;;  %v3659_v28 = vor.u32 %v3823_v41, %v3658_v34  ;;  %2088 = vmatpush.bf16.msra.mxu2 %v3435_v40 }
 0x1ab   :  { %2977 = vst [vmem:[#allocation5 + $0x1c] sm:$0xff] %v2849_v57  ;;  %v4763_v38 = vadd.f32 %v1513_v5, %v1425_v62  ;;  %3848 = vtanh.f32 %v4645_v6  ;;  %v3428_v57 = vld [vmem:[#allocation2 + $0x174] sm:$0xf0] }
 0x1ac   :  { %v3431_v5 = vor.u32 %v3763_v46, %v3428_v57  ;;  %2177 = vmatpush.bf16.msra.mxu3 %v3659_v28 }
 0x1ad   :  { %v1569_v14 = vpop.f32.mrf.mxu0 }
 0x1ae   :  { %v1570_v53 = vadd.f32 %v1569_v14, %v4734_v8  ;;  %v1658_v19 = vpop.f32.mrf.mxu1  ;;  %1910 = vmatpush.bf16.msra.mxu0 %v3431_v5 }
 0x1b0   :  { %v3847_v36 = vpop.eup %3846  ;;  %v1659_v31 = vadd.f32 %v1658_v19, %v1570_v53  ;;  %v1426_v39 = vpop.f32.mrf.mxu2 }
 0x1b1   :  { %v2853_v42 = vpack.c.bf16 %v3847_v36, %v3845_v27  ;;  %v1427_v60 = vadd.f32 %v1426_v39, %v4612_v51  ;;  %v1515_v33 = vpop.f32.mrf.mxu3  ;;  %v3849_v14 = vpop.eup %3848 }
 0x1b2   :  { %3850 = vtanh.f32 %v1659_v31 }
 0x1b3   :  { %2981 = vst [vmem:[#allocation5 + $0x38] sm:$0xff] %v2853_v42  ;;  %v4768_v44 = vadd.f32 %v1515_v33, %v1427_v60  ;;  %3852 = vtanh.f32 %v4656_v17  ;;  %v3819_v60 = vld [vmem:[#allocation2 + $0x31c] sm:$0xf]  ;;  %v3652_v33 = vld [vmem:[#allocation2 + $0x334] sm:$0xf0] }
 0x1b4   :  { %v3655_v58 = vor.u32 %v3819_v60, %v3652_v33 }
 0x1b5   :  { %v1572_v52 = vpop.f32.mrf.mxu0  ;;  %1744 = vmatmul.bf16.gmra.mxu2 %v4498_v11 }
 0x1b6   :  { %v1573_v6 = vadd.f32 %v1572_v52, %v4734_v8  ;;  %v1661_v62 = vpop.f32.mrf.mxu1  ;;  %1833 = vmatmul.bf16.gmra.mxu3 %v4500_v13  ;;  %1999 = vmatpush.bf16.msra.mxu1 %v3655_v58 }
 0x1b8   :  { %v3851_v53 = vpop.eup %3850  ;;  %v1662_v19 = vadd.f32 %v1661_v62, %v1573_v6  ;;  %v1429_v27 = vpop.f32.mrf.mxu2  ;;  %1611 = vmatmul.bf16.gmra.mxu0 %v4643_v4 }
 0x1b9   :  { %v2857_v36 = vpack.c.bf16 %v3851_v53, %v3849_v14  ;;  %v1430_v31 = vadd.f32 %v1429_v27, %v4612_v51  ;;  %v1518_v39 = vpop.f32.mrf.mxu3  ;;  %1700 = vmatmul.bf16.gmra.mxu1 %v4647_v7  ;;  %v3853_v17 = vpop.eup %3852 }
 0x1ba   :  { %3854 = vtanh.f32 %v1662_v19 }
 0x1bb   :  { %2985 = vst [vmem:[#allocation5 + $0x54] sm:$0xff] %v2857_v36  ;;  %v4777_v42 = vadd.f32 %v1518_v39, %v1430_v31  ;;  %3856 = vtanh.f32 %v4663_v63 }
 0x1bd   :  { %v1574_v43 = vpop.f32.mrf.mxu0 }
 0x1be   :  { %v1575_v40 = vadd.f32 %v1574_v43, %v4734_v8  ;;  %v1663_v34 = vpop.f32.mrf.mxu1 }
 0x1c0   :  { %v3855_v41 = vpop.eup %3854  ;;  %v1664_v46 = vadd.f32 %v1663_v34, %v1575_v40  ;;  %v1431_v52 = vpop.f32.mrf.mxu2 }
 0x1c1   :  { %v2861_v28 = vpack.c.bf16 %v3855_v41, %v3853_v17  ;;  %v1432_v57 = vadd.f32 %v1431_v52, %v4612_v51  ;;  %v1520_v6 = vpop.f32.mrf.mxu3  ;;  %v3857_v19 = vpop.eup %3856 }
 0x1c2   :  { %3858 = vtanh.f32 %v1664_v46 }
 0x1c3   :  { %2989 = vst [vmem:[#allocation5 + $0x70] sm:$0xff] %v2861_v28  ;;  %v4782_v62 = vadd.f32 %v1520_v6, %v1432_v57  ;;  %3860 = vtanh.f32 %v4674_v15  ;;  %v3406_v6 = vld [vmem:[#allocation2 + $0x128] sm:$0xf] }
 0x1c5   :  { %v1577_v5 = vpop.f32.mrf.mxu0  ;;  %1749 = vmatmul.bf16.gmra.mxu2 %v4513_v35 }
 0x1c6   :  { %v1578_v14 = vadd.f32 %v1577_v5, %v4734_v8  ;;  %v1666_v53 = vpop.f32.mrf.mxu1  ;;  %1838 = vmatmul.bf16.gmra.mxu3 %v4515_v37  ;;  %v3760_v5 = vld [vmem:[#allocation2 + $0x140] sm:$0xf0] }
 0x1c8   :  { %v3859_v27 = vpop.eup %3858  ;;  %v1667_v36 = vadd.f32 %v1666_v53, %v1578_v14  ;;  %v1434_v63 = vpop.f32.mrf.mxu2  ;;  %1616 = vmatmul.bf16.gmra.mxu0 %v4661_v61  ;;  %v3407_v14 = vor.u32 %v3760_v5, %v3406_v6  ;;  %v3630_v53 = vld [vmem:[#allocation2 + $0x2e8] sm:$0xf] }
 0x1c9   :  { %v2865_v31 = vpack.c.bf16 %v3859_v27, %v3857_v19  ;;  %v1435_v39 = vadd.f32 %v1434_v63, %v4612_v51  ;;  %v1523_v60 = vpop.f32.mrf.mxu3  ;;  %1705 = vmatmul.bf16.gmra.mxu1 %v4665_v0  ;;  %v3861_v34 = vpop.eup %3860  ;;  %v3816_v19 = vld [vmem:[#allocation2 + $0x300] sm:$0xf0] }
 0x1ca   :  { %3862 = vtanh.f32 %v1667_v36  ;;  %v3756_v27 = vld [vmem:[#allocation2 + $0x124] sm:$0xf]  ;;  %v3631_v63 = vor.u32 %v3816_v19, %v3630_v53  ;;  %2089 = vmatpush.bf16.msra.mxu2 %v3407_v14 }
 0x1cb   :  { %2993 = vst [vmem:[#allocation5 + $0x8c] sm:$0xff] %v2865_v31  ;;  %v4791_v33 = vadd.f32 %v1523_v60, %v1435_v39  ;;  %3864 = vtanh.f32 %v4681_v54  ;;  %v3400_v31 = vld [vmem:[#allocation2 + $0x13c] sm:$0xf0] }
 0x1cc   :  { %v3403_v60 = vor.u32 %v3756_v27, %v3400_v31  ;;  %2178 = vmatpush.bf16.msra.mxu3 %v3631_v63 }
 0x1cd   :  { %v1579_v58 = vpop.f32.mrf.mxu0 }
 0x1ce   :  { %v1580_v43 = vadd.f32 %v1579_v58, %v4734_v8  ;;  %v1668_v40 = vpop.f32.mrf.mxu1  ;;  %1911 = vmatpush.bf16.msra.mxu0 %v3403_v60  ;;  %v3749_v60 = vld [vmem:[#allocation2 + $0xec] sm:$0xf] }
 0x1d0   :  { %v3863_v17 = vpop.eup %3862  ;;  %v1669_v41 = vadd.f32 %v1668_v40, %v1580_v43  ;;  %v1436_v46 = vpop.f32.mrf.mxu2 }
 0x1d1   :  { %v2869_v15 = vpack.c.bf16 %v3863_v17, %v3861_v34  ;;  %v1437_v52 = vadd.f32 %v1436_v46, %v4612_v51  ;;  %v1525_v28 = vpop.f32.mrf.mxu3  ;;  %v3865_v58 = vpop.eup %3864 }
 0x1d2   :  { %3866 = vtanh.f32 %v1669_v41 }
 0x1d3   :  { %2997 = vst [vmem:[#allocation5 + $0xa8] sm:$0xff] %v2869_v15  ;;  %v4796_v57 = vadd.f32 %v1525_v28, %v1437_v52  ;;  %3868 = vtanh.f32 %v4692_v9  ;;  %v3812_v52 = vld [vmem:[#allocation2 + $0x2e4] sm:$0xf]  ;;  %v3624_v28 = vld [vmem:[#allocation2 + $0x2fc] sm:$0xf0] }
 0x1d4   :  { %v3627_v6 = vor.u32 %v3812_v52, %v3624_v28  ;;  %v3742_v28 = vld [vmem:[#allocation2 + $0xb4] sm:$0xf] }
 0x1d5   :  { %v1582_v36 = vpop.f32.mrf.mxu0  ;;  %1754 = vmatmul.bf16.gmra.mxu2 %v4528_v1 }
 0x1d6   :  { %v1583_v54 = vadd.f32 %v1582_v36, %v4734_v8  ;;  %v1671_v39 = vpop.f32.mrf.mxu1  ;;  %1843 = vmatmul.bf16.gmra.mxu3 %v4530_v3  ;;  %2000 = vmatpush.bf16.msra.mxu1 %v3627_v6  ;;  %v3344_v6 = vld [vmem:[#allocation2 + $0xcc] sm:$0xf0] }
 0x1d8   :  { %v3867_v43 = vpop.eup %3866  ;;  %v1672_v40 = vadd.f32 %v1671_v39, %v1583_v54  ;;  %v1439_v34 = vpop.f32.mrf.mxu2  ;;  %1621 = vmatmul.bf16.gmra.mxu0 %v4679_v50 }
 0x1d9   :  { %v2873_v17 = vpack.c.bf16 %v3867_v43, %v3865_v58  ;;  %v1440_v41 = vadd.f32 %v1439_v34, %v4612_v51  ;;  %v1528_v46 = vpop.f32.mrf.mxu3  ;;  %1710 = vmatmul.bf16.gmra.mxu1 %v4683_v56  ;;  %v3869_v9 = vpop.eup %3868  ;;  %v3372_v58 = vld [vmem:[#allocation2 + $0x104] sm:$0xf0] }
 0x1da   :  { %3870 = vtanh.f32 %v1672_v40  ;;  %v3375_v43 = vor.u32 %v3749_v60, %v3372_v58  ;;  %v3805_v40 = vld [vmem:[#allocation2 + $0x2ac] sm:$0xf]  ;;  %v3596_v34 = vld [vmem:[#allocation2 + $0x2c4] sm:$0xf0]  ;;  %v3735_v58 = vld [vmem:[#allocation2 + $0x7c] sm:$0xf] }
 0x1db   :  { %3001 = vst [vmem:[#allocation5 + $0xc4] sm:$0xff] %v2873_v17  ;;  %v4805_v15 = vadd.f32 %v1528_v46, %v1440_v41  ;;  %3872 = vtanh.f32 %v4699_v2  ;;  %v3599_v41 = vor.u32 %v3805_v40, %v3596_v34  ;;  %v3791_v34 = vld [vmem:[#allocation2 + $0x23c] sm:$0xf] }
 0x1dc   :  { %1912 = vmatpush.bf16.msra.mxu0 %v3375_v43  ;;  %v3316_v43 = vld [vmem:[#allocation2 + $0x94] sm:$0xf0] }
 0x1dd   :  { %v1584_v5 = vpop.f32.mrf.mxu0  ;;  %2001 = vmatpush.bf16.msra.mxu1 %v3599_v41  ;;  %v3319_v40 = vor.u32 %v3735_v58, %v3316_v43  ;;  %v3378_v43 = vld [vmem:[#allocation2 + $0xf0] sm:$0xf] }
 0x1de   :  { %v1585_v14 = vadd.f32 %v1584_v5, %v4734_v8  ;;  %v1673_v53 = vpop.f32.mrf.mxu1  ;;  %v3798_v5 = vld [vmem:[#allocation2 + $0x274] sm:$0xf] }
 0x1e0   :  { %v3871_v19 = vpop.eup %3870  ;;  %v1674_v27 = vadd.f32 %v1673_v53, %v1585_v14  ;;  %v1441_v36 = vpop.f32.mrf.mxu2 }
 0x1e1   :  { %v2877_v63 = vpack.c.bf16 %v3871_v19, %v3869_v9  ;;  %v1442_v31 = vadd.f32 %v1441_v36, %v4612_v51  ;;  %v1530_v54 = vpop.f32.mrf.mxu3  ;;  %v3873_v52 = vpop.eup %3872  ;;  %v3347_v19 = vor.u32 %v3742_v28, %v3344_v6  ;;  %v3728_v28 = vld [vmem:[#allocation2 + $0x44] sm:$0xf]  ;;  %v3288_v6 = vld [vmem:[#allocation2 + $0x5c] sm:$0xf0] }
 0x1e2   :  { %3874 = vtanh.f32 %v1674_v27  ;;  %v3568_v27 = vld [vmem:[#allocation2 + $0x28c] sm:$0xf0] }
 0x1e3   :  { %3005 = vst [vmem:[#allocation5 + $0xe0] sm:$0xff] %v2877_v63  ;;  %v4810_v39 = vadd.f32 %v1530_v54, %v1442_v31  ;;  %3876 = vtanh.f32 %v4710_v23  ;;  %v3571_v54 = vor.u32 %v3798_v5, %v3568_v27  ;;  %1913 = vmatpush.bf16.msra.mxu0 %v3347_v19  ;;  %v3784_v5 = vld [vmem:[#allocation2 + $0x204] sm:$0xf]  ;;  %v3291_v19 = vor.u32 %v3728_v28, %v3288_v6  ;;  %v3512_v27 = vld [vmem:[#allocation2 + $0x21c] sm:$0xf0] }
 0x1e4   :  { %v3484_v28 = vld [vmem:[#allocation2 + $0x1e4] sm:$0xf0] }
 0x1e5   :  { %v1587_v17 = vpop.f32.mrf.mxu0  ;;  %1759 = vmatmul.bf16.gmra.mxu2 %v4543_v25  ;;  %2002 = vmatpush.bf16.msra.mxu1 %v3571_v54  ;;  %v3515_v54 = vor.u32 %v3784_v5, %v3512_v27 }
 0x1e6   :  { %v1588_v46 = vadd.f32 %v1587_v17, %v4734_v8  ;;  %v1676_v2 = vpop.f32.mrf.mxu1  ;;  %1848 = vmatmul.bf16.gmra.mxu3 %v4545_v30  ;;  %v3540_v17 = vld [vmem:[#allocation2 + $0x254] sm:$0xf0] }
 0x1e7   :  { %v3543_v23 = vor.u32 %v3791_v34, %v3540_v17  ;;  %1914 = vmatpush.bf16.msra.mxu0 %v3319_v40  ;;  %v3753_v40 = vld [vmem:[#allocation2 + $0x108] sm:$0xf0]  ;;  %v3602_v17 = vld [vmem:[#allocation2 + $0x2b0] sm:$0xf] }
 0x1e8   :  { %v3875_v14 = vpop.eup %3874  ;;  %v1677_v53 = vadd.f32 %v1676_v2, %v1588_v46  ;;  %v1444_v9 = vpop.f32.mrf.mxu2  ;;  %1626 = vmatmul.bf16.gmra.mxu0 %v4697_v59  ;;  %v3379_v34 = vor.u32 %v3753_v40, %v3378_v43  ;;  %v5458_v40 = vld [vmem:[#allocation16_spill] sm:$0xff] }
 0x1e9   :  { %v2881_v36 = vpack.c.bf16 %v3875_v14, %v3873_v52  ;;  %v1445_v63 = vadd.f32 %v1444_v9, %v4612_v51  ;;  %v1533_v31 = vpop.f32.mrf.mxu3  ;;  %1715 = vmatmul.bf16.gmra.mxu1 %v4701_v10  ;;  %v3877_v52 = vpop.eup %3876 }
 0x1ea   :  { %3878 = vtanh.f32 %v1677_v53  ;;  %2003 = vmatpush.bf16.msra.mxu1 %v3543_v23  ;;  %v3721_v23 = vld [vmem:[#allocation2 + $0xc] sm:$0xf]  ;;  %2090 = vmatpush.bf16.msra.mxu2 %v3379_v34 }
 0x1eb   :  { %3009 = vst [vmem:[#allocation5 + $0xfc] sm:$0xff] %v2881_v36  ;;  %v4819_v60 = vadd.f32 %v1533_v31, %v1445_v63  ;;  %3880 = vtanh.f32 %v4717_v16  ;;  %1915 = vmatpush.bf16.msra.mxu0 %v3291_v19 }
 0x1ed   :  { %v1589_v41 = vpop.f32.mrf.mxu0 }
 0x1ee   :  { %v1590_v46 = vadd.f32 %v1589_v41, %v4734_v8  ;;  %v1678_v2 = vpop.f32.mrf.mxu1  ;;  %2004 = vmatpush.bf16.msra.mxu1 %v3515_v54  ;;  %v3809_v41 = vld [vmem:[#allocation2 + $0x2c8] sm:$0xf0] }
 0x1ef   :  { %v3603_v16 = vor.u32 %v3809_v41, %v3602_v17 }
 0x1f0   :  { %v3879_v14 = vpop.eup %3878  ;;  %v1679_v53 = vadd.f32 %v1678_v2, %v1590_v46  ;;  %v1446_v9 = vpop.f32.mrf.mxu2  ;;  %v3260_v2 = vld [vmem:[#allocation2 + $0x24] sm:$0xf0] }
 0x1f1   :  { %v2885_v36 = vpack.c.bf16 %v3879_v14, %v3877_v52  ;;  %v1447_v63 = vadd.f32 %v1446_v9, %v4612_v51  ;;  %v1535_v31 = vpop.f32.mrf.mxu3  ;;  %v3777_v52 = vld [vmem:[#allocation2 + $0x1cc] sm:$0xf]  ;;  %v3263_v14 = vor.u32 %v3721_v23, %v3260_v2  ;;  %v3881_v9 = vpop.eup %3880  ;;  %2179 = vmatpush.bf16.msra.mxu3 %v3603_v16 }
 0x1f2   :  { %3882 = vtanh.f32 %v1679_v53  ;;  %v3487_v53 = vor.u32 %v3777_v52, %v3484_v28 }
 0x1f3   :  { %3013 = vst [vmem:[#allocation5 + $0x118] sm:$0xff] %v2885_v36  ;;  %v4824_v58 = vadd.f32 %v1535_v31, %v1447_v63  ;;  %v5457_v63 = vld [vmem:[#allocation17_spill] sm:$0xff]  ;;  %1916 = vmatpush.bf16.msra.mxu0 %v3263_v14 }
 0x1f4   :  { %2005 = vmatpush.bf16.msra.mxu1 %v3487_v53  ;;  %3884 = vtanh.f32 %v5457_v63 }
 0x1f5   :  { %v1592_v46 = vpop.f32.mrf.mxu0  ;;  %1764 = vmatmul.bf16.gmra.mxu2 %v4559_v20 }
 0x1f6   :  { %v1593_v6 = vadd.f32 %v1592_v46, %v4734_v8  ;;  %v1681_v5 = vpop.f32.mrf.mxu1  ;;  %1853 = vmatmul.bf16.gmra.mxu3 %v4561_v26 }
 0x1f8   :  { %v3883_v19 = vpop.eup %3882  ;;  %v1682_v27 = vadd.f32 %v1681_v5, %v1593_v6  ;;  %v1449_v36 = vpop.f32.mrf.mxu2  ;;  %1631 = vmatmul.bf16.gmra.mxu0 %v4715_v12 }
 0x1f9   :  { %v2889_v31 = vpack.c.bf16 %v3883_v19, %v3881_v9  ;;  %v1450_v54 = vadd.f32 %v1449_v36, %v4612_v51  ;;  %v1538_v43 = vpop.f32.mrf.mxu3  ;;  %1720 = vmatmul.bf16.gmra.mxu1 %v5458_v40  ;;  %v5459_v9 = vld [vmem:[#allocation9_spill] sm:$0xff]  ;;  %v5460_v36 = vld [vmem:[#allocation10_spill] sm:$0xff] }
 0x1fa   :  { %3886 = vtanh.f32 %v1682_v27  ;;  %v3885_v46 = vpop.eup %3884 }
 0x1fb   :  { %3017 = vst [vmem:[#allocation5 + $0x134] sm:$0xff] %v2889_v31  ;;  %v4833_v34 = vadd.f32 %v1538_v43, %v1450_v54  ;;  %3888 = vtanh.f32 %v4738_v21 }
 0x1fd   :  { %v1594_v17 = vpop.f32.mrf.mxu0 }
 0x1fe   :  { %v1595_v41 = vadd.f32 %v1594_v17, %v4734_v8  ;;  %v1683_v23 = vpop.f32.mrf.mxu1 }
 0x200   :  { %v3887_v16 = vpop.eup %3886  ;;  %v1684_v2 = vadd.f32 %v1683_v23, %v1595_v41  ;;  %v1451_v52 = vpop.f32.mrf.mxu2 }
 0x201   :  { %v2893_v28 = vpack.c.bf16 %v3887_v16, %v3885_v46  ;;  %v1452_v6 = vadd.f32 %v1451_v52, %v4612_v51  ;;  %v1540_v5 = vpop.f32.mrf.mxu3  ;;  %v3889_v63 = vpop.eup %3888 }
 0x202   :  { %3890 = vtanh.f32 %v1684_v2 }
 0x203   :  { %3021 = vst [vmem:[#allocation5 + $0x150] sm:$0xff] %v2893_v28  ;;  %v4838_v14 = vadd.f32 %v1540_v5, %v1452_v6  ;;  %3892 = vtanh.f32 %v4749_v18 }
 0x205   :  { %v1597_v53 = vpop.f32.mrf.mxu0  ;;  %1769 = vmatmul.bf16.gmra.mxu2 %v5459_v9 }
 0x206   :  { %v1598_v19 = vadd.f32 %v1597_v53, %v4734_v8  ;;  %v1686_v27 = vpop.f32.mrf.mxu1  ;;  %1858 = vmatmul.bf16.gmra.mxu3 %v5460_v36 }
 0x208   :  { %v3891_v31 = vpop.eup %3890  ;;  %v1687_v54 = vadd.f32 %v1686_v27, %v1598_v19  ;;  %v1454_v21 = vpop.f32.mrf.mxu2  ;;  %1636 = vmatmul.bf16.gmra.mxu0 %v4736_v32 }
 0x209   :  { %v2897_v43 = vpack.c.bf16 %v3891_v31, %v3889_v63  ;;  %v1455_v17 = vadd.f32 %v1454_v21, %v4612_v51  ;;  %v1543_v41 = vpop.f32.mrf.mxu3  ;;  %1725 = vmatmul.bf16.gmra.mxu1 %v4740_v55  ;;  %v3893_v52 = vpop.eup %3892  ;;  %v3350_v63 = vld [vmem:[#allocation2 + $0xb8] sm:$0xf]  ;;  %v3746_v31 = vld [vmem:[#allocation2 + $0xd0] sm:$0xf0] }
 0x20a   :  { %3894 = vtanh.f32 %v1687_v54  ;;  %v3351_v54 = vor.u32 %v3746_v31, %v3350_v63  ;;  %v3574_v21 = vld [vmem:[#allocation2 + $0x278] sm:$0xf] }
 0x20b   :  { %3025 = vst [vmem:[#allocation5 + $0x16c] sm:$0xff] %v2897_v43  ;;  %v4847_v23 = vadd.f32 %v1543_v41, %v1455_v17  ;;  %3896 = vtanh.f32 %v4754_v22  ;;  %v3802_v43 = vld [vmem:[#allocation2 + $0x290] sm:$0xf0]  ;;  %v5461_v41 = vld [vmem:[#allocation11_spill] sm:$0xff] }
 0x20c   :  { %2091 = vmatpush.bf16.msra.mxu2 %v3351_v54 }
 0x20d   :  { %v1599_v46 = vpop.f32.mrf.mxu0 }
 0x20e   :  { %v1600_v16 = vadd.f32 %v1599_v46, %v4734_v8  ;;  %v1688_v2 = vpop.f32.mrf.mxu1  ;;  %v3575_v46 = vor.u32 %v3802_v43, %v3574_v21 }
 0x210   :  { %v3895_v28 = vpop.eup %3894  ;;  %v1689_v6 = vadd.f32 %v1688_v2, %v1600_v16  ;;  %v1456_v5 = vpop.f32.mrf.mxu2  ;;  %v5462_v2 = vld [vmem:[#allocation12_spill] sm:$0xff]  ;;  %2180 = vmatpush.bf16.msra.mxu3 %v3575_v46 }
 0x211   :  { %v2901_v18 = vpack.c.bf16 %v3895_v28, %v3893_v52  ;;  %v1457_v53 = vadd.f32 %v1456_v5, %v4612_v51  ;;  %v1545_v19 = vpop.f32.mrf.mxu3  ;;  %v3897_v52 = vpop.eup %3896 }
 0x212   :  { %3898 = vtanh.f32 %v1689_v6 }
 0x213   :  { %3029 = vst [vmem:[#allocation5 + $0x188] sm:$0xff] %v2901_v18  ;;  %v4852_v27 = vadd.f32 %v1545_v19, %v1457_v53  ;;  %3900 = vtanh.f32 %v4763_v38 }
 0x215   :  { %v1602_v17 = vpop.f32.mrf.mxu0  ;;  %1774 = vmatmul.bf16.gmra.mxu2 %v5461_v41 }
 0x216   :  { %v1603_v16 = vadd.f32 %v1602_v17, %v4734_v8  ;;  %v1691_v22 = vpop.f32.mrf.mxu1  ;;  %1863 = vmatmul.bf16.gmra.mxu3 %v5462_v2 }
 0x218   :  { %v3899_v28 = vpop.eup %3898  ;;  %v1692_v6 = vadd.f32 %v1691_v22, %v1603_v16  ;;  %v1459_v5 = vpop.f32.mrf.mxu2  ;;  %1917 = vmatmul.bf16.vlgmr.msra.gmra.mxu0 %v4483_v47 }
 0x219   :  { %v2905_v18 = vpack.c.bf16 %v3899_v28, %v3897_v52  ;;  %v1460_v53 = vadd.f32 %v1459_v5, %v4612_v51  ;;  %v1548_v19 = vpop.f32.mrf.mxu3  ;;  %2006 = vmatmul.bf16.vlgmr.msra.gmra.mxu1 %v4485_v49  ;;  %v3901_v43 = vpop.eup %3900  ;;  %v4872_v5 = vld [vmem:[%s5427_s4] sm:$0xff] }
 0x21a   :  { %3902 = vtanh.f32 %v1692_v6 }
 0x21b   :  { %3033 = vst [vmem:[#allocation5 + $0x1a4] sm:$0xff] %v2905_v18  ;;  %v4861_v63 = vadd.f32 %v1548_v19, %v1460_v53  ;;  %3904 = vtanh.f32 %v4768_v44  ;;  %v4875_v18 = vperm.slane %v4872_v5, 2 }
 0x21d   :  { %v1604_v31 = vpop.f32.mrf.mxu0 }
 0x21e   :  { %v1605_v54 = vadd.f32 %v1604_v31, %v4734_v8  ;;  %v1693_v21 = vpop.f32.mrf.mxu1 }
 0x220   :  { %v3903_v17 = vpop.eup %3902  ;;  %v1694_v46 = vadd.f32 %v1693_v21, %v1605_v54  ;;  %v1461_v16 = vpop.f32.mrf.mxu2 }
 0x221   :  { %v2909_v38 = vpack.c.bf16 %v3903_v17, %v3901_v43  ;;  %v1462_v22 = vadd.f32 %v1461_v16, %v4612_v51  ;;  %v1550_v52 = vpop.f32.mrf.mxu3  ;;  %v3905_v51 = vpop.eup %3904 }
 0x222   :  { %3906 = vtanh.f32 %v1694_v46 }
 0x223   :  { %3037 = vst [vmem:[#allocation5 + $0x1c0] sm:$0xff] %v2909_v38  ;;  %v4866_v28 = vadd.f32 %v1550_v52, %v1462_v22  ;;  %3908 = vtanh.f32 %v4777_v42 }
 0x225   :  { %v1607_v6 = vpop.f32.mrf.mxu0  ;;  %1779 = vmatmul.bf16.gmra.mxu2 %v4606_v45 }
 0x226   :  { %v1608_v44 = vadd.f32 %v1607_v6, %v4734_v8  ;;  %v1696_v53 = vpop.f32.mrf.mxu1  ;;  %1868 = vmatmul.bf16.gmra.mxu3 %v4608_v48 }
 0x228   :  { %v3907_v19 = vpop.eup %3906  ;;  %v1697_v31 = vadd.f32 %v1696_v53, %v1608_v44  ;;  %v1740_v54 = vpop.f32.mrf.mxu2  ;;  %1922 = vmatmul.bf16.gmra.mxu0 %v4498_v11 }
 0x229   :  { %v2913_v21 = vpack.c.bf16 %v3907_v19, %v3905_v51  ;;  %v1741_v43 = vadd.f32 %v1740_v54, %v4875_v18  ;;  %v1829_v17 = vpop.f32.mrf.mxu3  ;;  %2011 = vmatmul.bf16.gmra.mxu1 %v4500_v13  ;;  %v3909_v52 = vpop.eup %3908  ;;  %v3322_v54 = vld [vmem:[#allocation2 + $0x80] sm:$0xf] }
 0x22a   :  { %3910 = vtanh.f32 %v1697_v31 }
 0x22b   :  { %3041 = vst [vmem:[#allocation5 + $0x1dc] sm:$0xff] %v2913_v21  ;;  %v4883_v46 = vadd.f32 %v1829_v17, %v1741_v43  ;;  %3912 = vtanh.f32 %v4782_v62  ;;  %v3739_v21 = vld [vmem:[#allocation2 + $0x98] sm:$0xf0]  ;;  %v3546_v17 = vld [vmem:[#allocation2 + $0x240] sm:$0xf] }
 0x22c   :  { %v3323_v43 = vor.u32 %v3739_v21, %v3322_v54 }
 0x22d   :  { %v1609_v16 = vpop.f32.mrf.mxu0 }
 0x22e   :  { %v1610_v38 = vadd.f32 %v1609_v16, %v4734_v8  ;;  %v1698_v22 = vpop.f32.mrf.mxu1  ;;  %v3795_v16 = vld [vmem:[#allocation2 + $0x258] sm:$0xf0]  ;;  %2092 = vmatpush.bf16.msra.mxu2 %v3323_v43 }
 0x230   :  { %v3911_v6 = vpop.eup %3910  ;;  %v1699_v44 = vadd.f32 %v1698_v22, %v1610_v38  ;;  %v1742_v53 = vpop.f32.mrf.mxu2  ;;  %v3547_v38 = vor.u32 %v3795_v16, %v3546_v17 }
 0x231   :  { %v2917_v42 = vpack.c.bf16 %v3911_v6, %v3909_v52  ;;  %v1743_v51 = vadd.f32 %v1742_v53, %v4875_v18  ;;  %v1831_v19 = vpop.f32.mrf.mxu3  ;;  %v3913_v52 = vpop.eup %3912 }
 0x232   :  { %3914 = vtanh.f32 %v1699_v44  ;;  %2181 = vmatpush.bf16.msra.mxu3 %v3547_v38 }
 0x233   :  { %3045 = vst [vmem:[#allocation5 + $0x1f8] sm:$0xff] %v2917_v42  ;;  %v4888_v31 = vadd.f32 %v1831_v19, %v1743_v51  ;;  %3916 = vtanh.f32 %v4791_v33 }
 0x235   :  { %v1612_v13 = vpop.f32.mrf.mxu0  ;;  %1784 = vmatmul.bf16.gmra.mxu2 %v4625_v24 }
 0x236   :  { %v1613_v22 = vadd.f32 %v1612_v13, %v4734_v8  ;;  %v1701_v62 = vpop.f32.mrf.mxu1  ;;  %1873 = vmatmul.bf16.gmra.mxu3 %v4629_v29 }
 0x238   :  { %v3915_v6 = vpop.eup %3914  ;;  %v1702_v44 = vadd.f32 %v1701_v62, %v1613_v22  ;;  %v1745_v53 = vpop.f32.mrf.mxu2  ;;  %1927 = vmatmul.bf16.gmra.mxu0 %v4513_v35 }
 0x239   :  { %v2921_v42 = vpack.c.bf16 %v3915_v6, %v3913_v52  ;;  %v1746_v51 = vadd.f32 %v1745_v53, %v4875_v18  ;;  %v1834_v19 = vpop.f32.mrf.mxu3  ;;  %2016 = vmatmul.bf16.gmra.mxu1 %v4515_v37  ;;  %v3917_v17 = vpop.eup %3916 }
 0x23a   :  { %3918 = vtanh.f32 %v1702_v44 }
 0x23b   :  { %3049 = vst [vmem:[#allocation5 + $0x214] sm:$0xff] %v2921_v42  ;;  %v4897_v13 = vadd.f32 %v1834_v19, %v1746_v51  ;;  %3920 = vtanh.f32 %v4796_v57 }
 0x23d   :  { %v1614_v54 = vpop.f32.mrf.mxu0 }
 0x23e   :  { %v1615_v21 = vadd.f32 %v1614_v54, %v4734_v8  ;;  %v1703_v43 = vpop.f32.mrf.mxu1 }
 0x240   :  { %v3919_v16 = vpop.eup %3918  ;;  %v1704_v38 = vadd.f32 %v1703_v43, %v1615_v21  ;;  %v1747_v22 = vpop.f32.mrf.mxu2 }
 0x241   :  { %v2925_v33 = vpack.c.bf16 %v3919_v16, %v3917_v17  ;;  %v1748_v62 = vadd.f32 %v1747_v22, %v4875_v18  ;;  %v1836_v52 = vpop.f32.mrf.mxu3  ;;  %v3921_v51 = vpop.eup %3920 }
 0x242   :  { %3922 = vtanh.f32 %v1704_v38 }
 0x243   :  { %3053 = vst [vmem:[#allocation5 + $0x230] sm:$0xff] %v2925_v33  ;;  %v4902_v6 = vadd.f32 %v1836_v52, %v1748_v62  ;;  %3924 = vtanh.f32 %v4805_v15 }
 0x245   :  { %v1617_v44 = vpop.f32.mrf.mxu0  ;;  %1789 = vmatmul.bf16.gmra.mxu2 %v4643_v4 }
 0x246   :  { %v1618_v53 = vadd.f32 %v1617_v44, %v4734_v8  ;;  %v1706_v42 = vpop.f32.mrf.mxu1  ;;  %1878 = vmatmul.bf16.gmra.mxu3 %v4647_v7 }
 0x248   :  { %v3923_v19 = vpop.eup %3922  ;;  %v1707_v54 = vadd.f32 %v1706_v42, %v1618_v53  ;;  %v1750_v57 = vpop.f32.mrf.mxu2  ;;  %1932 = vmatmul.bf16.gmra.mxu0 %v4528_v1 }
 0x249   :  { %v2929_v21 = vpack.c.bf16 %v3923_v19, %v3921_v51  ;;  %v1751_v43 = vadd.f32 %v1750_v57, %v4875_v18  ;;  %v1839_v17 = vpop.f32.mrf.mxu3  ;;  %2021 = vmatmul.bf16.gmra.mxu1 %v4530_v3  ;;  %v3925_v62 = vpop.eup %3924  ;;  %v3732_v57 = vld [vmem:[#allocation2 + $0x60] sm:$0xf0] }
 0x24a   :  { %3926 = vtanh.f32 %v1707_v54  ;;  %v3294_v54 = vld [vmem:[#allocation2 + $0x48] sm:$0xf] }
 0x24b   :  { %3057 = vst [vmem:[#allocation5 + $0x24c] sm:$0xff] %v2929_v21  ;;  %v4911_v16 = vadd.f32 %v1839_v17, %v1751_v43  ;;  %3928 = vtanh.f32 %v4810_v39  ;;  %v3295_v21 = vor.u32 %v3732_v57, %v3294_v54  ;;  %v3518_v43 = vld [vmem:[#allocation2 + $0x208] sm:$0xf]  ;;  %v3788_v17 = vld [vmem:[#allocation2 + $0x220] sm:$0xf0] }
 0x24d   :  { %v1619_v38 = vpop.f32.mrf.mxu0  ;;  %2093 = vmatpush.bf16.msra.mxu2 %v3295_v21 }
 0x24e   :  { %v1620_v22 = vadd.f32 %v1619_v38, %v4734_v8  ;;  %v1708_v33 = vpop.f32.mrf.mxu1 }
 0x250   :  { %v3927_v52 = vpop.eup %3926  ;;  %v1709_v44 = vadd.f32 %v1708_v33, %v1620_v22  ;;  %v1752_v53 = vpop.f32.mrf.mxu2  ;;  %v3519_v22 = vor.u32 %v3788_v17, %v3518_v43 }
 0x251   :  { %v2933_v15 = vpack.c.bf16 %v3927_v52, %v3925_v62  ;;  %v1753_v42 = vadd.f32 %v1752_v53, %v4875_v18  ;;  %v1841_v51 = vpop.f32.mrf.mxu3  ;;  %v3929_v62 = vpop.eup %3928 }
 0x252   :  { %3930 = vtanh.f32 %v1709_v44  ;;  %2182 = vmatpush.bf16.msra.mxu3 %v3519_v22 }
 0x253   :  { %3061 = vst [vmem:[#allocation5 + $0x268] sm:$0xff] %v2933_v15  ;;  %v4916_v19 = vadd.f32 %v1841_v51, %v1753_v42  ;;  %3932 = vtanh.f32 %v4819_v60 }
 0x255   :  { %v1622_v38 = vpop.f32.mrf.mxu0  ;;  %1794 = vmatmul.bf16.gmra.mxu2 %v4661_v61 }
 0x256   :  { %v1623_v33 = vadd.f32 %v1622_v38, %v4734_v8  ;;  %v1711_v39 = vpop.f32.mrf.mxu1  ;;  %1883 = vmatmul.bf16.gmra.mxu3 %v4665_v0 }
 0x258   :  { %v3931_v52 = vpop.eup %3930  ;;  %v1712_v44 = vadd.f32 %v1711_v39, %v1623_v33  ;;  %v1755_v53 = vpop.f32.mrf.mxu2  ;;  %1937 = vmatmul.bf16.gmra.mxu0 %v4543_v25 }
 0x259   :  { %v2937_v15 = vpack.c.bf16 %v3931_v52, %v3929_v62  ;;  %v1756_v42 = vadd.f32 %v1755_v53, %v4875_v18  ;;  %v1844_v51 = vpop.f32.mrf.mxu3  ;;  %2026 = vmatmul.bf16.gmra.mxu1 %v4545_v30  ;;  %v3933_v17 = vpop.eup %3932 }
 0x25a   :  { %3934 = vtanh.f32 %v1712_v44 }
 0x25b   :  { %3065 = vst [vmem:[#allocation5 + $0x284] sm:$0xff] %v2937_v15  ;;  %v4925_v54 = vadd.f32 %v1844_v51, %v1756_v42  ;;  %3936 = vtanh.f32 %v4824_v58 }
 0x25d   :  { %v1624_v57 = vpop.f32.mrf.mxu0 }
 0x25e   :  { %v1625_v21 = vadd.f32 %v1624_v57, %v4734_v8  ;;  %v1713_v43 = vpop.f32.mrf.mxu1 }
 0x260   :  { %v3935_v38 = vpop.eup %3934  ;;  %v1714_v22 = vadd.f32 %v1713_v43, %v1625_v21  ;;  %v1757_v33 = vpop.f32.mrf.mxu2 }
 0x261   :  { %v2941_v60 = vpack.c.bf16 %v3935_v38, %v3933_v17  ;;  %v1758_v39 = vadd.f32 %v1757_v33, %v4875_v18  ;;  %v1846_v62 = vpop.f32.mrf.mxu3  ;;  %v3937_v42 = vpop.eup %3936 }
 0x262   :  { %3938 = vtanh.f32 %v1714_v22 }
 0x263   :  { %3069 = vst [vmem:[#allocation5 + $0x2a0] sm:$0xff] %v2941_v60  ;;  %v4930_v52 = vadd.f32 %v1846_v62, %v1758_v39  ;;  %3940 = vtanh.f32 %v4833_v34 }
 0x265   :  { %v1627_v44 = vpop.f32.mrf.mxu0  ;;  %1799 = vmatmul.bf16.gmra.mxu2 %v4679_v50 }
 0x266   :  { %v1628_v53 = vadd.f32 %v1627_v44, %v4734_v8  ;;  %v1716_v15 = vpop.f32.mrf.mxu1  ;;  %1888 = vmatmul.bf16.gmra.mxu3 %v4683_v56 }
 0x268   :  { %v3939_v51 = vpop.eup %3938  ;;  %v1717_v57 = vadd.f32 %v1716_v15, %v1628_v53  ;;  %v1760_v58 = vpop.f32.mrf.mxu2  ;;  %1942 = vmatmul.bf16.gmra.mxu0 %v4559_v20 }
 0x269   :  { %v2945_v21 = vpack.c.bf16 %v3939_v51, %v3937_v42  ;;  %v1761_v43 = vadd.f32 %v1760_v58, %v4875_v18  ;;  %v1849_v17 = vpop.f32.mrf.mxu3  ;;  %2031 = vmatmul.bf16.gmra.mxu1 %v4561_v26  ;;  %v3941_v39 = vpop.eup %3940  ;;  %v3725_v58 = vld [vmem:[#allocation2 + $0x28] sm:$0xf0] }
 0x26a   :  { %3942 = vtanh.f32 %v1717_v57  ;;  %v3266_v57 = vld [vmem:[#allocation2 + $0x10] sm:$0xf] }
 0x26b   :  { %3073 = vst [vmem:[#allocation5 + $0x2bc] sm:$0xff] %v2945_v21  ;;  %v4939_v38 = vadd.f32 %v1849_v17, %v1761_v43  ;;  %3944 = vtanh.f32 %v4838_v14  ;;  %v3267_v21 = vor.u32 %v3725_v58, %v3266_v57  ;;  %v3490_v43 = vld [vmem:[#allocation2 + $0x1d0] sm:$0xf]  ;;  %v3781_v17 = vld [vmem:[#allocation2 + $0x1e8] sm:$0xf0] }
 0x26d   :  { %v1629_v22 = vpop.f32.mrf.mxu0  ;;  %2094 = vmatpush.bf16.msra.mxu2 %v3267_v21 }
 0x26e   :  { %v1630_v33 = vadd.f32 %v1629_v22, %v4734_v8  ;;  %v1718_v60 = vpop.f32.mrf.mxu1 }
 0x270   :  { %v3943_v62 = vpop.eup %3942  ;;  %v1719_v44 = vadd.f32 %v1718_v60, %v1630_v33  ;;  %v1762_v53 = vpop.f32.mrf.mxu2  ;;  %v3491_v33 = vor.u32 %v3781_v17, %v3490_v43 }
 0x271   :  { %v2949_v34 = vpack.c.bf16 %v3943_v62, %v3941_v39  ;;  %v1763_v15 = vadd.f32 %v1762_v53, %v4875_v18  ;;  %v1851_v42 = vpop.f32.mrf.mxu3  ;;  %v3945_v39 = vpop.eup %3944 }
 0x272   :  { %3946 = vtanh.f32 %v1719_v44  ;;  %2183 = vmatpush.bf16.msra.mxu3 %v3491_v33 }
 0x273   :  { %3077 = vst [vmem:[#allocation5 + $0x2d8] sm:$0xff] %v2949_v34  ;;  %v4944_v51 = vadd.f32 %v1851_v42, %v1763_v15  ;;  %3948 = vtanh.f32 %v4847_v23 }
 0x275   :  { %v1632_v22 = vpop.f32.mrf.mxu0  ;;  %1804 = vmatmul.bf16.gmra.mxu2 %v4697_v59 }
 0x276   :  { %v1633_v60 = vadd.f32 %v1632_v22, %v4734_v8  ;;  %v1721_v14 = vpop.f32.mrf.mxu1  ;;  %1893 = vmatmul.bf16.gmra.mxu3 %v4701_v10 }
 0x278   :  { %v3947_v62 = vpop.eup %3946  ;;  %v1722_v44 = vadd.f32 %v1721_v14, %v1633_v60  ;;  %v1765_v53 = vpop.f32.mrf.mxu2  ;;  %1947 = vmatmul.bf16.gmra.mxu0 %v5459_v9 }
 0x279   :  { %v2953_v34 = vpack.c.bf16 %v3947_v62, %v3945_v39  ;;  %v1766_v15 = vadd.f32 %v1765_v53, %v4875_v18  ;;  %v1854_v42 = vpop.f32.mrf.mxu3  ;;  %2036 = vmatmul.bf16.gmra.mxu1 %v5460_v36  ;;  %v3949_v17 = vpop.eup %3948 }
 0x27a   :  { %3950 = vtanh.f32 %v1722_v44 }
 0x27b   :  { %3081 = vst [vmem:[#allocation5 + $0x2f4] sm:$0xff] %v2953_v34  ;;  %v4953_v57 = vadd.f32 %v1854_v42, %v1766_v15  ;;  %3952 = vtanh.f32 %v4852_v27 }
 0x27d   :  { %v1634_v58 = vpop.f32.mrf.mxu0 }
 0x27e   :  { %v1635_v21 = vadd.f32 %v1634_v58, %v4734_v8  ;;  %v1723_v43 = vpop.f32.mrf.mxu1 }
 0x280   :  { %v3951_v22 = vpop.eup %3950  ;;  %v1724_v33 = vadd.f32 %v1723_v43, %v1635_v21  ;;  %v1767_v60 = vpop.f32.mrf.mxu2 }
 0x281   :  { %v2957_v23 = vpack.c.bf16 %v3951_v22, %v3949_v17  ;;  %v1768_v14 = vadd.f32 %v1767_v60, %v4875_v18  ;;  %v1856_v39 = vpop.f32.mrf.mxu3  ;;  %v3953_v15 = vpop.eup %3952 }
 0x282   :  { %3954 = vtanh.f32 %v1724_v33 }
 0x283   :  { %3085 = vst [vmem:[#allocation5 + $0x310] sm:$0xff] %v2957_v23  ;;  %v4958_v62 = vadd.f32 %v1856_v39, %v1768_v14  ;;  %3956 = vtanh.f32 %v4861_v63 }
 0x285   :  { %v1637_v44 = vpop.f32.mrf.mxu0  ;;  %1809 = vmatmul.bf16.gmra.mxu2 %v4715_v12 }
 0x286   :  { %v1638_v53 = vadd.f32 %v1637_v44, %v4734_v8  ;;  %v1726_v34 = vpop.f32.mrf.mxu1  ;;  %1898 = vmatmul.bf16.gmra.mxu3 %v5458_v40 }
 0x288   :  { %v3955_v42 = vpop.eup %3954  ;;  %v1727_v58 = vadd.f32 %v1726_v34, %v1638_v53  ;;  %v1770_v27 = vpop.f32.mrf.mxu2  ;;  %1952 = vmatmul.bf16.gmra.mxu0 %v5461_v41 }
 0x289   :  { %v2961_v21 = vpack.c.bf16 %v3955_v42, %v3953_v15  ;;  %v1771_v43 = vadd.f32 %v1770_v27, %v4875_v18  ;;  %v1859_v17 = vpop.f32.mrf.mxu3  ;;  %2041 = vmatmul.bf16.gmra.mxu1 %v5462_v2  ;;  %v3957_v14 = vpop.eup %3956  ;;  %v4973_v42 = vperm.slane %v4872_v5, 3  ;;  %v3470_v27 = vld [vmem:[#allocation2 + $0x1a0] sm:$0xf] }
 0x28a   :  { %3958 = vtanh.f32 %v1727_v58 }
 0x28b   :  { %3089 = vst [vmem:[#allocation5 + $0x32c] sm:$0xff] %v2961_v21  ;;  %v4967_v22 = vadd.f32 %v1859_v17, %v1771_v43  ;;  %3960 = vtanh.f32 %v4866_v28  ;;  %v3694_v43 = vld [vmem:[#allocation2 + $0x360] sm:$0xf]  ;;  %v3831_v17 = vld [vmem:[#allocation2 + $0x378] sm:$0xf0] }
 0x28d   :  { %v1639_v33 = vpop.f32.mrf.mxu0 }
 0x28e   :  { %v1640_v60 = vadd.f32 %v1639_v33, %v4734_v8  ;;  %v1728_v23 = vpop.f32.mrf.mxu1  ;;  %v3775_v8 = vld [vmem:[#allocation2 + $0x1b8] sm:$0xf0] }
 0x28f   :  { %v3471_v21 = vor.u32 %v3775_v8, %v3470_v27  ;;  %v3771_v33 = vld [vmem:[#allocation2 + $0x19c] sm:$0xf] }
 0x290   :  { %v3959_v39 = vpop.eup %3958  ;;  %v1729_v44 = vadd.f32 %v1728_v23, %v1640_v60  ;;  %v1772_v53 = vpop.f32.mrf.mxu2  ;;  %v3695_v60 = vor.u32 %v3831_v17, %v3694_v43  ;;  %v3464_v23 = vld [vmem:[#allocation2 + $0x1b4] sm:$0xf0]  ;;  %v3827_v43 = vld [vmem:[#allocation2 + $0x35c] sm:$0xf] }
 0x291   :  { %v2965_v63 = vpack.c.bf16 %v3959_v39, %v3957_v14  ;;  %v1773_v34 = vadd.f32 %v1772_v53, %v4875_v18  ;;  %v1861_v15 = vpop.f32.mrf.mxu3  ;;  %2443 = vmatpush.bf16.msrb.mxu2 %v3471_v21  ;;  %v3467_v39 = vor.u32 %v3771_v33, %v3464_v23  ;;  %v3688_v17 = vld [vmem:[#allocation2 + $0x374] sm:$0xf0] }
 0x292   :  { %3962 = vtanh.f32 %v1729_v44  ;;  %v3961_v44 = vpop.eup %3960  ;;  %2532 = vmatpush.bf16.msrb.mxu3 %v3695_v60  ;;  %v3691_v33 = vor.u32 %v3827_v43, %v3688_v17 }
 0x293   :  { %3093 = vst [vmem:[#allocation5 + $0x348] sm:$0xff] %v2965_v63  ;;  %v4975_v58 = vadd.f32 %v1861_v15, %v1773_v34  ;;  %3964 = vtanh.f32 %v4883_v46  ;;  %2265 = vmatpush.bf16.msrb.mxu0 %v3467_v39 }
 0x294   :  { %2354 = vmatpush.bf16.msrb.mxu1 %v3691_v33 }
 0x295   :  { %1814 = vmatmul.bf16.gmra.mxu2 %v4736_v32  ;;  %v1918_v28 = vpop.f32.mrf.mxu0 }
 0x296   :  { %1903 = vmatmul.bf16.gmra.mxu3 %v4740_v55  ;;  %v1919_v14 = vadd.f32 %v1918_v28, %v4973_v42  ;;  %v2007_v5 = vpop.f32.mrf.mxu1 }
 0x298   :  { %v3963_v53 = vpop.eup %3962  ;;  %v2008_v63 = vadd.f32 %v2007_v5, %v1919_v14  ;;  %v1775_v34 = vpop.f32.mrf.mxu2  ;;  %1957 = vmatmul.bf16.gmra.mxu0 %v4606_v45 }
 0x299   :  { %v2969_v15 = vpack.c.bf16 %v3963_v53, %v3961_v44  ;;  %v1776_v27 = vadd.f32 %v1775_v34, %v4875_v18  ;;  %v1864_v8 = vpop.f32.mrf.mxu3  ;;  %2046 = vmatmul.bf16.gmra.mxu1 %v4608_v48  ;;  %v3965_v46 = vpop.eup %3964 }
 0x29a   :  { %3966 = vtanh.f32 %v2008_v63 }
 0x29b   :  { %3097 = vst [vmem:[#allocation5 + $0x364] sm:$0xff] %v2969_v15  ;;  %v4984_v21 = vadd.f32 %v1864_v8, %v1776_v27  ;;  %3968 = vtanh.f32 %v4888_v31 }
 0x29d   :  { %v1920_v28 = vpop.f32.mrf.mxu0 }
 0x29e   :  { %v1921_v60 = vadd.f32 %v1920_v28, %v4973_v42  ;;  %v2009_v23 = vpop.f32.mrf.mxu1 }
 0x2a0   :  { %v3967_v14 = vpop.eup %3966  ;;  %v2010_v5 = vadd.f32 %v2009_v23, %v1921_v60  ;;  %v1777_v44 = vpop.f32.mrf.mxu2 }
 0x2a1   :  { %v2846_v53 = vpack.c.bf16 %v3967_v14, %v3965_v46  ;;  %v1778_v39 = vadd.f32 %v1777_v44, %v4875_v18  ;;  %v1866_v63 = vpop.f32.mrf.mxu3  ;;  %v3969_v43 = vpop.eup %3968 }
 0x2a2   :  { %3970 = vtanh.f32 %v2010_v5 }
 0x2a3   :  { %2974 = vst [vmem:[#allocation5 + $0x8] sm:$0xff] %v2846_v53  ;;  %v4989_v34 = vadd.f32 %v1866_v63, %v1778_v39  ;;  %3972 = vtanh.f32 %v4897_v13 }
 0x2a5   :  { %v1923_v15 = vpop.f32.mrf.mxu0  ;;  %2095 = vmatmul.bf16.vlgmr.msra.gmra.mxu2 %v4483_v47 }
 0x2a6   :  { %v1924_v27 = vadd.f32 %v1923_v15, %v4973_v42  ;;  %v2012_v8 = vpop.f32.mrf.mxu1  ;;  %2184 = vmatmul.bf16.vlgmr.msra.gmra.mxu3 %v4485_v49 }
 0x2a8   :  { %v3971_v17 = vpop.eup %3970  ;;  %v2013_v33 = vadd.f32 %v2012_v8, %v1924_v27  ;;  %v1780_v31 = vpop.f32.mrf.mxu2  ;;  %1962 = vmatmul.bf16.gmra.mxu0 %v4625_v24 }
 0x2a9   :  { %v2850_v28 = vpack.c.bf16 %v3971_v17, %v3969_v43  ;;  %v1781_v60 = vadd.f32 %v1780_v31, %v4875_v18  ;;  %v1869_v23 = vpop.f32.mrf.mxu3  ;;  %2051 = vmatmul.bf16.gmra.mxu1 %v4629_v29  ;;  %v3973_v53 = vpop.eup %3972  ;;  %v3442_v17 = vld [vmem:[#allocation2 + $0x168] sm:$0xf] }
 0x2aa   :  { %3974 = vtanh.f32 %v2013_v33  ;;  %v3768_v33 = vld [vmem:[#allocation2 + $0x180] sm:$0xf0] }
 0x2ab   :  { %2978 = vst [vmem:[#allocation5 + $0x24] sm:$0xff] %v2850_v28  ;;  %v4998_v46 = vadd.f32 %v1869_v23, %v1781_v60  ;;  %3976 = vtanh.f32 %v4902_v6  ;;  %v3443_v31 = vor.u32 %v3768_v33, %v3442_v17  ;;  %v3666_v28 = vld [vmem:[#allocation2 + $0x328] sm:$0xf]  ;;  %v3824_v60 = vld [vmem:[#allocation2 + $0x340] sm:$0xf0] }
 0x2ac   :  { %v3764_v23 = vld [vmem:[#allocation2 + $0x164] sm:$0xf] }
 0x2ad   :  { %v1925_v14 = vpop.f32.mrf.mxu0  ;;  %2444 = vmatpush.bf16.msrb.mxu2 %v3443_v31 }
 0x2ae   :  { %v1926_v5 = vadd.f32 %v1925_v14, %v4973_v42  ;;  %v2014_v44 = vpop.f32.mrf.mxu1 }
 0x2b0   :  { %v3975_v39 = vpop.eup %3974  ;;  %v2015_v63 = vadd.f32 %v2014_v44, %v1926_v5  ;;  %v1782_v15 = vpop.f32.mrf.mxu2  ;;  %v3667_v5 = vor.u32 %v3824_v60, %v3666_v28  ;;  %v3436_v44 = vld [vmem:[#allocation2 + $0x17c] sm:$0xf0]  ;;  %v3820_v60 = vld [vmem:[#allocation2 + $0x324] sm:$0xf] }
 0x2b1   :  { %v2854_v13 = vpack.c.bf16 %v3975_v39, %v3973_v53  ;;  %v1783_v27 = vadd.f32 %v1782_v15, %v4875_v18  ;;  %v1871_v8 = vpop.f32.mrf.mxu3  ;;  %v5463_v39 = vld [vmem:[#allocation8_spill] sm:$0xff]  ;;  %v3977_v15 = vpop.eup %3976 }
 0x2b2   :  { %3978 = vtanh.f32 %v2015_v63  ;;  %v3439_v63 = vor.u32 %v3764_v23, %v3436_v44  ;;  %2533 = vmatpush.bf16.msrb.mxu3 %v3667_v5  ;;  %v3660_v23 = vld [vmem:[#allocation2 + $0x33c] sm:$0xf0] }
 0x2b3   :  { %2982 = vst [vmem:[#allocation5 + $0x40] sm:$0xff] %v2854_v13  ;;  %v5003_v43 = vadd.f32 %v1871_v8, %v1783_v27  ;;  %3980 = vtanh.f32 %v4911_v16 }
 0x2b4   :  { %2266 = vmatpush.bf16.msrb.mxu0 %v3439_v63 }
 0x2b5   :  { %v1928_v14 = vpop.f32.mrf.mxu0  ;;  %2100 = vmatmul.bf16.gmra.mxu2 %v4498_v11 }
 0x2b6   :  { %v1929_v6 = vadd.f32 %v1928_v14, %v4973_v42  ;;  %v2017_v53 = vpop.f32.mrf.mxu1  ;;  %2189 = vmatmul.bf16.gmra.mxu3 %v5463_v39  ;;  %v3663_v14 = vor.u32 %v3820_v60, %v3660_v23 }
 0x2b8   :  { %v3979_v13 = vpop.eup %3978  ;;  %v2018_v27 = vadd.f32 %v2017_v53, %v1929_v6  ;;  %v1785_v8 = vpop.f32.mrf.mxu2  ;;  %1967 = vmatmul.bf16.gmra.mxu0 %v4643_v4  ;;  %2355 = vmatpush.bf16.msrb.mxu1 %v3663_v14 }
 0x2b9   :  { %v2858_v17 = vpack.c.bf16 %v3979_v13, %v3977_v15  ;;  %v1786_v33 = vadd.f32 %v1785_v8, %v4875_v18  ;;  %v1874_v28 = vpop.f32.mrf.mxu3  ;;  %2056 = vmatmul.bf16.gmra.mxu1 %v4647_v7  ;;  %v3981_v16 = vpop.eup %3980 }
 0x2ba   :  { %3982 = vtanh.f32 %v2018_v27 }
 0x2bb   :  { %2986 = vst [vmem:[#allocation5 + $0x5c] sm:$0xff] %v2858_v17  ;;  %v5012_v31 = vadd.f32 %v1874_v28, %v1786_v33  ;;  %3984 = vtanh.f32 %v4916_v19 }
 0x2bd   :  { %v1930_v5 = vpop.f32.mrf.mxu0 }
 0x2be   :  { %v1931_v44 = vadd.f32 %v1930_v5, %v4973_v42  ;;  %v2019_v6 = vpop.f32.mrf.mxu1 }
 0x2c0   :  { %v3983_v53 = vpop.eup %3982  ;;  %v2020_v15 = vadd.f32 %v2019_v6, %v1931_v44  ;;  %v1787_v13 = vpop.f32.mrf.mxu2 }
 0x2c1   :  { %v2862_v8 = vpack.c.bf16 %v3983_v53, %v3981_v16  ;;  %v1788_v63 = vadd.f32 %v1787_v13, %v4875_v18  ;;  %v1876_v27 = vpop.f32.mrf.mxu3  ;;  %v3985_v23 = vpop.eup %3984 }
 0x2c2   :  { %3986 = vtanh.f32 %v2020_v15 }
 0x2c3   :  { %2990 = vst [vmem:[#allocation5 + $0x78] sm:$0xff] %v2862_v8  ;;  %v5017_v17 = vadd.f32 %v1876_v27, %v1788_v63  ;;  %3988 = vtanh.f32 %v4925_v54 }
 0x2c5   :  { %v1933_v33 = vpop.f32.mrf.mxu0  ;;  %2105 = vmatmul.bf16.gmra.mxu2 %v4513_v35 }
 0x2c6   :  { %v1934_v28 = vadd.f32 %v1933_v33, %v4973_v42  ;;  %v2022_v60 = vpop.f32.mrf.mxu1  ;;  %2194 = vmatmul.bf16.gmra.mxu3 %v4515_v37 }
 0x2c8   :  { %v3987_v14 = vpop.eup %3986  ;;  %v2023_v5 = vadd.f32 %v2022_v60, %v1934_v28  ;;  %v1790_v19 = vpop.f32.mrf.mxu2  ;;  %1972 = vmatmul.bf16.gmra.mxu0 %v4661_v61 }
 0x2c9   :  { %v2866_v44 = vpack.c.bf16 %v3987_v14, %v3985_v23  ;;  %v1791_v6 = vadd.f32 %v1790_v19, %v4875_v18  ;;  %v1879_v16 = vpop.f32.mrf.mxu3  ;;  %2061 = vmatmul.bf16.gmra.mxu1 %v4665_v0  ;;  %v3989_v63 = vpop.eup %3988  ;;  %v3761_v19 = vld [vmem:[#allocation2 + $0x148] sm:$0xf0] }
 0x2ca   :  { %3990 = vtanh.f32 %v2023_v5  ;;  %v3414_v5 = vld [vmem:[#allocation2 + $0x130] sm:$0xf] }
 0x2cb   :  { %2994 = vst [vmem:[#allocation5 + $0x94] sm:$0xff] %v2866_v44  ;;  %v5026_v53 = vadd.f32 %v1879_v16, %v1791_v6  ;;  %3992 = vtanh.f32 %v4930_v52  ;;  %v3415_v44 = vor.u32 %v3761_v19, %v3414_v5  ;;  %v3638_v6 = vld [vmem:[#allocation2 + $0x2f0] sm:$0xf]  ;;  %v3817_v16 = vld [vmem:[#allocation2 + $0x308] sm:$0xf0] }
 0x2cd   :  { %v1935_v15 = vpop.f32.mrf.mxu0  ;;  %2445 = vmatpush.bf16.msrb.mxu2 %v3415_v44  ;;  %v3813_v44 = vld [vmem:[#allocation2 + $0x2ec] sm:$0xf] }
 0x2ce   :  { %v1936_v13 = vadd.f32 %v1935_v15, %v4973_v42  ;;  %v2024_v8 = vpop.f32.mrf.mxu1  ;;  %v3757_v15 = vld [vmem:[#allocation2 + $0x12c] sm:$0xf] }
 0x2d0   :  { %v3991_v27 = vpop.eup %3990  ;;  %v2025_v33 = vadd.f32 %v2024_v8, %v1936_v13  ;;  %v1792_v28 = vpop.f32.mrf.mxu2  ;;  %v3639_v13 = vor.u32 %v3817_v16, %v3638_v6  ;;  %v3408_v8 = vld [vmem:[#allocation2 + $0x144] sm:$0xf0] }
 0x2d1   :  { %v2870_v54 = vpack.c.bf16 %v3991_v27, %v3989_v63  ;;  %v1793_v60 = vadd.f32 %v1792_v28, %v4875_v18  ;;  %v1881_v23 = vpop.f32.mrf.mxu3  ;;  %v3411_v27 = vor.u32 %v3757_v15, %v3408_v8  ;;  %v3632_v6 = vld [vmem:[#allocation2 + $0x304] sm:$0xf0] }
 0x2d2   :  { %3994 = vtanh.f32 %v2025_v33  ;;  %v3993_v33 = vpop.eup %3992  ;;  %2534 = vmatpush.bf16.msrb.mxu3 %v3639_v13  ;;  %v3635_v16 = vor.u32 %v3813_v44, %v3632_v6  ;;  %v3806_v44 = vld [vmem:[#allocation2 + $0x2b4] sm:$0xf]  ;;  %v3604_v6 = vld [vmem:[#allocation2 + $0x2cc] sm:$0xf0] }
 0x2d3   :  { %2998 = vst [vmem:[#allocation5 + $0xb0] sm:$0xff] %v2870_v54  ;;  %v5031_v14 = vadd.f32 %v1881_v23, %v1793_v60  ;;  %3996 = vtanh.f32 %v4939_v38  ;;  %2267 = vmatpush.bf16.msrb.mxu0 %v3411_v27 }
 0x2d4   :  { %2356 = vmatpush.bf16.msrb.mxu1 %v3635_v16 }
 0x2d5   :  { %v1938_v0 = vpop.f32.mrf.mxu0  ;;  %2110 = vmatmul.bf16.gmra.mxu2 %v4528_v1 }
 0x2d6   :  { %v1939_v52 = vadd.f32 %v1938_v0, %v4973_v42  ;;  %v2027_v63 = vpop.f32.mrf.mxu1  ;;  %2199 = vmatmul.bf16.gmra.mxu3 %v4530_v3 }
 0x2d8   :  { %v3995_v28 = vpop.eup %3994  ;;  %v2028_v54 = vadd.f32 %v2027_v63, %v1939_v52  ;;  %v1795_v60 = vpop.f32.mrf.mxu2  ;;  %1977 = vmatmul.bf16.gmra.mxu0 %v4679_v50 }
 0x2d9   :  { %v2874_v23 = vpack.c.bf16 %v3995_v28, %v3993_v33  ;;  %v1796_v5 = vadd.f32 %v1795_v60, %v4875_v18  ;;  %v1884_v19 = vpop.f32.mrf.mxu3  ;;  %2066 = vmatmul.bf16.gmra.mxu1 %v4683_v56  ;;  %v3997_v38 = vpop.eup %3996 }
 0x2da   :  { %3998 = vtanh.f32 %v2028_v54 }
 0x2db   :  { %3002 = vst [vmem:[#allocation5 + $0xcc] sm:$0xff] %v2874_v23  ;;  %v5040_v0 = vadd.f32 %v1884_v19, %v1796_v5  ;;  %4000 = vtanh.f32 %v4944_v51  ;;  %v3750_v23 = vld [vmem:[#allocation2 + $0xf4] sm:$0xf]  ;;  %v3380_v5 = vld [vmem:[#allocation2 + $0x10c] sm:$0xf0] }
 0x2dc   :  { %v3383_v19 = vor.u32 %v3750_v23, %v3380_v5  ;;  %v3576_v23 = vld [vmem:[#allocation2 + $0x294] sm:$0xf0] }
 0x2dd   :  { %v1940_v15 = vpop.f32.mrf.mxu0 }
 0x2de   :  { %v1941_v13 = vadd.f32 %v1940_v15, %v4973_v42  ;;  %v2029_v8 = vpop.f32.mrf.mxu1  ;;  %v3607_v15 = vor.u32 %v3806_v44, %v3604_v6  ;;  %2268 = vmatpush.bf16.msrb.mxu0 %v3383_v19 }
 0x2e0   :  { %v3999_v52 = vpop.eup %3998  ;;  %v2030_v63 = vadd.f32 %v2029_v8, %v1941_v13  ;;  %v1797_v33 = vpop.f32.mrf.mxu2  ;;  %2357 = vmatpush.bf16.msrb.mxu1 %v3607_v15  ;;  %v3736_v15 = vld [vmem:[#allocation2 + $0x84] sm:$0xf] }
 0x2e1   :  { %v2878_v28 = vpack.c.bf16 %v3999_v52, %v3997_v38  ;;  %v1798_v27 = vadd.f32 %v1797_v33, %v4875_v18  ;;  %v1886_v54 = vpop.f32.mrf.mxu3  ;;  %v4001_v8 = vpop.eup %4000  ;;  %v3743_v38 = vld [vmem:[#allocation2 + $0xbc] sm:$0xf]  ;;  %v3352_v52 = vld [vmem:[#allocation2 + $0xd4] sm:$0xf0] }
 0x2e2   :  { %4002 = vtanh.f32 %v2030_v63  ;;  %v3799_v63 = vld [vmem:[#allocation2 + $0x27c] sm:$0xf] }
 0x2e3   :  { %3006 = vst [vmem:[#allocation5 + $0xe8] sm:$0xff] %v2878_v28  ;;  %v5045_v60 = vadd.f32 %v1886_v54, %v1798_v27  ;;  %v3355_v54 = vor.u32 %v3743_v38, %v3352_v52  ;;  %4004 = vtanh.f32 %v4953_v57  ;;  %v3579_v19 = vor.u32 %v3799_v63, %v3576_v23  ;;  %v3792_v38 = vld [vmem:[#allocation2 + $0x244] sm:$0xf]  ;;  %v3548_v52 = vld [vmem:[#allocation2 + $0x25c] sm:$0xf0] }
 0x2e4   :  { %v3551_v57 = vor.u32 %v3792_v38, %v3548_v52  ;;  %v3729_v63 = vld [vmem:[#allocation2 + $0x4c] sm:$0xf] }
 0x2e5   :  { %v1943_v16 = vpop.f32.mrf.mxu0  ;;  %2115 = vmatmul.bf16.gmra.mxu2 %v4543_v25  ;;  %2269 = vmatpush.bf16.msrb.mxu0 %v3355_v54  ;;  %v3785_v54 = vld [vmem:[#allocation2 + $0x20c] sm:$0xf] }
 0x2e6   :  { %v1944_v13 = vadd.f32 %v1943_v16, %v4973_v42  ;;  %v2032_v51 = vpop.f32.mrf.mxu1  ;;  %2204 = vmatmul.bf16.gmra.mxu3 %v4545_v30  ;;  %2358 = vmatpush.bf16.msrb.mxu1 %v3579_v19  ;;  %v3520_v19 = vld [vmem:[#allocation2 + $0x224] sm:$0xf0] }
 0x2e7   :  { %v3523_v52 = vor.u32 %v3785_v54, %v3520_v19 }
 0x2e8   :  { %v4003_v33 = vpop.eup %4002  ;;  %v2033_v28 = vadd.f32 %v2032_v51, %v1944_v13  ;;  %v1800_v27 = vpop.f32.mrf.mxu2  ;;  %1982 = vmatmul.bf16.gmra.mxu0 %v4697_v59  ;;  %v3324_v13 = vld [vmem:[#allocation2 + $0x9c] sm:$0xf0] }
 0x2e9   :  { %v2882_v5 = vpack.c.bf16 %v4003_v33, %v4001_v8  ;;  %v1801_v44 = vadd.f32 %v1800_v27, %v4875_v18  ;;  %v1889_v6 = vpop.f32.mrf.mxu3  ;;  %2071 = vmatmul.bf16.gmra.mxu1 %v4701_v10  ;;  %v3327_v51 = vor.u32 %v3736_v15, %v3324_v13  ;;  %v4005_v27 = vpop.eup %4004 }
 0x2ea   :  { %4006 = vtanh.f32 %v2033_v28  ;;  %2359 = vmatpush.bf16.msrb.mxu1 %v3551_v57  ;;  %v3296_v28 = vld [vmem:[#allocation2 + $0x64] sm:$0xf0]  ;;  %v3754_v57 = vld [vmem:[#allocation2 + $0x110] sm:$0xf0] }
 0x2eb   :  { %3010 = vst [vmem:[#allocation5 + $0x104] sm:$0xff] %v2882_v5  ;;  %v5054_v16 = vadd.f32 %v1889_v6, %v1801_v44  ;;  %2270 = vmatpush.bf16.msrb.mxu0 %v3327_v51  ;;  %v3299_v6 = vor.u32 %v3729_v63, %v3296_v28  ;;  %4008 = vtanh.f32 %v4958_v62  ;;  %v3386_v51 = vld [vmem:[#allocation2 + $0xf8] sm:$0xf]  ;;  %v3722_v63 = vld [vmem:[#allocation2 + $0x14] sm:$0xf] }
 0x2ec   :  { %v3387_v10 = vor.u32 %v3754_v57, %v3386_v51 }
 0x2ed   :  { %v1945_v59 = vpop.f32.mrf.mxu0 }
 0x2ee   :  { %v1946_v8 = vadd.f32 %v1945_v59, %v4973_v42  ;;  %v2034_v33 = vpop.f32.mrf.mxu1  ;;  %2360 = vmatpush.bf16.msrb.mxu1 %v3523_v52  ;;  %2446 = vmatpush.bf16.msrb.mxu2 %v3387_v10 }
 0x2ef   :  { %2271 = vmatpush.bf16.msrb.mxu0 %v3299_v6 }
 0x2f0   :  { %v4007_v23 = vpop.eup %4006  ;;  %v2035_v5 = vadd.f32 %v2034_v33, %v1946_v8  ;;  %v1802_v44 = vpop.f32.mrf.mxu2  ;;  %v3610_v8 = vld [vmem:[#allocation2 + $0x2b8] sm:$0xf]  ;;  %v3810_v33 = vld [vmem:[#allocation2 + $0x2d0] sm:$0xf0] }
 0x2f1   :  { %v2886_v15 = vpack.c.bf16 %v4007_v23, %v4005_v27  ;;  %v1803_v13 = vadd.f32 %v1802_v44, %v4875_v18  ;;  %v1891_v38 = vpop.f32.mrf.mxu3  ;;  %v3611_v62 = vor.u32 %v3810_v33, %v3610_v8  ;;  %v3268_v27 = vld [vmem:[#allocation2 + $0x2c] sm:$0xf0]  ;;  %v3778_v23 = vld [vmem:[#allocation2 + $0x1d4] sm:$0xf] }
 0x2f2   :  { %4010 = vtanh.f32 %v2035_v5  ;;  %v3492_v44 = vld [vmem:[#allocation2 + $0x1ec] sm:$0xf0]  ;;  %v3271_v6 = vor.u32 %v3722_v63, %v3268_v27 }
 0x2f3   :  { %3014 = vst [vmem:[#allocation5 + $0x120] sm:$0xff] %v2886_v15  ;;  %v5059_v59 = vadd.f32 %v1891_v38, %v1803_v13  ;;  %v3495_v19 = vor.u32 %v3778_v23, %v3492_v44  ;;  %v4009_v15 = vpop.eup %4008  ;;  %2535 = vmatpush.bf16.msrb.mxu3 %v3611_v62  ;;  %4012 = vtanh.f32 %v4967_v22 }
 0x2f4   :  { %2272 = vmatpush.bf16.msrb.mxu0 %v3271_v6 }
 0x2f5   :  { %v1948_v28 = vpop.f32.mrf.mxu0  ;;  %2120 = vmatmul.bf16.gmra.mxu2 %v4559_v20  ;;  %2361 = vmatpush.bf16.msrb.mxu1 %v3495_v19 }
 0x2f6   :  { %v1949_v54 = vadd.f32 %v1948_v28, %v4973_v42  ;;  %v2037_v5 = vpop.f32.mrf.mxu1  ;;  %2209 = vmatmul.bf16.gmra.mxu3 %v4561_v26 }
 0x2f8   :  { %v4011_v13 = vpop.eup %4010  ;;  %v2038_v38 = vadd.f32 %v2037_v5, %v1949_v54  ;;  %v1805_v52 = vpop.f32.mrf.mxu2  ;;  %1987 = vmatmul.bf16.gmra.mxu0 %v4715_v12 }
 0x2f9   :  { %v2890_v51 = vpack.c.bf16 %v4011_v13, %v4009_v15  ;;  %v1806_v57 = vadd.f32 %v1805_v52, %v4875_v18  ;;  %v1894_v8 = vpop.f32.mrf.mxu3  ;;  %2076 = vmatmul.bf16.gmra.mxu1 %v5458_v40  ;;  %v4013_v62 = vpop.eup %4012 }
 0x2fa   :  { %4014 = vtanh.f32 %v2038_v38 }
 0x2fb   :  { %3018 = vst [vmem:[#allocation5 + $0x13c] sm:$0xff] %v2890_v51  ;;  %v5068_v10 = vadd.f32 %v1894_v8, %v1806_v57  ;;  %4016 = vtanh.f32 %v4975_v58 }
 0x2fd   :  { %v1950_v33 = vpop.f32.mrf.mxu0 }
 0x2fe   :  { %v1951_v63 = vadd.f32 %v1950_v33, %v4973_v42  ;;  %v2039_v28 = vpop.f32.mrf.mxu1 }
 0x300   :  { %v4015_v27 = vpop.eup %4014  ;;  %v2040_v23 = vadd.f32 %v2039_v28, %v1951_v63  ;;  %v1807_v44 = vpop.f32.mrf.mxu2 }
 0x301   :  { %v2894_v22 = vpack.c.bf16 %v4015_v27, %v4013_v62  ;;  %v1808_v54 = vadd.f32 %v1807_v44, %v4875_v18  ;;  %v1896_v5 = vpop.f32.mrf.mxu3  ;;  %v4017_v38 = vpop.eup %4016 }
 0x302   :  { %4018 = vtanh.f32 %v2040_v23 }
 0x303   :  { %3022 = vst [vmem:[#allocation5 + $0x158] sm:$0xff] %v2894_v22  ;;  %v5073_v6 = vadd.f32 %v1896_v5, %v1808_v54  ;;  %4020 = vtanh.f32 %v4984_v21 }
 0x305   :  { %v1953_v19 = vpop.f32.mrf.mxu0  ;;  %2125 = vmatmul.bf16.gmra.mxu2 %v5459_v9 }
 0x306   :  { %v1954_v15 = vadd.f32 %v1953_v19, %v4973_v42  ;;  %v2042_v13 = vpop.f32.mrf.mxu1  ;;  %2214 = vmatmul.bf16.gmra.mxu3 %v5460_v36 }
 0x308   :  { %v4019_v52 = vpop.eup %4018  ;;  %v2043_v51 = vadd.f32 %v2042_v13, %v1954_v15  ;;  %v1810_v58 = vpop.f32.mrf.mxu2  ;;  %1992 = vmatmul.bf16.gmra.mxu0 %v4736_v32  ;;  %v3358_v13 = vld [vmem:[#allocation2 + $0xc0] sm:$0xf] }
 0x309   :  { %v2898_v57 = vpack.c.bf16 %v4019_v52, %v4017_v38  ;;  %v1811_v8 = vadd.f32 %v1810_v58, %v4875_v18  ;;  %v1899_v33 = vpop.f32.mrf.mxu3  ;;  %2081 = vmatmul.bf16.gmra.mxu1 %v4740_v55  ;;  %v4021_v23 = vpop.eup %4020  ;;  %v3747_v38 = vld [vmem:[#allocation2 + $0xd8] sm:$0xf0] }
 0x30a   :  { %4022 = vtanh.f32 %v2043_v51  ;;  %v3359_v52 = vor.u32 %v3747_v38, %v3358_v13  ;;  %v3582_v51 = vld [vmem:[#allocation2 + $0x280] sm:$0xf]  ;;  %v3803_v58 = vld [vmem:[#allocation2 + $0x298] sm:$0xf0] }
 0x30b   :  { %3026 = vst [vmem:[#allocation5 + $0x174] sm:$0xff] %v2898_v57  ;;  %v5082_v63 = vadd.f32 %v1899_v33, %v1811_v8  ;;  %4024 = vtanh.f32 %v4989_v34  ;;  %v3583_v8 = vor.u32 %v3803_v58, %v3582_v51 }
 0x30c   :  { %2447 = vmatpush.bf16.msrb.mxu2 %v3359_v52 }
 0x30d   :  { %v1955_v28 = vpop.f32.mrf.mxu0  ;;  %2536 = vmatpush.bf16.msrb.mxu3 %v3583_v8 }
 0x30e   :  { %v1956_v62 = vadd.f32 %v1955_v28, %v4973_v42  ;;  %v2044_v27 = vpop.f32.mrf.mxu1 }
 0x310   :  { %v4023_v44 = vpop.eup %4022  ;;  %v2045_v22 = vadd.f32 %v2044_v27, %v1956_v62  ;;  %v1812_v54 = vpop.f32.mrf.mxu2 }
 0x311   :  { %v2902_v21 = vpack.c.bf16 %v4023_v44, %v4021_v23  ;;  %v1813_v5 = vadd.f32 %v1812_v54, %v4875_v18  ;;  %v1901_v19 = vpop.f32.mrf.mxu3  ;;  %v4025_v28 = vpop.eup %4024 }
 0x312   :  { %4026 = vtanh.f32 %v2045_v22 }
 0x313   :  { %3030 = vst [vmem:[#allocation5 + $0x190] sm:$0xff] %v2902_v21  ;;  %v5087_v15 = vadd.f32 %v1901_v19, %v1813_v5  ;;  %4028 = vtanh.f32 %v4998_v46 }
 0x315   :  { %v1958_v57 = vpop.f32.mrf.mxu0  ;;  %2130 = vmatmul.bf16.gmra.mxu2 %v5461_v41 }
 0x316   :  { %v1959_v33 = vadd.f32 %v1958_v57, %v4973_v42  ;;  %v2047_v34 = vpop.f32.mrf.mxu1  ;;  %2219 = vmatmul.bf16.gmra.mxu3 %v5462_v2 }
 0x318   :  { %v4027_v62 = vpop.eup %4026  ;;  %v2048_v27 = vadd.f32 %v2047_v34, %v1959_v33  ;;  %v1815_v23 = vpop.f32.mrf.mxu2  ;;  %2273 = vmatmul.bf16.vlgmr.msrb.gmra.mxu0 %v4483_v47 }
 0x319   :  { %v2906_v44 = vpack.c.bf16 %v4027_v62, %v4025_v28  ;;  %v1816_v22 = vadd.f32 %v1815_v23, %v4875_v18  ;;  %v1904_v54 = vpop.f32.mrf.mxu3  ;;  %2362 = vmatmul.bf16.vlgmr.msrb.gmra.mxu1 %v4485_v49  ;;  %v4029_v38 = vpop.eup %4028  ;;  %v5107_v28 = vld [vmem:[%s5427_s4] sm:$0xff] }
 0x31a   :  { %4030 = vtanh.f32 %v2048_v27  ;;  %v5110_v62 = vperm.slane %v5107_v28, 4 }
 0x31b   :  { %3034 = vst [vmem:[#allocation5 + $0x1ac] sm:$0xff] %v2906_v44  ;;  %v5096_v21 = vadd.f32 %v1904_v54, %v1816_v22  ;;  %4032 = vtanh.f32 %v5003_v43 }
 0x31d   :  { %v1960_v5 = vpop.f32.mrf.mxu0 }
 0x31e   :  { %v1961_v19 = vadd.f32 %v1960_v5, %v4973_v42  ;;  %v2049_v13 = vpop.f32.mrf.mxu1 }
 0x320   :  { %v4031_v52 = vpop.eup %4030  ;;  %v2050_v51 = vadd.f32 %v2049_v13, %v1961_v19  ;;  %v1817_v58 = vpop.f32.mrf.mxu2 }
 0x321   :  { %v2910_v46 = vpack.c.bf16 %v4031_v52, %v4029_v38  ;;  %v1818_v57 = vadd.f32 %v1817_v58, %v4875_v18  ;;  %v1906_v8 = vpop.f32.mrf.mxu3  ;;  %v4033_v18 = vpop.eup %4032 }
 0x322   :  { %4034 = vtanh.f32 %v2050_v51 }
 0x323   :  { %3038 = vst [vmem:[#allocation5 + $0x1c8] sm:$0xff] %v2910_v46  ;;  %v5101_v33 = vadd.f32 %v1906_v8, %v1818_v57  ;;  %4036 = vtanh.f32 %v5012_v31 }
 0x325   :  { %v1963_v34 = vpop.f32.mrf.mxu0  ;;  %2135 = vmatmul.bf16.gmra.mxu2 %v4606_v45 }
 0x326   :  { %v1964_v43 = vadd.f32 %v1963_v34, %v4973_v42  ;;  %v2052_v27 = vpop.f32.mrf.mxu1  ;;  %2224 = vmatmul.bf16.gmra.mxu3 %v4608_v48 }
 0x328   :  { %v4035_v23 = vpop.eup %4034  ;;  %v2053_v44 = vadd.f32 %v2052_v27, %v1964_v43  ;;  %v2096_v22 = vpop.f32.mrf.mxu2  ;;  %2278 = vmatmul.bf16.gmra.mxu0 %v4498_v11 }
 0x329   :  { %v2914_v54 = vpack.c.bf16 %v4035_v23, %v4033_v18  ;;  %v2097_v5 = vadd.f32 %v2096_v22, %v5110_v62  ;;  %v2185_v19 = vpop.f32.mrf.mxu3  ;;  %2367 = vmatmul.bf16.gmra.mxu1 %v5463_v39  ;;  %v4037_v58 = vpop.eup %4036  ;;  %v3330_v18 = vld [vmem:[#allocation2 + $0x88] sm:$0xf]  ;;  %v3740_v23 = vld [vmem:[#allocation2 + $0xa0] sm:$0xf0] }
 0x32a   :  { %4038 = vtanh.f32 %v2053_v44  ;;  %v3331_v44 = vor.u32 %v3740_v23, %v3330_v18  ;;  %v3554_v22 = vld [vmem:[#allocation2 + $0x248] sm:$0xf] }
 0x32b   :  { %3042 = vst [vmem:[#allocation5 + $0x1e4] sm:$0xff] %v2914_v54  ;;  %v5118_v13 = vadd.f32 %v2185_v19, %v2097_v5  ;;  %4040 = vtanh.f32 %v5017_v17  ;;  %v3796_v54 = vld [vmem:[#allocation2 + $0x260] sm:$0xf0] }
 0x32c   :  { %v3555_v19 = vor.u32 %v3796_v54, %v3554_v22  ;;  %2448 = vmatpush.bf16.msrb.mxu2 %v3331_v44 }
 0x32d   :  { %v1965_v38 = vpop.f32.mrf.mxu0 }
 0x32e   :  { %v1966_v52 = vadd.f32 %v1965_v38, %v4973_v42  ;;  %v2054_v51 = vpop.f32.mrf.mxu1  ;;  %2537 = vmatpush.bf16.msrb.mxu3 %v3555_v19 }
 0x330   :  { %v4039_v46 = vpop.eup %4038  ;;  %v2055_v57 = vadd.f32 %v2054_v51, %v1966_v52  ;;  %v2098_v8 = vpop.f32.mrf.mxu2 }
 0x331   :  { %v2918_v31 = vpack.c.bf16 %v4039_v46, %v4037_v58  ;;  %v2099_v34 = vadd.f32 %v2098_v8, %v5110_v62  ;;  %v2187_v43 = vpop.f32.mrf.mxu3  ;;  %v4041_v52 = vpop.eup %4040 }
 0x332   :  { %4042 = vtanh.f32 %v2055_v57 }
 0x333   :  { %3046 = vst [vmem:[#allocation5 + $0x200] sm:$0xff] %v2918_v31  ;;  %v5123_v27 = vadd.f32 %v2187_v43, %v2099_v34  ;;  %4044 = vtanh.f32 %v5026_v53 }
 0x335   :  { %v1968_v5 = vpop.f32.mrf.mxu0  ;;  %2140 = vmatmul.bf16.gmra.mxu2 %v4625_v24 }
 0x336   :  { %v1969_v38 = vadd.f32 %v1968_v5, %v4973_v42  ;;  %v2057_v17 = vpop.f32.mrf.mxu1  ;;  %2229 = vmatmul.bf16.gmra.mxu3 %v4629_v29 }
 0x338   :  { %v4043_v51 = vpop.eup %4042  ;;  %v2058_v58 = vadd.f32 %v2057_v17, %v1969_v38  ;;  %v2101_v46 = vpop.f32.mrf.mxu2  ;;  %2283 = vmatmul.bf16.gmra.mxu0 %v4513_v35 }
 0x339   :  { %v2922_v57 = vpack.c.bf16 %v4043_v51, %v4041_v52  ;;  %v2102_v8 = vadd.f32 %v2101_v46, %v5110_v62  ;;  %v2190_v31 = vpop.f32.mrf.mxu3  ;;  %2372 = vmatmul.bf16.gmra.mxu1 %v4515_v37  ;;  %v4045_v44 = vpop.eup %4044 }
 0x33a   :  { %4046 = vtanh.f32 %v2058_v58 }
 0x33b   :  { %3050 = vst [vmem:[#allocation5 + $0x21c] sm:$0xff] %v2922_v57  ;;  %v5132_v34 = vadd.f32 %v2190_v31, %v2102_v8  ;;  %4048 = vtanh.f32 %v5031_v14 }
 0x33d   :  { %v1970_v43 = vpop.f32.mrf.mxu0 }
 0x33e   :  { %v1971_v18 = vadd.f32 %v1970_v43, %v4973_v42  ;;  %v2059_v23 = vpop.f32.mrf.mxu1 }
 0x340   :  { %v4047_v22 = vpop.eup %4046  ;;  %v2060_v54 = vadd.f32 %v2059_v23, %v1971_v18  ;;  %v2103_v5 = vpop.f32.mrf.mxu2 }
 0x341   :  { %v2926_v53 = vpack.c.bf16 %v4047_v22, %v4045_v44  ;;  %v2104_v19 = vadd.f32 %v2103_v5, %v5110_v62  ;;  %v2192_v38 = vpop.f32.mrf.mxu3  ;;  %v4049_v46 = vpop.eup %4048 }
 0x342   :  { %4050 = vtanh.f32 %v2060_v54 }
 0x343   :  { %3054 = vst [vmem:[#allocation5 + $0x238] sm:$0xff] %v2926_v53  ;;  %v5137_v17 = vadd.f32 %v2192_v38, %v2104_v19  ;;  %4052 = vtanh.f32 %v5040_v0 }
 0x345   :  { %v1973_v52 = vpop.f32.mrf.mxu0  ;;  %2145 = vmatmul.bf16.gmra.mxu2 %v4643_v4 }
 0x346   :  { %v1974_v51 = vadd.f32 %v1973_v52, %v4973_v42  ;;  %v2062_v58 = vpop.f32.mrf.mxu1  ;;  %2234 = vmatmul.bf16.gmra.mxu3 %v4647_v7 }
 0x348   :  { %v4051_v57 = vpop.eup %4050  ;;  %v2063_v8 = vadd.f32 %v2062_v58, %v1974_v51  ;;  %v2106_v14 = vpop.f32.mrf.mxu2  ;;  %2288 = vmatmul.bf16.gmra.mxu0 %v4528_v1 }
 0x349   :  { %v2930_v31 = vpack.c.bf16 %v4051_v57, %v4049_v46  ;;  %v2107_v43 = vadd.f32 %v2106_v14, %v5110_v62  ;;  %v2195_v18 = vpop.f32.mrf.mxu3  ;;  %2377 = vmatmul.bf16.gmra.mxu1 %v4530_v3  ;;  %v4053_v5 = vpop.eup %4052  ;;  %v3302_v46 = vld [vmem:[#allocation2 + $0x50] sm:$0xf]  ;;  %v3733_v57 = vld [vmem:[#allocation2 + $0x68] sm:$0xf0] }
 0x34a   :  { %4054 = vtanh.f32 %v2063_v8  ;;  %v3303_v8 = vor.u32 %v3733_v57, %v3302_v46  ;;  %v3526_v14 = vld [vmem:[#allocation2 + $0x210] sm:$0xf] }
 0x34b   :  { %3058 = vst [vmem:[#allocation5 + $0x254] sm:$0xff] %v2930_v31  ;;  %v5146_v23 = vadd.f32 %v2195_v18, %v2107_v43  ;;  %4056 = vtanh.f32 %v5045_v60  ;;  %v3789_v31 = vld [vmem:[#allocation2 + $0x228] sm:$0xf0] }
 0x34c   :  { %v3527_v18 = vor.u32 %v3789_v31, %v3526_v14  ;;  %2449 = vmatpush.bf16.msrb.mxu2 %v3303_v8 }
 0x34d   :  { %v1975_v44 = vpop.f32.mrf.mxu0 }
 0x34e   :  { %v1976_v22 = vadd.f32 %v1975_v44, %v4973_v42  ;;  %v2064_v54 = vpop.f32.mrf.mxu1  ;;  %2538 = vmatpush.bf16.msrb.mxu3 %v3527_v18 }
 0x350   :  { %v4055_v53 = vpop.eup %4054  ;;  %v2065_v19 = vadd.f32 %v2064_v54, %v1976_v22  ;;  %v2108_v38 = vpop.f32.mrf.mxu2  ;;  %v5464_v22 = vld [vmem:[#allocation13_spill] sm:$0xff] }
 0x351   :  { %v2934_v0 = vpack.c.bf16 %v4055_v53, %v4053_v5  ;;  %v2109_v52 = vadd.f32 %v2108_v38, %v5110_v62  ;;  %v2197_v51 = vpop.f32.mrf.mxu3  ;;  %v4057_v54 = vpop.eup %4056 }
 0x352   :  { %4058 = vtanh.f32 %v2065_v19 }
 0x353   :  { %3062 = vst [vmem:[#allocation5 + $0x270] sm:$0xff] %v2934_v0  ;;  %v5151_v58 = vadd.f32 %v2197_v51, %v2109_v52  ;;  %4060 = vtanh.f32 %v5054_v16 }
 0x355   :  { %v1978_v43 = vpop.f32.mrf.mxu0  ;;  %2150 = vmatmul.bf16.gmra.mxu2 %v4661_v61 }
 0x356   :  { %v1979_v44 = vadd.f32 %v1978_v43, %v4973_v42  ;;  %v2067_v60 = vpop.f32.mrf.mxu1  ;;  %2239 = vmatmul.bf16.gmra.mxu3 %v5464_v22 }
 0x358   :  { %v4059_v5 = vpop.eup %4058  ;;  %v2068_v53 = vadd.f32 %v2067_v60, %v1979_v44  ;;  %v2111_v19 = vpop.f32.mrf.mxu2  ;;  %2293 = vmatmul.bf16.gmra.mxu0 %v4543_v25 }
 0x359   :  { %v2938_v38 = vpack.c.bf16 %v4059_v5, %v4057_v54  ;;  %v2112_v0 = vadd.f32 %v2111_v19, %v5110_v62  ;;  %v2200_v52 = vpop.f32.mrf.mxu3  ;;  %2382 = vmatmul.bf16.gmra.mxu1 %v4545_v30  ;;  %v4061_v14 = vpop.eup %4060 }
 0x35a   :  { %4062 = vtanh.f32 %v2068_v53 }
 0x35b   :  { %3066 = vst [vmem:[#allocation5 + $0x28c] sm:$0xff] %v2938_v38  ;;  %v5160_v51 = vadd.f32 %v2200_v52, %v2112_v0  ;;  %4064 = vtanh.f32 %v5059_v59 }
 0x35d   :  { %v1980_v46 = vpop.f32.mrf.mxu0 }
 0x35e   :  { %v1981_v57 = vadd.f32 %v1980_v46, %v4973_v42  ;;  %v2069_v8 = vpop.f32.mrf.mxu1 }
 0x360   :  { %v4063_v31 = vpop.eup %4062  ;;  %v2070_v43 = vadd.f32 %v2069_v8, %v1981_v57  ;;  %v2113_v18 = vpop.f32.mrf.mxu2 }
 0x361   :  { %v2942_v16 = vpack.c.bf16 %v4063_v31, %v4061_v14  ;;  %v2114_v44 = vadd.f32 %v2113_v18, %v5110_v62  ;;  %v2202_v60 = vpop.f32.mrf.mxu3  ;;  %v4065_v38 = vpop.eup %4064 }
 0x362   :  { %4066 = vtanh.f32 %v2070_v43 }
 0x363   :  { %3070 = vst [vmem:[#allocation5 + $0x2a8] sm:$0xff] %v2942_v16  ;;  %v5165_v54 = vadd.f32 %v2202_v60, %v2114_v44  ;;  %4068 = vtanh.f32 %v5068_v10 }
 0x365   :  { %v1983_v5 = vpop.f32.mrf.mxu0  ;;  %2155 = vmatmul.bf16.gmra.mxu2 %v4679_v50 }
 0x366   :  { %v1984_v53 = vadd.f32 %v1983_v5, %v4973_v42  ;;  %v2072_v19 = vpop.f32.mrf.mxu1  ;;  %2244 = vmatmul.bf16.gmra.mxu3 %v4683_v56 }
 0x368   :  { %v4067_v0 = vpop.eup %4066  ;;  %v2073_v52 = vadd.f32 %v2072_v19, %v1984_v53  ;;  %v2116_v59 = vpop.f32.mrf.mxu2  ;;  %2298 = vmatmul.bf16.gmra.mxu0 %v4559_v20 }
 0x369   :  { %v2946_v46 = vpack.c.bf16 %v4067_v0, %v4065_v38  ;;  %v2117_v57 = vadd.f32 %v2116_v59, %v5110_v62  ;;  %v2205_v8 = vpop.f32.mrf.mxu3  ;;  %2387 = vmatmul.bf16.gmra.mxu1 %v4561_v26  ;;  %v4069_v16 = vpop.eup %4068  ;;  %v3274_v0 = vld [vmem:[#allocation2 + $0x18] sm:$0xf] }
 0x36a   :  { %4070 = vtanh.f32 %v2073_v52  ;;  %v3726_v52 = vld [vmem:[#allocation2 + $0x30] sm:$0xf0] }
 0x36b   :  { %3074 = vst [vmem:[#allocation5 + $0x2c4] sm:$0xff] %v2946_v46  ;;  %v5174_v14 = vadd.f32 %v2205_v8, %v2117_v57  ;;  %4072 = vtanh.f32 %v5073_v6  ;;  %v3275_v59 = vor.u32 %v3726_v52, %v3274_v0  ;;  %v3498_v46 = vld [vmem:[#allocation2 + $0x1d8] sm:$0xf]  ;;  %v3782_v57 = vld [vmem:[#allocation2 + $0x1f0] sm:$0xf0] }
 0x36d   :  { %v1985_v31 = vpop.f32.mrf.mxu0  ;;  %2450 = vmatpush.bf16.msrb.mxu2 %v3275_v59 }
 0x36e   :  { %v1986_v43 = vadd.f32 %v1985_v31, %v4973_v42  ;;  %v2074_v18 = vpop.f32.mrf.mxu1  ;;  %v5465_v31 = vld [vmem:[#allocation14_spill] sm:$0xff] }
 0x370   :  { %v4071_v44 = vpop.eup %4070  ;;  %v2075_v60 = vadd.f32 %v2074_v18, %v1986_v43  ;;  %v2118_v5 = vpop.f32.mrf.mxu2  ;;  %v3499_v43 = vor.u32 %v3782_v57, %v3498_v46 }
 0x371   :  { %v2950_v10 = vpack.c.bf16 %v4071_v44, %v4069_v16  ;;  %v2119_v53 = vadd.f32 %v2118_v5, %v5110_v62  ;;  %v2207_v19 = vpop.f32.mrf.mxu3  ;;  %v5466_v16 = vld [vmem:[#allocation15_spill] sm:$0xff]  ;;  %v4073_v44 = vpop.eup %4072 }
 0x372   :  { %4074 = vtanh.f32 %v2075_v60  ;;  %2539 = vmatpush.bf16.msrb.mxu3 %v3499_v43 }
 0x373   :  { %3078 = vst [vmem:[#allocation5 + $0x2e0] sm:$0xff] %v2950_v10  ;;  %v5179_v38 = vadd.f32 %v2207_v19, %v2119_v53  ;;  %4076 = vtanh.f32 %v5082_v63 }
 0x375   :  { %v1988_v8 = vpop.f32.mrf.mxu0  ;;  %2160 = vmatmul.bf16.gmra.mxu2 %v5465_v31 }
 0x376   :  { %v1989_v18 = vadd.f32 %v1988_v8, %v4973_v42  ;;  %v2077_v6 = vpop.f32.mrf.mxu1  ;;  %2249 = vmatmul.bf16.gmra.mxu3 %v5466_v16 }
 0x378   :  { %v4075_v60 = vpop.eup %4074  ;;  %v2078_v5 = vadd.f32 %v2077_v6, %v1989_v18  ;;  %v2121_v10 = vpop.f32.mrf.mxu2  ;;  %2303 = vmatmul.bf16.gmra.mxu0 %v5459_v9 }
 0x379   :  { %v2954_v53 = vpack.c.bf16 %v4075_v60, %v4073_v44  ;;  %v2122_v19 = vadd.f32 %v2121_v10, %v5110_v62  ;;  %v2210_v0 = vpop.f32.mrf.mxu3  ;;  %2392 = vmatmul.bf16.gmra.mxu1 %v5460_v36  ;;  %v4077_v8 = vpop.eup %4076 }
 0x37a   :  { %4078 = vtanh.f32 %v2078_v5 }
 0x37b   :  { %3082 = vst [vmem:[#allocation5 + $0x2fc] sm:$0xff] %v2954_v53  ;;  %v5188_v52 = vadd.f32 %v2210_v0, %v2122_v19  ;;  %4080 = vtanh.f32 %v5087_v15 }
 0x37d   :  { %v1990_v59 = vpop.f32.mrf.mxu0 }
 0x37e   :  { %v1991_v46 = vadd.f32 %v1990_v59, %v4973_v42  ;;  %v2079_v57 = vpop.f32.mrf.mxu1 }
 0x380   :  { %v4079_v43 = vpop.eup %4078  ;;  %v2080_v18 = vadd.f32 %v2079_v57, %v1991_v46  ;;  %v2123_v6 = vpop.f32.mrf.mxu2 }
 0x381   :  { %v2958_v63 = vpack.c.bf16 %v4079_v43, %v4077_v8  ;;  %v2124_v44 = vadd.f32 %v2123_v6, %v5110_v62  ;;  %v2212_v60 = vpop.f32.mrf.mxu3  ;;  %v4081_v0 = vpop.eup %4080 }
 0x382   :  { %4082 = vtanh.f32 %v2080_v18 }
 0x383   :  { %3086 = vst [vmem:[#allocation5 + $0x318] sm:$0xff] %v2958_v63  ;;  %v5193_v5 = vadd.f32 %v2212_v60, %v2124_v44  ;;  %4084 = vtanh.f32 %v5096_v21 }
 0x385   :  { %v1993_v10 = vpop.f32.mrf.mxu0  ;;  %2165 = vmatmul.bf16.gmra.mxu2 %v4715_v12 }
 0x386   :  { %v1994_v53 = vadd.f32 %v1993_v10, %v4973_v42  ;;  %v2082_v19 = vpop.f32.mrf.mxu1  ;;  %2254 = vmatmul.bf16.gmra.mxu3 %v5458_v40 }
 0x388   :  { %v4083_v59 = vpop.eup %4082  ;;  %v2083_v46 = vadd.f32 %v2082_v19, %v1994_v53  ;;  %v2126_v15 = vpop.f32.mrf.mxu2  ;;  %2308 = vmatmul.bf16.gmra.mxu0 %v5461_v41 }
 0x389   :  { %v2962_v57 = vpack.c.bf16 %v4083_v59, %v4081_v0  ;;  %v2127_v8 = vadd.f32 %v2126_v15, %v5110_v62  ;;  %v2215_v43 = vpop.f32.mrf.mxu3  ;;  %2397 = vmatmul.bf16.gmra.mxu1 %v5462_v2  ;;  %v4085_v60 = vpop.eup %4084 }
 0x38a   :  { %4086 = vtanh.f32 %v2083_v46  ;;  %v5208_v46 = vperm.slane %v5107_v28, 5 }
 0x38b   :  { %3090 = vst [vmem:[#allocation5 + $0x334] sm:$0xff] %v2962_v57  ;;  %v5202_v18 = vadd.f32 %v2215_v43, %v2127_v8  ;;  %4088 = vtanh.f32 %v5101_v33 }
 0x38d   :  { %v1995_v6 = vpop.f32.mrf.mxu0 }
 0x38e   :  { %v1996_v63 = vadd.f32 %v1995_v6, %v4973_v42  ;;  %v2084_v44 = vpop.f32.mrf.mxu1 }
 0x390   :  { %v4087_v10 = vpop.eup %4086  ;;  %v2085_v53 = vadd.f32 %v2084_v44, %v1996_v63  ;;  %v2128_v19 = vpop.f32.mrf.mxu2 }
 0x391   :  { %v2966_v21 = vpack.c.bf16 %v4087_v10, %v4085_v60  ;;  %v2129_v0 = vadd.f32 %v2128_v19, %v5110_v62  ;;  %v2217_v59 = vpop.f32.mrf.mxu3  ;;  %v4089_v33 = vpop.eup %4088 }
 0x392   :  { %4090 = vtanh.f32 %v2085_v53 }
 0x393   :  { %3094 = vst [vmem:[#allocation5 + $0x350] sm:$0xff] %v2966_v21  ;;  %v5210_v15 = vadd.f32 %v2217_v59, %v2129_v0  ;;  %4092 = vtanh.f32 %v5118_v13 }
 0x395   :  { %2170 = vmatmul.bf16.gmra.mxu2 %v4736_v32  ;;  %v2274_v42 = vpop.f32.mrf.mxu0 }
 0x396   :  { %2259 = vmatmul.bf16.gmra.mxu3 %v4740_v55  ;;  %v2275_v57 = vadd.f32 %v2274_v42, %v5208_v46  ;;  %v2363_v8 = vpop.f32.mrf.mxu1 }
 0x398   :  { %v4091_v43 = vpop.eup %4090  ;;  %v2364_v6 = vadd.f32 %v2363_v8, %v2275_v57  ;;  %v2131_v63 = vpop.f32.mrf.mxu2  ;;  %2313 = vmatmul.bf16.gmra.mxu0 %v4606_v45 }
 0x399   :  { %v2970_v28 = vpack.c.bf16 %v4091_v43, %v4089_v33  ;;  %v2132_v44 = vadd.f32 %v2131_v63, %v5110_v62  ;;  %v2220_v60 = vpop.f32.mrf.mxu3  ;;  %2402 = vmatmul.bf16.gmra.mxu1 %v4608_v48  ;;  %v4093_v0 = vpop.eup %4092 }
 0x39a   :  { %4094 = vtanh.f32 %v2364_v6 }
 0x39b   :  { %3098 = vst [vmem:[#allocation5 + $0x36c] sm:$0xff] %v2970_v28  ;;  %v5219_v10 = vadd.f32 %v2220_v60, %v2132_v44  ;;  %4096 = vtanh.f32 %v5123_v27 }
 0x39d   :  { %v2276_v53 = vpop.f32.mrf.mxu0 }
 0x39e   :  { %v2277_v19 = vadd.f32 %v2276_v53, %v5208_v46  ;;  %v2365_v21 = vpop.f32.mrf.mxu1 }
 0x3a0   :  { %v4095_v59 = vpop.eup %4094  ;;  %v2366_v42 = vadd.f32 %v2365_v21, %v2277_v19  ;;  %v2133_v57 = vpop.f32.mrf.mxu2 }
 0x3a1   :  { %v2847_v13 = vpack.c.bf16 %v4095_v59, %v4093_v0  ;;  %v2134_v8 = vadd.f32 %v2133_v57, %v5110_v62  ;;  %v2222_v33 = vpop.f32.mrf.mxu3  ;;  %v4097_v44 = vpop.eup %4096 }
 0x3a2   :  { %4098 = vtanh.f32 %v2366_v42 }
 0x3a3   :  { %2975 = vst [vmem:[#allocation5 + $0x10] sm:$0xff] %v2847_v13  ;;  %v5224_v43 = vadd.f32 %v2222_v33, %v2134_v8  ;;  %4100 = vtanh.f32 %v5132_v34 }
 0x3a5   :  { %v2279_v6 = vpop.f32.mrf.mxu0  ;;  %2451 = vmatmul.bf16.vlgmr.msrb.gmra.mxu2 %v4483_v47 }
 0x3a6   :  { %v2280_v63 = vadd.f32 %v2279_v6, %v5208_v46  ;;  %v2368_v28 = vpop.f32.mrf.mxu1  ;;  %2540 = vmatmul.bf16.vlgmr.msrb.gmra.mxu3 %v4485_v49 }
 0x3a8   :  { %v4099_v60 = vpop.eup %4098  ;;  %v2369_v53 = vadd.f32 %v2368_v28, %v2280_v63  ;;  %v2136_v27 = vpop.f32.mrf.mxu2  ;;  %2318 = vmatmul.bf16.gmra.mxu0 %v4625_v24 }
 0x3a9   :  { %v2851_v19 = vpack.c.bf16 %v4099_v60, %v4097_v44  ;;  %v2137_v21 = vadd.f32 %v2136_v27, %v5110_v62  ;;  %v2225_v0 = vpop.f32.mrf.mxu3  ;;  %2407 = vmatmul.bf16.gmra.mxu1 %v4629_v29  ;;  %v4101_v57 = vpop.eup %4100 }
 0x3aa   :  { %4102 = vtanh.f32 %v2369_v53 }
 0x3ab   :  { %2979 = vst [vmem:[#allocation5 + $0x2c] sm:$0xff] %v2851_v19  ;;  %v5233_v47 = vadd.f32 %v2225_v0, %v2137_v21  ;;  %4104 = vtanh.f32 %v5137_v17 }
 0x3ad   :  { %v2281_v59 = vpop.f32.mrf.mxu0 }
 0x3ae   :  { %v2282_v49 = vadd.f32 %v2281_v59, %v5208_v46  ;;  %v2370_v42 = vpop.f32.mrf.mxu1 }
 0x3b0   :  { %v4103_v13 = vpop.eup %4102  ;;  %v2371_v8 = vadd.f32 %v2370_v42, %v2282_v49  ;;  %v2138_v33 = vpop.f32.mrf.mxu2 }
 0x3b1   :  { %v2855_v34 = vpack.c.bf16 %v4103_v13, %v4101_v57  ;;  %v2139_v6 = vadd.f32 %v2138_v33, %v5110_v62  ;;  %v2227_v63 = vpop.f32.mrf.mxu3  ;;  %v4105_v27 = vpop.eup %4104 }
 0x3b2   :  { %4106 = vtanh.f32 %v2371_v8 }
 0x3b3   :  { %2983 = vst [vmem:[#allocation5 + $0x48] sm:$0xff] %v2855_v34  ;;  %v5238_v28 = vadd.f32 %v2227_v63, %v2139_v6  ;;  %4108 = vtanh.f32 %v5146_v23 }
 0x3b5   :  { %v2284_v44 = vpop.f32.mrf.mxu0  ;;  %2456 = vmatmul.bf16.gmra.mxu2 %v4498_v11 }
 0x3b6   :  { %v2285_v60 = vadd.f32 %v2284_v44, %v5208_v46  ;;  %v2373_v53 = vpop.f32.mrf.mxu1  ;;  %2545 = vmatmul.bf16.gmra.mxu3 %v5463_v39 }
 0x3b8   :  { %v4107_v19 = vpop.eup %4106  ;;  %v2374_v21 = vadd.f32 %v2373_v53, %v2285_v60  ;;  %v2141_v17 = vpop.f32.mrf.mxu2  ;;  %2323 = vmatmul.bf16.gmra.mxu0 %v4643_v4 }
 0x3b9   :  { %v2859_v0 = vpack.c.bf16 %v4107_v19, %v4105_v27  ;;  %v2142_v59 = vadd.f32 %v2141_v17, %v5110_v62  ;;  %v2230_v49 = vpop.f32.mrf.mxu3  ;;  %2412 = vmatmul.bf16.gmra.mxu1 %v4647_v7  ;;  %v4109_v13 = vpop.eup %4108 }
 0x3ba   :  { %4110 = vtanh.f32 %v2374_v21 }
 0x3bb   :  { %2987 = vst [vmem:[#allocation5 + $0x64] sm:$0xff] %v2859_v0  ;;  %v5247_v11 = vadd.f32 %v2230_v49, %v2142_v59  ;;  %4112 = vtanh.f32 %v5151_v58 }
 0x3bd   :  { %v2286_v42 = vpop.f32.mrf.mxu0 }
 0x3be   :  { %v2287_v39 = vadd.f32 %v2286_v42, %v5208_v46  ;;  %v2375_v57 = vpop.f32.mrf.mxu1 }
 0x3c0   :  { %v4111_v8 = vpop.eup %4110  ;;  %v2376_v33 = vadd.f32 %v2375_v57, %v2287_v39  ;;  %v2143_v34 = vpop.f32.mrf.mxu2 }
 0x3c1   :  { %v2863_v23 = vpack.c.bf16 %v4111_v8, %v4109_v13  ;;  %v2144_v6 = vadd.f32 %v2143_v34, %v5110_v62  ;;  %v2232_v63 = vpop.f32.mrf.mxu3  ;;  %v4113_v19 = vpop.eup %4112 }
 0x3c2   :  { %4114 = vtanh.f32 %v2376_v33 }
 0x3c3   :  { %2991 = vst [vmem:[#allocation5 + $0x80] sm:$0xff] %v2863_v23  ;;  %v5252_v44 = vadd.f32 %v2232_v63, %v2144_v6  ;;  %4116 = vtanh.f32 %v5160_v51 }
 0x3c5   :  { %v2289_v60 = vpop.f32.mrf.mxu0  ;;  %2461 = vmatmul.bf16.gmra.mxu2 %v4513_v35 }
 0x3c6   :  { %v2290_v53 = vadd.f32 %v2289_v60, %v5208_v46  ;;  %v2378_v27 = vpop.f32.mrf.mxu1  ;;  %2550 = vmatmul.bf16.gmra.mxu3 %v4515_v37 }
 0x3c8   :  { %v4115_v21 = vpop.eup %4114  ;;  %v2379_v17 = vadd.f32 %v2378_v27, %v2290_v53  ;;  %v2146_v58 = vpop.f32.mrf.mxu2  ;;  %2328 = vmatmul.bf16.gmra.mxu0 %v4661_v61 }
 0x3c9   :  { %v2867_v0 = vpack.c.bf16 %v4115_v21, %v4113_v19  ;;  %v2147_v59 = vadd.f32 %v2146_v58, %v5110_v62  ;;  %v2235_v49 = vpop.f32.mrf.mxu3  ;;  %2417 = vmatmul.bf16.gmra.mxu1 %v5464_v22  ;;  %v4117_v57 = vpop.eup %4116 }
 0x3ca   :  { %4118 = vtanh.f32 %v2379_v17 }
 0x3cb   :  { %2995 = vst [vmem:[#allocation5 + $0x9c] sm:$0xff] %v2867_v0  ;;  %v5261_v35 = vadd.f32 %v2235_v49, %v2147_v59  ;;  %4120 = vtanh.f32 %v5165_v54 }
 0x3cd   :  { %v2291_v42 = vpop.f32.mrf.mxu0 }
 0x3ce   :  { %v2292_v37 = vadd.f32 %v2291_v42, %v5208_v46  ;;  %v2380_v39 = vpop.f32.mrf.mxu1 }
 0x3d0   :  { %v4119_v13 = vpop.eup %4118  ;;  %v2381_v8 = vadd.f32 %v2380_v39, %v2292_v37  ;;  %v2148_v33 = vpop.f32.mrf.mxu2 }
 0x3d1   :  { %v2871_v51 = vpack.c.bf16 %v4119_v13, %v4117_v57  ;;  %v2149_v34 = vadd.f32 %v2148_v33, %v5110_v62  ;;  %v2237_v23 = vpop.f32.mrf.mxu3  ;;  %v4121_v27 = vpop.eup %4120 }
 0x3d2   :  { %4122 = vtanh.f32 %v2381_v8 }
 0x3d3   :  { %2999 = vst [vmem:[#allocation5 + $0xb8] sm:$0xff] %v2871_v51  ;;  %v5266_v6 = vadd.f32 %v2237_v23, %v2149_v34  ;;  %4124 = vtanh.f32 %v5174_v14 }
 0x3d5   :  { %v2294_v63 = vpop.f32.mrf.mxu0  ;;  %2466 = vmatmul.bf16.gmra.mxu2 %v4528_v1 }
 0x3d6   :  { %v2295_v60 = vadd.f32 %v2294_v63, %v5208_v46  ;;  %v2383_v53 = vpop.f32.mrf.mxu1  ;;  %2555 = vmatmul.bf16.gmra.mxu3 %v4530_v3 }
 0x3d8   :  { %v4123_v19 = vpop.eup %4122  ;;  %v2384_v21 = vadd.f32 %v2383_v53, %v2295_v60  ;;  %v2151_v54 = vpop.f32.mrf.mxu2  ;;  %2333 = vmatmul.bf16.gmra.mxu0 %v4679_v50 }
 0x3d9   :  { %v2875_v17 = vpack.c.bf16 %v4123_v19, %v4121_v27  ;;  %v2152_v58 = vadd.f32 %v2151_v54, %v5110_v62  ;;  %v2240_v0 = vpop.f32.mrf.mxu3  ;;  %2422 = vmatmul.bf16.gmra.mxu1 %v4683_v56  ;;  %v4125_v42 = vpop.eup %4124 }
 0x3da   :  { %4126 = vtanh.f32 %v2384_v21 }
 0x3db   :  { %3003 = vst [vmem:[#allocation5 + $0xd4] sm:$0xff] %v2875_v17  ;;  %v5275_v1 = vadd.f32 %v2240_v0, %v2152_v58  ;;  %4128 = vtanh.f32 %v5179_v38 }
 0x3dd   :  { %v2296_v59 = vpop.f32.mrf.mxu0 }
 0x3de   :  { %v2297_v3 = vadd.f32 %v2296_v59, %v5208_v46  ;;  %v2385_v49 = vpop.f32.mrf.mxu1 }
 0x3e0   :  { %v4127_v37 = vpop.eup %4126  ;;  %v2386_v39 = vadd.f32 %v2385_v49, %v2297_v3  ;;  %v2153_v57 = vpop.f32.mrf.mxu2 }
 0x3e1   :  { %v2879_v14 = vpack.c.bf16 %v4127_v37, %v4125_v42  ;;  %v2154_v13 = vadd.f32 %v2153_v57, %v5110_v62  ;;  %v2242_v8 = vpop.f32.mrf.mxu3  ;;  %v4129_v63 = vpop.eup %4128 }
 0x3e2   :  { %4130 = vtanh.f32 %v2386_v39 }
 0x3e3   :  { %3007 = vst [vmem:[#allocation5 + $0xf0] sm:$0xff] %v2879_v14  ;;  %v5280_v33 = vadd.f32 %v2242_v8, %v2154_v13  ;;  %4132 = vtanh.f32 %v5188_v52 }
 0x3e5   :  { %v2299_v51 = vpop.f32.mrf.mxu0  ;;  %2471 = vmatmul.bf16.gmra.mxu2 %v4543_v25 }
 0x3e6   :  { %v2300_v34 = vadd.f32 %v2299_v51, %v5208_v46  ;;  %v2388_v23 = vpop.f32.mrf.mxu1  ;;  %2560 = vmatmul.bf16.gmra.mxu3 %v4545_v30 }
 0x3e8   :  { %v4131_v60 = vpop.eup %4130  ;;  %v2389_v53 = vadd.f32 %v2388_v23, %v2300_v34  ;;  %v2156_v38 = vpop.f32.mrf.mxu2  ;;  %2338 = vmatmul.bf16.gmra.mxu0 %v5465_v31 }
 0x3e9   :  { %v2883_v27 = vpack.c.bf16 %v4131_v60, %v4129_v63  ;;  %v2157_v19 = vadd.f32 %v2156_v38, %v5110_v62  ;;  %v2245_v21 = vpop.f32.mrf.mxu3  ;;  %2427 = vmatmul.bf16.gmra.mxu1 %v5466_v16  ;;  %v4133_v58 = vpop.eup %4132 }
 0x3ea   :  { %4134 = vtanh.f32 %v2389_v53 }
 0x3eb   :  { %3011 = vst [vmem:[#allocation5 + $0x10c] sm:$0xff] %v2883_v27  ;;  %v5289_v25 = vadd.f32 %v2245_v21, %v2157_v19  ;;  %4136 = vtanh.f32 %v5193_v5 }
 0x3ed   :  { %v2301_v54 = vpop.f32.mrf.mxu0 }
 0x3ee   :  { %v2302_v30 = vadd.f32 %v2301_v54, %v5208_v46  ;;  %v2390_v17 = vpop.f32.mrf.mxu1 }
 0x3f0   :  { %v4135_v0 = vpop.eup %4134  ;;  %v2391_v59 = vadd.f32 %v2390_v17, %v2302_v30  ;;  %v2158_v3 = vpop.f32.mrf.mxu2 }
 0x3f1   :  { %v2887_v52 = vpack.c.bf16 %v4135_v0, %v4133_v58  ;;  %v2159_v49 = vadd.f32 %v2158_v3, %v5110_v62  ;;  %v2247_v42 = vpop.f32.mrf.mxu3  ;;  %v4137_v13 = vpop.eup %4136 }
 0x3f2   :  { %4138 = vtanh.f32 %v2391_v59 }
 0x3f3   :  { %3015 = vst [vmem:[#allocation5 + $0x128] sm:$0xff] %v2887_v52  ;;  %v5294_v37 = vadd.f32 %v2247_v42, %v2159_v49  ;;  %4140 = vtanh.f32 %v5202_v18 }
 0x3f5   :  { %v2304_v39 = vpop.f32.mrf.mxu0  ;;  %2476 = vmatmul.bf16.gmra.mxu2 %v4559_v20 }
 0x3f6   :  { %v2305_v57 = vadd.f32 %v2304_v39, %v5208_v46  ;;  %v2393_v14 = vpop.f32.mrf.mxu1  ;;  %2565 = vmatmul.bf16.gmra.mxu3 %v4561_v26 }
 0x3f8   :  { %v4139_v8 = vpop.eup %4138  ;;  %v2394_v51 = vadd.f32 %v2393_v14, %v2305_v57  ;;  %v2161_v5 = vpop.f32.mrf.mxu2  ;;  %2343 = vmatmul.bf16.gmra.mxu0 %v4715_v12 }
 0x3f9   :  { %v2891_v34 = vpack.c.bf16 %v4139_v8, %v4137_v13  ;;  %v2162_v23 = vadd.f32 %v2161_v5, %v5110_v62  ;;  %v2250_v63 = vpop.f32.mrf.mxu3  ;;  %2432 = vmatmul.bf16.gmra.mxu1 %v5458_v40  ;;  %v4141_v38 = vpop.eup %4140 }
 0x3fa   :  { %4142 = vtanh.f32 %v2394_v51 }
 0x3fb   :  { %3019 = vst [vmem:[#allocation5 + $0x144] sm:$0xff] %v2891_v34  ;;  %v5303_v20 = vadd.f32 %v2250_v63, %v2162_v23  ;;  %4144 = vtanh.f32 %v5210_v15 }
 0x3fd   :  { %v2306_v60 = vpop.f32.mrf.mxu0 }
 0x3fe   :  { %v2307_v26 = vadd.f32 %v2306_v60, %v5208_v46  ;;  %v2395_v53 = vpop.f32.mrf.mxu1 }
 0x400   :  { %v4143_v27 = vpop.eup %4142  ;;  %v2396_v19 = vadd.f32 %v2395_v53, %v2307_v26  ;;  %v2163_v21 = vpop.f32.mrf.mxu2 }
 0x401   :  { %v2895_v18 = vpack.c.bf16 %v4143_v27, %v4141_v38  ;;  %v2164_v54 = vadd.f32 %v2163_v21, %v5110_v62  ;;  %v2252_v30 = vpop.f32.mrf.mxu3  ;;  %v4145_v3 = vpop.eup %4144 }
 0x402   :  { %4146 = vtanh.f32 %v2396_v19 }
 0x403   :  { %3023 = vst [vmem:[#allocation5 + $0x160] sm:$0xff] %v2895_v18  ;;  %v5308_v17 = vadd.f32 %v2252_v30, %v2164_v54  ;;  %4148 = vtanh.f32 %v5219_v10 }
 0x405   :  { %v2309_v58 = vpop.f32.mrf.mxu0  ;;  %2481 = vmatmul.bf16.gmra.mxu2 %v5459_v9 }
 0x406   :  { %v2310_v0 = vadd.f32 %v2309_v58, %v5208_v46  ;;  %v2398_v59 = vpop.f32.mrf.mxu1  ;;  %2570 = vmatmul.bf16.gmra.mxu3 %v5460_v36 }
 0x408   :  { %v4147_v52 = vpop.eup %4146  ;;  %v2399_v49 = vadd.f32 %v2398_v59, %v2310_v0  ;;  %v2166_v15 = vpop.f32.mrf.mxu2  ;;  %2348 = vmatmul.bf16.gmra.mxu0 %v4736_v32 }
 0x409   :  { %v2899_v42 = vpack.c.bf16 %v4147_v52, %v4145_v3  ;;  %v2167_v39 = vadd.f32 %v2166_v15, %v5110_v62  ;;  %v2255_v57 = vpop.f32.mrf.mxu3  ;;  %2437 = vmatmul.bf16.gmra.mxu1 %v4740_v55  ;;  %v4149_v8 = vpop.eup %4148 }
 0x40a   :  { %4150 = vtanh.f32 %v2399_v49 }
 0x40b   :  { %3027 = vst [vmem:[#allocation5 + $0x17c] sm:$0xff] %v2899_v42  ;;  %v5317_v9 = vadd.f32 %v2255_v57, %v2167_v39  ;;  %4152 = vtanh.f32 %v5224_v43 }
 0x40d   :  { %v2311_v14 = vpop.f32.mrf.mxu0 }
 0x40e   :  { %v2312_v36 = vadd.f32 %v2311_v14, %v5208_v46  ;;  %v2400_v13 = vpop.f32.mrf.mxu1  ;;  %v4286_v14 = vld [vmem:[%s5427_s4] sm:$0xff]  ;;  %s4342_s4 = smov [#allocation5]  }
 0x40f   :  { %s3105_s21 = sshll.u32 %s4342_s4, 4  ;;  %s3106_s21 = int_to_ptr.vmem [resolvable:$true] %s3105_s21 }
 0x410   :  { %v4151_v51 = vpop.eup %4150  ;;  %v2401_v5 = vadd.f32 %v2400_v13, %v2312_v36  ;;  %v2168_v34 = vpop.f32.mrf.mxu2  ;;  %v5340_v36 = vperm.slane %v4286_v14, 6 }
 0x411   :  { %v2903_v10 = vpack.c.bf16 %v4151_v51, %v4149_v8  ;;  %v2169_v23 = vadd.f32 %v2168_v34, %v5110_v62  ;;  %v2257_v63 = vpop.f32.mrf.mxu3  ;;  %v4153_v27 = vpop.eup %4152 }
 0x412   :  { %4154 = vtanh.f32 %v2401_v5 }
 0x413   :  { %3031 = vst [vmem:[#allocation5 + $0x198] sm:$0xff] %v2903_v10  ;;  %v5322_v60 = vadd.f32 %v2257_v63, %v2169_v23  ;;  %4156 = vtanh.f32 %v5233_v47 }
 0x415   :  { %v2314_v26 = vpop.f32.mrf.mxu0  ;;  %2486 = vmatmul.bf16.gmra.mxu2 %v5461_v41 }
 0x416   :  { %v2315_v53 = vadd.f32 %v2314_v26, %v5208_v46  ;;  %v2403_v38 = vpop.f32.mrf.mxu1  ;;  %2575 = vmatmul.bf16.gmra.mxu3 %v5462_v2 }
 0x418   :  { %v4155_v19 = vpop.eup %4154  ;;  %v2404_v21 = vadd.f32 %v2403_v38, %v2315_v53  ;;  %v2171_v43 = vpop.f32.mrf.mxu2 }
 0x419   :  { %v2907_v18 = vpack.c.bf16 %v4155_v19, %v4153_v27  ;;  %v2172_v54 = vadd.f32 %v2171_v43, %v5110_v62  ;;  %v2260_v30 = vpop.f32.mrf.mxu3  ;;  %v4157_v3 = vpop.eup %4156 }
 0x41a   :  { %4158 = vtanh.f32 %v2404_v21 }
 0x41b   :  { %3035 = vst [vmem:[#allocation5 + $0x1b4] sm:$0xff] %v2907_v18  ;;  %v5329_v58 = vadd.f32 %v2260_v30, %v2172_v54  ;;  %4160 = vtanh.f32 %v5238_v28 }
 0x41d   :  { %v2316_v41 = vpop.f32.mrf.mxu0 }
 0x41e   :  { %v2317_v0 = vadd.f32 %v2316_v41, %v5208_v46  ;;  %v2405_v59 = vpop.f32.mrf.mxu1 }
 0x420   :  { %v4159_v2 = vpop.eup %4158  ;;  %v2406_v52 = vadd.f32 %v2405_v59, %v2317_v0  ;;  %v2173_v49 = vpop.f32.mrf.mxu2 }
 0x421   :  { %v2911_v15 = vpack.c.bf16 %v4159_v2, %v4157_v3  ;;  %v2174_v47 = vadd.f32 %v2173_v49, %v5110_v62  ;;  %v2262_v42 = vpop.f32.mrf.mxu3  ;;  %v4161_v62 = vpop.eup %4160 }
 0x422   :  { %4162 = vtanh.f32 %v2406_v52 }
 0x423   :  { %3039 = vst [vmem:[#allocation5 + $0x1d0] sm:$0xff] %v2911_v15  ;;  %v5334_v39 = vadd.f32 %v2262_v42, %v2174_v47  ;;  %4164 = vtanh.f32 %v5247_v11 }
 0x425   :  { %v2319_v57 = vpop.f32.mrf.mxu0  ;;  %2491 = vmatmul.bf16.gmra.mxu2 %v4606_v45 }
 0x426   :  { %v2320_v13 = vadd.f32 %v2319_v57, %v5208_v46  ;;  %v2408_v28 = vpop.f32.mrf.mxu1  ;;  %2580 = vmatmul.bf16.gmra.mxu3 %v4608_v48 }
 0x428   :  { %v4163_v8 = vpop.eup %4162  ;;  %v2409_v51 = vadd.f32 %v2408_v28, %v2320_v13  ;;  %v2452_v5 = vpop.f32.mrf.mxu2 }
 0x429   :  { %v2915_v34 = vpack.c.bf16 %v4163_v8, %v4161_v62  ;;  %v2453_v45 = vadd.f32 %v2452_v5, %v5340_v36  ;;  %v2541_v10 = vpop.f32.mrf.mxu3  ;;  %v4165_v38 = vpop.eup %4164 }
 0x42a   :  { %4166 = vtanh.f32 %v2409_v51 }
 0x42b   :  { %3043 = vst [vmem:[#allocation5 + $0x1ec] sm:$0xff] %v2915_v34  ;;  %v2542_v23 = vadd.f32 %v2541_v10, %v2453_v45 }
 0x42d   :  { %4168 = vtanh.f32 %v2542_v23  ;;  %v2321_v63 = vpop.f32.mrf.mxu0 }
 0x42e   :  { %v2322_v26 = vadd.f32 %v2321_v63, %v5208_v46  ;;  %v2410_v53 = vpop.f32.mrf.mxu1  ;;  %4170 = vtanh.f32 %v5252_v44 }
 0x430   :  { %v4167_v48 = vpop.eup %4166  ;;  %v2411_v27 = vadd.f32 %v2410_v53, %v2322_v26  ;;  %v2454_v19 = vpop.f32.mrf.mxu2 }
 0x431   :  { %v2919_v21 = vpack.c.bf16 %v4167_v48, %v4165_v38  ;;  %v2455_v11 = vadd.f32 %v2454_v19, %v5340_v36  ;;  %v2543_v43 = vpop.f32.mrf.mxu3 }
 0x432   :  { %4172 = vtanh.f32 %v2411_v27 }
 0x433   :  { %v4169_v18 = vpop.eup %4168  ;;  %3047 = vst [vmem:[#allocation5 + $0x208] sm:$0xff] %v2919_v21  ;;  %v2544_v54 = vadd.f32 %v2543_v43, %v2455_v11 }
 0x434   :  { %v2848_v30 = vpack.c.bf16 %v4169_v18, %v4169_v18  ;;  %v4171_v44 = vpop.eup %4170 }
 0x435   :  { %4174 = vtanh.f32 %v2544_v54  ;;  %v2324_v41 = vpop.f32.mrf.mxu0  ;;  %2496 = vmatmul.bf16.gmra.mxu2 %v4625_v24 }
 0x436   :  { %2976 = vst [vmem:[#allocation5 + $0x18] sm:$0xf] %v2848_v30  ;;  %v2325_v0 = vadd.f32 %v2324_v41, %v5208_v46  ;;  %v2413_v59 = vpop.f32.mrf.mxu1  ;;  %2585 = vmatmul.bf16.gmra.mxu3 %v4629_v29  ;;  %4176 = vtanh.f32 %v5261_v35 }
 0x438   :  { %v4173_v3 = vpop.eup %4172  ;;  %v2414_v2 = vadd.f32 %v2413_v59, %v2325_v0  ;;  %v2457_v52 = vpop.f32.mrf.mxu2 }
 0x439   :  { %v2923_v49 = vpack.c.bf16 %v4173_v3, %v4171_v44  ;;  %v2458_v15 = vadd.f32 %v2457_v52, %v5340_v36  ;;  %v2546_v47 = vpop.f32.mrf.mxu3 }
 0x43a   :  { %4178 = vtanh.f32 %v2414_v2 }
 0x43b   :  { %v4175_v42 = vpop.eup %4174  ;;  %3051 = vst [vmem:[#allocation5 + $0x224] sm:$0xff] %v2923_v49  ;;  %v2547_v24 = vadd.f32 %v2546_v47, %v2458_v15 }
 0x43c   :  { %v2852_v57 = vpack.c.bf16 %v4175_v42, %v4175_v42  ;;  %v4177_v28 = vpop.eup %4176 }
 0x43d   :  { %4180 = vtanh.f32 %v2547_v24  ;;  %v2326_v14 = vpop.f32.mrf.mxu0 }
 0x43e   :  { %2980 = vst [vmem:[#allocation5 + $0x34] sm:$0xf] %v2852_v57  ;;  %v2327_v29 = vadd.f32 %v2326_v14, %v5208_v46  ;;  %v2415_v13 = vpop.f32.mrf.mxu1  ;;  %4182 = vtanh.f32 %v5266_v6 }
 0x440   :  { %v4179_v62 = vpop.eup %4178  ;;  %v2416_v8 = vadd.f32 %v2415_v13, %v2327_v29  ;;  %v2459_v51 = vpop.f32.mrf.mxu2 }
 0x441   :  { %v2927_v35 = vpack.c.bf16 %v4179_v62, %v4177_v28  ;;  %v2460_v5 = vadd.f32 %v2459_v51, %v5340_v36  ;;  %v2548_v34 = vpop.f32.mrf.mxu3 }
 0x442   :  { %4184 = vtanh.f32 %v2416_v8 }
 0x443   :  { %v4181_v45 = vpop.eup %4180  ;;  %3055 = vst [vmem:[#allocation5 + $0x240] sm:$0xff] %v2927_v35  ;;  %v2549_v10 = vadd.f32 %v2548_v34, %v2460_v5 }
 0x444   :  { %v2856_v23 = vpack.c.bf16 %v4181_v45, %v4181_v45  ;;  %v4183_v6 = vpop.eup %4182 }
 0x445   :  { %4186 = vtanh.f32 %v2549_v10  ;;  %v2329_v63 = vpop.f32.mrf.mxu0  ;;  %2501 = vmatmul.bf16.gmra.mxu2 %v4643_v4 }
 0x446   :  { %2984 = vst [vmem:[#allocation5 + $0x50] sm:$0xf] %v2856_v23  ;;  %v2330_v26 = vadd.f32 %v2329_v63, %v5208_v46  ;;  %v2418_v53 = vpop.f32.mrf.mxu1  ;;  %2590 = vmatmul.bf16.gmra.mxu3 %v4647_v7  ;;  %4188 = vtanh.f32 %v5275_v1 }
 0x448   :  { %v4185_v38 = vpop.eup %4184  ;;  %v2419_v48 = vadd.f32 %v2418_v53, %v2330_v26  ;;  %v2462_v27 = vpop.f32.mrf.mxu2 }
 0x449   :  { %v2931_v19 = vpack.c.bf16 %v4185_v38, %v4183_v6  ;;  %v2463_v21 = vadd.f32 %v2462_v27, %v5340_v36  ;;  %v2551_v11 = vpop.f32.mrf.mxu3 }
 0x44a   :  { %4190 = vtanh.f32 %v2419_v48 }
 0x44b   :  { %v4187_v43 = vpop.eup %4186  ;;  %3059 = vst [vmem:[#allocation5 + $0x25c] sm:$0xff] %v2931_v19  ;;  %v2552_v4 = vadd.f32 %v2551_v11, %v2463_v21 }
 0x44c   :  { %v2860_v18 = vpack.c.bf16 %v4187_v43, %v4187_v43  ;;  %v4189_v41 = vpop.eup %4188 }
 0x44d   :  { %4192 = vtanh.f32 %v2552_v4  ;;  %v2331_v54 = vpop.f32.mrf.mxu0 }
 0x44e   :  { %2988 = vst [vmem:[#allocation5 + $0x6c] sm:$0xf] %v2860_v18  ;;  %v2332_v7 = vadd.f32 %v2331_v54, %v5208_v46  ;;  %v2420_v30 = vpop.f32.mrf.mxu1  ;;  %4194 = vtanh.f32 %v5280_v33 }
 0x450   :  { %v4191_v0 = vpop.eup %4190  ;;  %v2421_v59 = vadd.f32 %v2420_v30, %v2332_v7  ;;  %v2464_v44 = vpop.f32.mrf.mxu2 }
 0x451   :  { %v2935_v1 = vpack.c.bf16 %v4191_v0, %v4189_v41  ;;  %v2465_v3 = vadd.f32 %v2464_v44, %v5340_v36  ;;  %v2553_v2 = vpop.f32.mrf.mxu3 }
 0x452   :  { %4196 = vtanh.f32 %v2421_v59 }
 0x453   :  { %v4193_v52 = vpop.eup %4192  ;;  %3063 = vst [vmem:[#allocation5 + $0x278] sm:$0xff] %v2935_v1  ;;  %v2554_v49 = vadd.f32 %v2553_v2, %v2465_v3 }
 0x454   :  { %v2864_v15 = vpack.c.bf16 %v4193_v52, %v4193_v52  ;;  %v4195_v33 = vpop.eup %4194 }
 0x455   :  { %4198 = vtanh.f32 %v2554_v49  ;;  %v2334_v47 = vpop.f32.mrf.mxu0  ;;  %2506 = vmatmul.bf16.gmra.mxu2 %v4661_v61 }
 0x456   :  { %2992 = vst [vmem:[#allocation5 + $0x88] sm:$0xf] %v2864_v15  ;;  %v2335_v42 = vadd.f32 %v2334_v47, %v5208_v46  ;;  %v2423_v24 = vpop.f32.mrf.mxu1  ;;  %2595 = vmatmul.bf16.gmra.mxu3 %v5464_v22  ;;  %4200 = vtanh.f32 %v5289_v25 }
 0x458   :  { %v4197_v57 = vpop.eup %4196  ;;  %v2424_v14 = vadd.f32 %v2423_v24, %v2335_v42  ;;  %v2467_v29 = vpop.f32.mrf.mxu2 }
 0x459   :  { %v2939_v13 = vpack.c.bf16 %v4197_v57, %v4195_v33  ;;  %v2468_v28 = vadd.f32 %v2467_v29, %v5340_v36  ;;  %v2556_v62 = vpop.f32.mrf.mxu3 }
 0x45a   :  { %4202 = vtanh.f32 %v2424_v14 }
 0x45b   :  { %v4199_v8 = vpop.eup %4198  ;;  %3067 = vst [vmem:[#allocation5 + $0x294] sm:$0xff] %v2939_v13  ;;  %v2557_v61 = vadd.f32 %v2556_v62, %v2468_v28 }
 0x45c   :  { %v2868_v51 = vpack.c.bf16 %v4199_v8, %v4199_v8  ;;  %v4201_v34 = vpop.eup %4200 }
 0x45d   :  { %4204 = vtanh.f32 %v2557_v61  ;;  %v2336_v35 = vpop.f32.mrf.mxu0 }
 0x45e   :  { %2996 = vst [vmem:[#allocation5 + $0xa4] sm:$0xf] %v2868_v51  ;;  %v2337_v22 = vadd.f32 %v2336_v35, %v5208_v46  ;;  %v2425_v5 = vpop.f32.mrf.mxu1  ;;  %4206 = vtanh.f32 %v5294_v37 }
 0x460   :  { %v4203_v45 = vpop.eup %4202  ;;  %v2426_v10 = vadd.f32 %v2425_v5, %v2337_v22  ;;  %v2469_v23 = vpop.f32.mrf.mxu2 }
 0x461   :  { %v2943_v25 = vpack.c.bf16 %v4203_v45, %v4201_v34  ;;  %v2470_v63 = vadd.f32 %v2469_v23, %v5340_v36  ;;  %v2558_v26 = vpop.f32.mrf.mxu3 }
 0x462   :  { %4208 = vtanh.f32 %v2426_v10 }
 0x463   :  { %v4205_v53 = vpop.eup %4204  ;;  %3071 = vst [vmem:[#allocation5 + $0x2b0] sm:$0xff] %v2943_v25  ;;  %v2559_v6 = vadd.f32 %v2558_v26, %v2470_v63 }
 0x464   :  { %v2872_v38 = vpack.c.bf16 %v4205_v53, %v4205_v53  ;;  %v4207_v37 = vpop.eup %4206 }
 0x465   :  { %4210 = vtanh.f32 %v2559_v6  ;;  %v2339_v48 = vpop.f32.mrf.mxu0  ;;  %2511 = vmatmul.bf16.gmra.mxu2 %v4679_v50 }
 0x466   :  { %3000 = vst [vmem:[#allocation5 + $0xc0] sm:$0xf] %v2872_v38  ;;  %v2340_v27 = vadd.f32 %v2339_v48, %v5208_v46  ;;  %v2428_v19 = vpop.f32.mrf.mxu1  ;;  %2600 = vmatmul.bf16.gmra.mxu3 %v4683_v56  ;;  %4212 = vtanh.f32 %v5303_v20 }
 0x468   :  { %v4209_v21 = vpop.eup %4208  ;;  %v2429_v11 = vadd.f32 %v2428_v19, %v2340_v27  ;;  %v2472_v43 = vpop.f32.mrf.mxu2 }
 0x469   :  { %v2947_v4 = vpack.c.bf16 %v4209_v21, %v4207_v37  ;;  %v2473_v18 = vadd.f32 %v2472_v43, %v5340_v36  ;;  %v2561_v54 = vpop.f32.mrf.mxu3 }
 0x46a   :  { %4214 = vtanh.f32 %v2429_v11 }
 0x46b   :  { %v4211_v7 = vpop.eup %4210  ;;  %3075 = vst [vmem:[#allocation5 + $0x2cc] sm:$0xff] %v2947_v4  ;;  %v2562_v50 = vadd.f32 %v2561_v54, %v2473_v18 }
 0x46c   :  { %v2876_v30 = vpack.c.bf16 %v4211_v7, %v4211_v7  ;;  %v4213_v59 = vpop.eup %4212 }
 0x46d   :  { %4216 = vtanh.f32 %v2562_v50  ;;  %v2341_v41 = vpop.f32.mrf.mxu0 }
 0x46e   :  { %3004 = vst [vmem:[#allocation5 + $0xdc] sm:$0xf] %v2876_v30  ;;  %v2342_v56 = vadd.f32 %v2341_v41, %v5208_v46  ;;  %v2430_v0 = vpop.f32.mrf.mxu1  ;;  %4218 = vtanh.f32 %v5308_v17 }
 0x470   :  { %v4215_v44 = vpop.eup %4214  ;;  %v2431_v1 = vadd.f32 %v2430_v0, %v2342_v56  ;;  %v2474_v3 = vpop.f32.mrf.mxu2 }
 0x471   :  { %v2951_v20 = vpack.c.bf16 %v4215_v44, %v4213_v59  ;;  %v2475_v2 = vadd.f32 %v2474_v3, %v5340_v36  ;;  %v2563_v52 = vpop.f32.mrf.mxu3 }
 0x472   :  { %4220 = vtanh.f32 %v2431_v1 }
 0x473   :  { %v4217_v49 = vpop.eup %4216  ;;  %3079 = vst [vmem:[#allocation5 + $0x2e8] sm:$0xff] %v2951_v20  ;;  %v2564_v15 = vadd.f32 %v2563_v52, %v2475_v2 }
 0x474   :  { %v2880_v47 = vpack.c.bf16 %v4217_v49, %v4217_v49  ;;  %v4219_v17 = vpop.eup %4218 }
 0x475   :  { %4222 = vtanh.f32 %v2564_v15  ;;  %v2344_v42 = vpop.f32.mrf.mxu0  ;;  %2516 = vmatmul.bf16.gmra.mxu2 %v5465_v31 }
 0x476   :  { %3008 = vst [vmem:[#allocation5 + $0xf8] sm:$0xf] %v2880_v47  ;;  %v2345_v24 = vadd.f32 %v2344_v42, %v5208_v46  ;;  %v2433_v33 = vpop.f32.mrf.mxu1  ;;  %2605 = vmatmul.bf16.gmra.mxu3 %v5466_v16  ;;  %4224 = vtanh.f32 %v5317_v9 }
 0x478   :  { %v4221_v57 = vpop.eup %4220  ;;  %v2434_v14 = vadd.f32 %v2433_v33, %v2345_v24  ;;  %v2477_v29 = vpop.f32.mrf.mxu2 }
 0x479   :  { %v2955_v13 = vpack.c.bf16 %v4221_v57, %v4219_v17  ;;  %v2478_v28 = vadd.f32 %v2477_v29, %v5340_v36  ;;  %v2566_v62 = vpop.f32.mrf.mxu3 }
 0x47a   :  { %4226 = vtanh.f32 %v2434_v14 }
 0x47b   :  { %v4223_v8 = vpop.eup %4222  ;;  %3083 = vst [vmem:[#allocation5 + $0x304] sm:$0xff] %v2955_v13  ;;  %v2567_v31 = vadd.f32 %v2566_v62, %v2478_v28 }
 0x47c   :  { %v2884_v61 = vpack.c.bf16 %v4223_v8, %v4223_v8  ;;  %v4225_v22 = vpop.eup %4224 }
 0x47d   :  { %4228 = vtanh.f32 %v2567_v31  ;;  %v2346_v51 = vpop.f32.mrf.mxu0 }
 0x47e   :  { %3012 = vst [vmem:[#allocation5 + $0x114] sm:$0xf] %v2884_v61  ;;  %v2347_v16 = vadd.f32 %v2346_v51, %v5208_v46  ;;  %v2435_v35 = vpop.f32.mrf.mxu1  ;;  %4230 = vtanh.f32 %v5322_v60 }
 0x480   :  { %v4227_v5 = vpop.eup %4226  ;;  %v2436_v34 = vadd.f32 %v2435_v35, %v2347_v16  ;;  %v2479_v45 = vpop.f32.mrf.mxu2 }
 0x481   :  { %v2959_v9 = vpack.c.bf16 %v4227_v5, %v4225_v22  ;;  %v2480_v10 = vadd.f32 %v2479_v45, %v5340_v36  ;;  %v2568_v23 = vpop.f32.mrf.mxu3 }
 0x482   :  { %4232 = vtanh.f32 %v2436_v34 }
 0x483   :  { %v4229_v25 = vpop.eup %4228  ;;  %3087 = vst [vmem:[#allocation5 + $0x320] sm:$0xff] %v2959_v9  ;;  %v2569_v63 = vadd.f32 %v2568_v23, %v2480_v10 }
 0x484   :  { %v2888_v26 = vpack.c.bf16 %v4229_v25, %v4229_v25  ;;  %v4231_v60 = vpop.eup %4230 }
 0x485   :  { %4234 = vtanh.f32 %v2569_v63  ;;  %v2349_v53 = vpop.f32.mrf.mxu0  ;;  %2521 = vmatmul.bf16.gmra.mxu2 %v4715_v12 }
 0x486   :  { %3016 = vst [vmem:[#allocation5 + $0x130] sm:$0xf] %v2888_v26  ;;  %v2350_v6 = vadd.f32 %v2349_v53, %v5208_v46  ;;  %v2438_v38 = vpop.f32.mrf.mxu1  ;;  %2610 = vmatmul.bf16.gmra.mxu3 %v5458_v40  ;;  %4236 = vtanh.f32 %v5329_v58 }
 0x488   :  { %v4233_v48 = vpop.eup %4232  ;;  %v2439_v27 = vadd.f32 %v2438_v38, %v2350_v6  ;;  %v2482_v19 = vpop.f32.mrf.mxu2 }
 0x489   :  { %v2963_v37 = vpack.c.bf16 %v4233_v48, %v4231_v60  ;;  %v2483_v21 = vadd.f32 %v2482_v19, %v5340_v36  ;;  %v2571_v11 = vpop.f32.mrf.mxu3 }
 0x48a   :  { %4238 = vtanh.f32 %v2439_v27 }
 0x48b   :  { %v4235_v43 = vpop.eup %4234  ;;  %3091 = vst [vmem:[#allocation5 + $0x33c] sm:$0xff] %v2963_v37  ;;  %v2572_v12 = vadd.f32 %v2571_v11, %v2483_v21 }
 0x48c   :  { %v2892_v4 = vpack.c.bf16 %v4235_v43, %v4235_v43  ;;  %v4237_v54 = vpop.eup %4236 }
 0x48d   :  { %4240 = vtanh.f32 %v2572_v12  ;;  %v2351_v18 = vpop.f32.mrf.mxu0 }
 0x48e   :  { %3020 = vst [vmem:[#allocation5 + $0x14c] sm:$0xf] %v2892_v4  ;;  %v2352_v40 = vadd.f32 %v2351_v18, %v5208_v46  ;;  %v2440_v7 = vpop.f32.mrf.mxu1  ;;  %4242 = vtanh.f32 %v5334_v39 }
 0x490   :  { %v4239_v50 = vpop.eup %4238  ;;  %v2441_v30 = vadd.f32 %v2440_v7, %v2352_v40  ;;  %v2484_v41 = vpop.f32.mrf.mxu2 }
 0x491   :  { %v2967_v58 = vpack.c.bf16 %v4239_v50, %v4237_v54  ;;  %v2485_v56 = vadd.f32 %v2484_v41, %v5340_v36  ;;  %v2573_v0 = vpop.f32.mrf.mxu3 }
 0x492   :  { %4244 = vtanh.f32 %v2441_v30 }
 0x493   :  { %v4241_v59 = vpop.eup %4240  ;;  %3095 = vst [vmem:[#allocation5 + $0x358] sm:$0xff] %v2967_v58  ;;  %v2574_v44 = vadd.f32 %v2573_v0, %v2485_v56 }
 0x494   :  { %v2896_v1 = vpack.c.bf16 %v4241_v59, %v4241_v59  ;;  %v4243_v46 = vpop.eup %4242 }
 0x495   :  { %4246 = vtanh.f32 %v2574_v44  ;;  %2526 = vmatmul.bf16.gmra.mxu2 %v4736_v32 }
 0x496   :  { %3024 = vst [vmem:[#allocation5 + $0x168] sm:$0xf] %v2896_v1  ;;  %2615 = vmatmul.bf16.gmra.mxu3 %v4740_v55 }
 0x498   :  { %v4245_v3 = vpop.eup %4244  ;;  %v2487_v20 = vpop.f32.mrf.mxu2 }
 0x499   :  { %v2971_v2 = vpack.c.bf16 %v4245_v3, %v4243_v46  ;;  %v2488_v39 = vadd.f32 %v2487_v20, %v5340_v36  ;;  %v2576_v52 = vpop.f32.mrf.mxu3 }
 0x49b   :  { %v4247_v49 = vpop.eup %4246  ;;  %3099 = vst [vmem:[#allocation5 + $0x374] sm:$0xff] %v2971_v2  ;;  %v2577_v15 = vadd.f32 %v2576_v52, %v2488_v39 }
 0x49c   :  { %v2900_v47 = vpack.c.bf16 %v4247_v49, %v4247_v49 }
 0x49d   :  { %4248 = vtanh.f32 %v2577_v15 }
 0x49e   :  { %3028 = vst [vmem:[#allocation5 + $0x184] sm:$0xf] %v2900_v47 }
 0x4a0   :  { %v2489_v42 = vpop.f32.mrf.mxu2 }
 0x4a1   :  { %v2490_v24 = vadd.f32 %v2489_v42, %v5340_v36  ;;  %v2578_v32 = vpop.f32.mrf.mxu3 }
 0x4a3   :  { %v4249_v33 = vpop.eup %4248  ;;  %v2579_v17 = vadd.f32 %v2578_v32, %v2490_v24 }
 0x4a4   :  { %v2904_v55 = vpack.c.bf16 %v4249_v33, %v4249_v33 }
 0x4a5   :  { %4250 = vtanh.f32 %v2579_v17 }
 0x4a6   :  { %3032 = vst [vmem:[#allocation5 + $0x1a0] sm:$0xf] %v2904_v55 }
 0x4a8   :  { %v2492_v57 = vpop.f32.mrf.mxu2 }
 0x4a9   :  { %v2493_v14 = vadd.f32 %v2492_v57, %v5340_v36  ;;  %v2581_v29 = vpop.f32.mrf.mxu3 }
 0x4ab   :  { %v4251_v13 = vpop.eup %4250  ;;  %v2582_v28 = vadd.f32 %v2581_v29, %v2493_v14 }
 0x4ac   :  { %v2908_v62 = vpack.c.bf16 %v4251_v13, %v4251_v13 }
 0x4ad   :  { %4252 = vtanh.f32 %v2582_v28 }
 0x4ae   :  { %3036 = vst [vmem:[#allocation5 + $0x1bc] sm:$0xf] %v2908_v62 }
 0x4b0   :  { %v2494_v8 = vpop.f32.mrf.mxu2 }
 0x4b1   :  { %v2495_v31 = vadd.f32 %v2494_v8, %v5340_v36  ;;  %v2583_v61 = vpop.f32.mrf.mxu3 }
 0x4b3   :  { %v4253_v51 = vpop.eup %4252  ;;  %v2584_v16 = vadd.f32 %v2583_v61, %v2495_v31 }
 0x4b4   :  { %v2912_v35 = vpack.c.bf16 %v4253_v51, %v4253_v51 }
 0x4b5   :  { %4254 = vtanh.f32 %v2584_v16 }
 0x4b6   :  { %3040 = vst [vmem:[#allocation5 + $0x1d8] sm:$0xf] %v2912_v35 }
 0x4b8   :  { %v2497_v22 = vpop.f32.mrf.mxu2 }
 0x4b9   :  { %v2498_v5 = vadd.f32 %v2497_v22, %v5340_v36  ;;  %v2586_v34 = vpop.f32.mrf.mxu3 }
 0x4bb   :  { %v4255_v45 = vpop.eup %4254  ;;  %v2587_v9 = vadd.f32 %v2586_v34, %v2498_v5 }
 0x4bc   :  { %v2916_v10 = vpack.c.bf16 %v4255_v45, %v4255_v45 }
 0x4bd   :  { %4256 = vtanh.f32 %v2587_v9 }
 0x4be   :  { %3044 = vst [vmem:[#allocation5 + $0x1f4] sm:$0xf] %v2916_v10 }
 0x4c0   :  { %v2499_v23 = vpop.f32.mrf.mxu2 }
 0x4c1   :  { %v2500_v25 = vadd.f32 %v2499_v23, %v5340_v36  ;;  %v2588_v63 = vpop.f32.mrf.mxu3 }
 0x4c3   :  { %v4257_v26 = vpop.eup %4256  ;;  %v2589_v53 = vadd.f32 %v2588_v63, %v2500_v25 }
 0x4c4   :  { %v2920_v6 = vpack.c.bf16 %v4257_v26, %v4257_v26 }
 0x4c5   :  { %4258 = vtanh.f32 %v2589_v53 }
 0x4c6   :  { %3048 = vst [vmem:[#allocation5 + $0x210] sm:$0xf] %v2920_v6 }
 0x4c8   :  { %v2502_v38 = vpop.f32.mrf.mxu2 }
 0x4c9   :  { %v2503_v60 = vadd.f32 %v2502_v38, %v5340_v36  ;;  %v2591_v48 = vpop.f32.mrf.mxu3 }
 0x4cb   :  { %v4259_v27 = vpop.eup %4258  ;;  %v2592_v19 = vadd.f32 %v2591_v48, %v2503_v60 }
 0x4cc   :  { %v2924_v37 = vpack.c.bf16 %v4259_v27, %v4259_v27 }
 0x4cd   :  { %4260 = vtanh.f32 %v2592_v19 }
 0x4ce   :  { %3052 = vst [vmem:[#allocation5 + $0x22c] sm:$0xf] %v2924_v37 }
 0x4d0   :  { %v2504_v21 = vpop.f32.mrf.mxu2 }
 0x4d1   :  { %v2505_v11 = vadd.f32 %v2504_v21, %v5340_v36  ;;  %v2593_v43 = vpop.f32.mrf.mxu3 }
 0x4d3   :  { %v4261_v12 = vpop.eup %4260  ;;  %v2594_v4 = vadd.f32 %v2593_v43, %v2505_v11 }
 0x4d4   :  { %v2928_v18 = vpack.c.bf16 %v4261_v12, %v4261_v12 }
 0x4d5   :  { %4262 = vtanh.f32 %v2594_v4 }
 0x4d6   :  { %3056 = vst [vmem:[#allocation5 + $0x248] sm:$0xf] %v2928_v18 }
 0x4d8   :  { %v2507_v40 = vpop.f32.mrf.mxu2 }
 0x4d9   :  { %v2508_v54 = vadd.f32 %v2507_v40, %v5340_v36  ;;  %v2596_v7 = vpop.f32.mrf.mxu3 }
 0x4db   :  { %v4263_v50 = vpop.eup %4262  ;;  %v2597_v30 = vadd.f32 %v2596_v7, %v2508_v54 }
 0x4dc   :  { %v2932_v41 = vpack.c.bf16 %v4263_v50, %v4263_v50 }
 0x4dd   :  { %4264 = vtanh.f32 %v2597_v30 }
 0x4de   :  { %3060 = vst [vmem:[#allocation5 + $0x264] sm:$0xf] %v2932_v41 }
 0x4e0   :  { %v2509_v58 = vpop.f32.mrf.mxu2 }
 0x4e1   :  { %v2510_v56 = vadd.f32 %v2509_v58, %v5340_v36  ;;  %v2598_v0 = vpop.f32.mrf.mxu3 }
 0x4e3   :  { %v4265_v59 = vpop.eup %4264  ;;  %v2599_v44 = vadd.f32 %v2598_v0, %v2510_v56 }
 0x4e4   :  { %v2936_v1 = vpack.c.bf16 %v4265_v59, %v4265_v59 }
 0x4e5   :  { %4266 = vtanh.f32 %v2599_v44 }
 0x4e6   :  { %3064 = vst [vmem:[#allocation5 + $0x280] sm:$0xf] %v2936_v1 }
 0x4e8   :  { %v2512_v46 = vpop.f32.mrf.mxu2 }
 0x4e9   :  { %v2513_v3 = vadd.f32 %v2512_v46, %v5340_v36  ;;  %v2601_v20 = vpop.f32.mrf.mxu3 }
 0x4eb   :  { %v4267_v2 = vpop.eup %4266  ;;  %v2602_v39 = vadd.f32 %v2601_v20, %v2513_v3 }
 0x4ec   :  { %v2940_v52 = vpack.c.bf16 %v4267_v2, %v4267_v2 }
 0x4ed   :  { %4268 = vtanh.f32 %v2602_v39 }
 0x4ee   :  { %3068 = vst [vmem:[#allocation5 + $0x29c] sm:$0xf] %v2940_v52 }
 0x4f0   :  { %v2514_v49 = vpop.f32.mrf.mxu2 }
 0x4f1   :  { %v2515_v15 = vadd.f32 %v2514_v49, %v5340_v36  ;;  %v2603_v47 = vpop.f32.mrf.mxu3 }
 0x4f3   :  { %v4269_v42 = vpop.eup %4268  ;;  %v2604_v24 = vadd.f32 %v2603_v47, %v2515_v15 }
 0x4f4   :  { %v2944_v32 = vpack.c.bf16 %v4269_v42, %v4269_v42 }
 0x4f5   :  { %4270 = vtanh.f32 %v2604_v24 }
 0x4f6   :  { %3072 = vst [vmem:[#allocation5 + $0x2b8] sm:$0xf] %v2944_v32 }
 0x4f8   :  { %v2517_v33 = vpop.f32.mrf.mxu2 }
 0x4f9   :  { %v2518_v17 = vadd.f32 %v2517_v33, %v5340_v36  ;;  %v2606_v55 = vpop.f32.mrf.mxu3 }
 0x4fb   :  { %v4271_v57 = vpop.eup %4270  ;;  %v2607_v14 = vadd.f32 %v2606_v55, %v2518_v17 }
 0x4fc   :  { %v2948_v29 = vpack.c.bf16 %v4271_v57, %v4271_v57 }
 0x4fd   :  { %4272 = vtanh.f32 %v2607_v14 }
 0x4fe   :  { %3076 = vst [vmem:[#allocation5 + $0x2d4] sm:$0xf] %v2948_v29 }
 0x500   :  { %v2519_v13 = vpop.f32.mrf.mxu2 }
 0x501   :  { %v2520_v28 = vadd.f32 %v2519_v13, %v5340_v36  ;;  %v2608_v62 = vpop.f32.mrf.mxu3 }
 0x503   :  { %v4273_v8 = vpop.eup %4272  ;;  %v2609_v31 = vadd.f32 %v2608_v62, %v2520_v28 }
 0x504   :  { %v2952_v61 = vpack.c.bf16 %v4273_v8, %v4273_v8 }
 0x505   :  { %4274 = vtanh.f32 %v2609_v31 }
 0x506   :  { %3080 = vst [vmem:[#allocation5 + $0x2f0] sm:$0xf] %v2952_v61 }
 0x508   :  { %v2522_v51 = vpop.f32.mrf.mxu2 }
 0x509   :  { %v2523_v16 = vadd.f32 %v2522_v51, %v5340_v36  ;;  %v2611_v35 = vpop.f32.mrf.mxu3 }
 0x50b   :  { %v4275_v22 = vpop.eup %4274  ;;  %v2612_v5 = vadd.f32 %v2611_v35, %v2523_v16 }
 0x50c   :  { %v2956_v34 = vpack.c.bf16 %v4275_v22, %v4275_v22 }
 0x50d   :  { %4276 = vtanh.f32 %v2612_v5 }
 0x50e   :  { %3084 = vst [vmem:[#allocation5 + $0x30c] sm:$0xf] %v2956_v34 }
 0x510   :  { %v2524_v45 = vpop.f32.mrf.mxu2 }
 0x511   :  { %v2525_v9 = vadd.f32 %v2524_v45, %v5340_v36  ;;  %v2613_v10 = vpop.f32.mrf.mxu3 }
 0x513   :  { %v4277_v23 = vpop.eup %4276  ;;  %v2614_v25 = vadd.f32 %v2613_v10, %v2525_v9 }
 0x514   :  { %v2960_v63 = vpack.c.bf16 %v4277_v23, %v4277_v23 }
 0x515   :  { %4278 = vtanh.f32 %v2614_v25 }
 0x516   :  { %3088 = vst [vmem:[#allocation5 + $0x328] sm:$0xf] %v2960_v63 }
 0x518   :  { %v2527_v26 = vpop.f32.mrf.mxu2 }
 0x519   :  { %v2528_v53 = vadd.f32 %v2527_v26, %v5340_v36  ;;  %v2616_v6 = vpop.f32.mrf.mxu3 }
 0x51b   :  { %v4279_v38 = vpop.eup %4278  ;;  %v2617_v60 = vadd.f32 %v2616_v6, %v2528_v53 }
 0x51c   :  { %v2964_v48 = vpack.c.bf16 %v4279_v38, %v4279_v38 }
 0x51d   :  { %4280 = vtanh.f32 %v2617_v60 }
 0x51e   :  { %3092 = vst [vmem:[#allocation5 + $0x344] sm:$0xf] %v2964_v48 }
 0x520   :  { %v2529_v27 = vpop.f32.mrf.mxu2 }
 0x521   :  { %v2530_v19 = vadd.f32 %v2529_v27, %v5340_v36  ;;  %v2618_v37 = vpop.f32.mrf.mxu3 }
 0x523   :  { %v4281_v21 = vpop.eup %4280  ;;  %v2619_v11 = vadd.f32 %v2618_v37, %v2530_v19 }
 0x524   :  { %v2968_v43 = vpack.c.bf16 %v4281_v21, %v4281_v21 }
 0x525   :  { %4282 = vtanh.f32 %v2619_v11 }
 0x526   :  { %3096 = vst [vmem:[#allocation5 + $0x360] sm:$0xf] %v2968_v43 }
 0x52b   :  { %v4283_v12 = vpop.eup %4282 }
 0x52c   :  { %v2972_v4 = vpack.c.bf16 %v4283_v12, %v4283_v12 }
 0x52e   :  { %3100 = vst [vmem:[#allocation5 + $0x37c] sm:$0xf] %v2972_v4 }
 0x52f   :  { %3113 = dma.vmem_to_hbm [thread:$0]  %s3106_s21, 14336, %s3108_s26, [#allocation4], %s4340_s23, %s4340_s23, %s4341_s24  }
 0x530   :  { %4337 = dma.done.wait [#allocation4], 14336  }
 0x531   :  { %4338 = vsyncadd [#allocation4], 4294952960 }
 0x532   :  { %3118 = vsyncpa [#allocation3], 1 }
 0x533   :  { %3119 = vsyncpa [#allocation4], 1 }

</bundles_post_ra>
